<compile_context>
chip_gen: v7x
topology: tpu7x:2x2x1
jax: 0.10.0
libtpu: 0.0.40
codegen_flags: <defaults>
</compile_context>

<pallas_src>
import functools

import jax
import jax.numpy as jnp
from jax.experimental import pallas as pl
from jax.experimental.pallas import tpu as pltpu


def _round_up(x, m):
    return ((x + m - 1) // m) * m


@functools.lru_cache(maxsize=1)
def _vmem_capacity_bytes():
    try:
        return int(pltpu.get_tpu_info().vmem_capacity_bytes)
    except Exception:
        return 64 * 1024 * 1024  # conservative (v7x per-TensorCore VMEM)


# ----------------------------------------------------------------------------
# Pallas kernel: one LSTM layer, one (batch-chunk, time-chunk) grid cell.
# ----------------------------------------------------------------------------
def _lstm_layer_kernel(x_ref, wih_ref, whh_ref, b_ref, y_ref, hN_ref, cN_ref, gin_ref,
                       *, seq_len, needs_mask, unroll):
    Tc, Bc, Din = x_ref.shape
    H = whh_ref.shape[0]          # padded hidden size (multiple of 128)

    # Init the carried h/c state at the start of each batch-chunk's time sweep.
    @pl.when(pl.program_id(1) == 0)
    def _():
        hN_ref[...] = jnp.zeros_like(hN_ref)
        cN_ref[...] = jnp.zeros_like(cN_ref)

    # (1) Input projection for the whole time chunk as ONE MXU GEMM:
    #     (Tc*Bc, Din) @ (Din, 4H) + bias -> gates_in scratch (f32 accumulate).
    # TODO(synk): software-pipeline this GEMM into the recurrence (per-row pieces inside the
    # loop) to fill the MXU's dead cycles and shrink the gin scratch further.
    x2d = x_ref[...].reshape(Tc * Bc, Din)
    gin = jnp.dot(x2d, wih_ref[...], preferred_element_type=jnp.float32) + b_ref[...]
    gin_ref[...] = gin.astype(gin_ref.dtype)

    t0 = pl.program_id(1) * Tc

    # (2) Serial recurrence over the chunk; h/c carried in vregs (f32).
    # TODO(synk): hold W_hh in MXU weight registers across the loop via
    # pltpu.matmul_push_rhs / matmul_acc_lhs instead of re-pushing it each step.
    def step(t, carry):
        h, c = carry
        row0 = pl.multiple_of(t * Bc, Bc)
        gates = gin_ref[pl.ds(row0, Bc), :].astype(jnp.float32) + jnp.dot(
            h.astype(whh_ref.dtype), whh_ref[...],
            preferred_element_type=jnp.float32)                   # (Bc, 4H) f32
        # Slice BEFORE the nonlinearities: sigmoid on i|f and o, tanh only on g.
        if_g = jax.nn.sigmoid(gates[:, : 2 * H])                  # (Bc, 2H)
        g_g = jnp.tanh(gates[:, 2 * H: 3 * H])                    # (Bc, H)
        o_g = jax.nn.sigmoid(gates[:, 3 * H:])                    # (Bc, H)
        c_new = if_g[:, H:] * c + if_g[:, :H] * g_g
        h_new = o_g * jnp.tanh(c_new)
        if needs_mask:
            valid = (t0 + t) < seq_len
            h_new = jnp.where(valid, h_new, h)
            c_new = jnp.where(valid, c_new, c)
        y_ref[t] = h_new.astype(y_ref.dtype)
        return (h_new, c_new)

    hT, cT = jax.lax.fori_loop(0, Tc, step, (hN_ref[...], cN_ref[...]), unroll=unroll)
    hN_ref[...] = hT
    cN_ref[...] = cT


# ----------------------------------------------------------------------------
# VMEM-budget-driven tile selection (generation-aware via get_tpu_info).
# ----------------------------------------------------------------------------
def _select_tiles(seq_len, batch, din_pad, h_pad, vmem_cap):
    G = 4 * h_pad
    budget = int(vmem_cap * 0.55)                       # headroom for compiler scratch
    fixed = (din_pad + h_pad) * G * 2 + G * 4           # single-buffered weights + bias

    B8 = _round_up(batch, 8)
    if B8 >= 16:
        # >= 2 batch chunks so the "parallel" axis feeds v7x's second TensorCore.
        bc0 = min(128, _round_up(-(-B8 // 2), 8))
    else:
        bc0 = B8
    bc_candidates = [c for c in (128, 64, 32, 16, 8) if c <= bc0]

    def chunk_bytes(bc, tc, gin_elt):
        return (fixed
                + tc * bc * G * gin_elt                 # gates_in scratch
                + 2 * tc * bc * din_pad * 2             # x chunk, bf16, double-buffered
                + 2 * tc * bc * h_pad * 2               # y chunk, bf16, double-buffered
                + 2 * 2 * bc * h_pad * 4)               # resident h/c output blocks

    def pick_tc(bc, gin_elt):
        feas = [c for c in (32, 16, 8, 4, 2, 1) if chunk_bytes(bc, c, gin_elt) <= budget]
        if not feas:
            return None
        # Minimize wasted (padded) recurrence steps first, then the number of grid steps.
        return min(feas, key=lambda c: (_round_up(seq_len, c), _round_up(seq_len, c) // c))

    chosen = None
    for bc in bc_candidates:
        tc_f32 = pick_tc(bc, 4)
        tc_bf16 = pick_tc(bc, 2)
        if tc_f32 is not None and (tc_bf16 is None or tc_f32 >= min(tc_bf16, 8)):
            chosen = (bc, tc_f32, jnp.float32, 4)
            break
        if tc_bf16 is not None:
            chosen = (bc, tc_bf16, jnp.bfloat16, 2)
            break
    if chosen is None:                                  # last resort: tiny tiles, bf16 gin
        chosen = (bc_candidates[-1], 1, jnp.bfloat16, 2)

    bc, tc, gin_dtype, gin_elt = chosen
    b_pad = _round_up(B8, bc)
    t_pad = _round_up(seq_len, tc)
    want = max(32 * 1024 * 1024, 2 * chunk_bytes(bc, tc, gin_elt))
    vmem_limit = int(max(16 * 1024 * 1024, min(vmem_cap - 4 * 1024 * 1024, want)))
    return bc, b_pad, tc, t_pad, gin_dtype, vmem_limit


# ----------------------------------------------------------------------------
# One LSTM layer over a time-major, padded sequence.
# ----------------------------------------------------------------------------
def lstm_layer(x_tm, wih_t, whh_t, bias, *, seq_len, Bc, Tc, gin_dtype, vmem_limit, unroll):
    """x_tm: (T_pad, B_pad, Din_pad) bf16.  wih_t: (Din_pad, 4H_pad) bf16,
    whh_t: (H_pad, 4H_pad) bf16, bias: (1, 4H_pad) f32.
    Returns y (T_pad, B_pad, H_pad) bf16, h_T (B_pad, H_pad) f32, c_T (B_pad, H_pad) f32."""
    T_pad, B_pad, Din = x_tm.shape
    H = whh_t.shape[0]
    G = 4 * H
    nb, nt = B_pad // Bc, T_pad // Tc
    needs_mask = (T_pad != seq_len)

    kernel = functools.partial(_lstm_layer_kernel, seq_len=seq_len,
                               needs_mask=needs_mask, unroll=unroll)

    grid_spec = pltpu.PrefetchScalarGridSpec(
        num_scalar_prefetch=0,
        grid=(nb, nt),
        in_specs=[
            pl.BlockSpec((Tc, Bc, Din), lambda b, t: (t, b, 0)),                # x chunk
            pl.BlockSpec((Din, G), lambda b, t: (0, 0),
                         pipeline_mode=pl.Buffered(1)),                         # W_ih^T (const)
            pl.BlockSpec((H, G), lambda b, t: (0, 0),
                         pipeline_mode=pl.Buffered(1)),                         # W_hh^T (const)
            pl.BlockSpec((1, G), lambda b, t: (0, 0),
                         pipeline_mode=pl.Buffered(1)),                         # bias (const)
        ],
        out_specs=(
            pl.BlockSpec((Tc, Bc, H), lambda b, t: (t, b, 0)),                  # y chunk
            pl.BlockSpec((Bc, H), lambda b, t: (b, 0)),                         # h_T (resident)
            pl.BlockSpec((Bc, H), lambda b, t: (b, 0)),                         # c_T (resident)
        ),
        scratch_shapes=[pltpu.VMEM((Tc * Bc, G), gin_dtype)],
    )
    return pl.pallas_call(
        kernel,
        grid_spec=grid_spec,
        out_shape=(
            jax.ShapeDtypeStruct((T_pad, B_pad, H), jnp.bfloat16),
            jax.ShapeDtypeStruct((B_pad, H), jnp.float32),
            jax.ShapeDtypeStruct((B_pad, H), jnp.float32),
        ),
        compiler_params=pltpu.CompilerParams(
            dimension_semantics=("parallel", "arbitrary"),
            vmem_limit_bytes=vmem_limit,
        ),
    )(x_tm, wih_t, whh_t, bias)


# ----------------------------------------------------------------------------
# One-time parameter prep: gate-blocked zero padding to 128 lanes, transpose,
# bf16 weights, fused f32 bias, bf16 embedding table.
# ----------------------------------------------------------------------------
def prepare_encoder_params(params, *, num_layers):
    H = params["w_hh_l0"].shape[1]
    E = params["embedding"].shape[1]
    H_pad = _round_up(H, 128)
    E_pad = _round_up(E, 128)

    prepped = {}
    emb = params["embedding"].astype(jnp.bfloat16)
    prepped["embedding"] = jnp.pad(emb, ((0, 0), (0, E_pad - E)))

    for l in range(num_layers):
        d_in, d_in_pad = (E, E_pad) if l == 0 else (H, H_pad)
        # Gate-blocked padding so [i|f|g|o] slices stay aligned after padding H -> H_pad.
        w_ih = params[f"w_ih_l{l}"].reshape(4, H, d_in)
        w_ih = jnp.pad(w_ih, ((0, 0), (0, H_pad - H), (0, d_in_pad - d_in)))
        w_hh = params[f"w_hh_l{l}"].reshape(4, H, H)
        w_hh = jnp.pad(w_hh, ((0, 0), (0, H_pad - H), (0, H_pad - H)))
        b = (params[f"b_ih_l{l}"] + params[f"b_hh_l{l}"]).reshape(4, H)
        b = jnp.pad(b, ((0, 0), (0, H_pad - H)))
        prepped[f"wih_t_l{l}"] = jnp.transpose(
            w_ih.reshape(4 * H_pad, d_in_pad)).astype(jnp.bfloat16)     # (Din_pad, 4H_pad)
        prepped[f"whh_t_l{l}"] = jnp.transpose(
            w_hh.reshape(4 * H_pad, H_pad)).astype(jnp.bfloat16)        # (H_pad, 4H_pad)
        prepped[f"bias_l{l}"] = b.reshape(1, 4 * H_pad).astype(jnp.float32)
    return prepped


# ----------------------------------------------------------------------------
# LSTMEncoder forward (embedding lookup is JAX glue; recurrence is in-kernel).
# ----------------------------------------------------------------------------
@functools.partial(jax.jit, static_argnames=("num_layers", "hidden_size"))
def lstm_encoder_forward(prepped, x_ids, *, num_layers, hidden_size):
    B, T = x_ids.shape
    E_pad = prepped["embedding"].shape[1]
    H_pad = prepped["whh_t_l0"].shape[0]

    Bc, B_pad, Tc, T_pad, gin_dtype, vmem_limit = _select_tiles(
        T, B, max(E_pad, H_pad), H_pad, _vmem_capacity_bytes())

    # Scale unroll inversely with the per-step (Bc, 4H) f32 gate footprint.
    gate_bytes = Bc * 4 * H_pad * 4
    if gate_bytes >= 512 * 1024:
        unroll = 1
    elif gate_bytes >= 128 * 1024:
        unroll = 2
    else:
        unroll = True if Tc <= 8 else 4

    # Embedding gather directly into time-major layout (transpose folded into the gather).
    # TODO(synk): fuse the embedding row-gather into the layer-0 kernel via scalar prefetch.
    emb_tm = jnp.take(prepped["embedding"], jnp.transpose(x_ids), axis=0)  # (T, B, E_pad) bf16
    emb_tm = jnp.pad(emb_tm, ((0, T_pad - T), (0, B_pad - B), (0, 0)))

    layer_in = emb_tm
    hs, cs = [], []
    for l in range(num_layers):
        y, hT, cT = lstm_layer(
            layer_in, prepped[f"wih_t_l{l}"], prepped[f"whh_t_l{l}"], prepped[f"bias_l{l}"],
            seq_len=T, Bc=Bc, Tc=Tc, gin_dtype=gin_dtype,
            vmem_limit=vmem_limit, unroll=unroll)
        # nn.LSTM inter-layer dropout only applies in training mode -> identity here.
        layer_in = y                      # (T_pad, B_pad, H_pad) bf16, stays time-major
        hs.append(hT)
        cs.append(cT)

    # Cheap epilogue: slice to the real extent FIRST, then transpose / upcast.
    outputs = jnp.transpose(layer_in[:T, :B, :hidden_size], (1, 0, 2)).astype(jnp.float32)
    hidden = jnp.stack(hs, axis=0)[:, :B, :hidden_size]
    cell = jnp.stack(cs, axis=0)[:, :B, :hidden_size]
    return outputs, hidden, cell


# ----------------------------------------------------------------------------
# Pure-JAX reference (mirrors PyTorch nn.Embedding + nn.LSTM eval forward).
# ----------------------------------------------------------------------------
def lstm_encoder_reference(params, x_ids, *, num_layers):
    B = x_ids.shape[0]
    H = params["w_hh_l0"].shape[1]
    layer_in = params["embedding"][x_ids]                 # (B, T, E)
    hs, cs = [], []
    for l in range(num_layers):
        w_ih = params[f"w_ih_l{l}"]
        w_hh = params[f"w_hh_l{l}"]
        b = params[f"b_ih_l{l}"] + params[f"b_hh_l{l}"]

        def step(carry, x_t, w_ih=w_ih, w_hh=w_hh, b=b):
            h, c = carry
            g = x_t @ w_ih.T + h @ w_hh.T + b
            i, f, gg, o = jnp.split(g, 4, axis=-1)
            i, f, o = jax.nn.sigmoid(i), jax.nn.sigmoid(f), jax.nn.sigmoid(o)
            gg = jnp.tanh(gg)
            c = f * c + i * gg
            h = o * jnp.tanh(c)
            return (h, c), h

        init = (jnp.zeros((B, H), jnp.float32), jnp.zeros((B, H), jnp.float32))
        (hT, cT), ys = jax.lax.scan(step, init, jnp.swapaxes(layer_in, 0, 1))
        layer_in = jnp.swapaxes(ys, 0, 1)
        hs.append(hT)
        cs.append(cT)
    return layer_in, jnp.stack(hs, axis=0), jnp.stack(cs, axis=0)


# ----------------------------------------------------------------------------
# Deterministic parameter construction (shapes per nn.Embedding / nn.LSTM).
# ----------------------------------------------------------------------------
def init_params(key, *, input_size, emb_dim, hidden_size, num_layers):
    params = {}
    k = 1.0 / jnp.sqrt(jnp.float32(hidden_size))
    key, sub = jax.random.split(key)
    params["embedding"] = jax.random.normal(sub, (input_size, emb_dim), jnp.float32)
    for l in range(num_layers):
        d_in = emb_dim if l == 0 else hidden_size
        key, k1, k2, k3, k4 = jax.random.split(key, 5)
        params[f"w_ih_l{l}"] = jax.random.uniform(k1, (4 * hidden_size, d_in), jnp.float32, -k, k)
        params[f"w_hh_l{l}"] = jax.random.uniform(k2, (4 * hidden_size, hidden_size), jnp.float32, -k, k)
        params[f"b_ih_l{l}"] = jax.random.uniform(k3, (4 * hidden_size,), jnp.float32, -k, k)
        params[f"b_hh_l{l}"] = jax.random.uniform(k4, (4 * hidden_size,), jnp.float32, -k, k)
    return params


if __name__ == "__main__":
    INPUT_SIZE = 16      # source vocab
    EMB_DIM = 32
    HIDDEN = 32
    NUM_LAYERS = 2
    BATCH = 2
    SEQ = 8

    key = jax.random.PRNGKey(0)
    key, pkey, xkey = jax.random.split(key, 3)
    params = init_params(
        pkey,
        input_size=INPUT_SIZE,
        emb_dim=EMB_DIM,
        hidden_size=HIDDEN,
        num_layers=NUM_LAYERS,
    )
    prepped = prepare_encoder_params(params, num_layers=NUM_LAYERS)
    x = jax.random.randint(xkey, (BATCH, SEQ), 0, INPUT_SIZE, dtype=jnp.int32)

    outputs, hidden, cell = lstm_encoder_forward(
        prepped, x, num_layers=NUM_LAYERS, hidden_size=HIDDEN)
    jax.block_until_ready((outputs, hidden, cell))

    assert outputs.shape == (BATCH, SEQ, HIDDEN)
    assert hidden.shape == (NUM_LAYERS, BATCH, HIDDEN)
    assert cell.shape == (NUM_LAYERS, BATCH, HIDDEN)
    assert bool(jnp.all(jnp.isfinite(outputs)))
    assert bool(jnp.all(jnp.isfinite(hidden)))
    assert bool(jnp.all(jnp.isfinite(cell)))

    # Numerical check vs a pure-JAX f32 reference (bf16 operands -> loose tolerance).
    ref_out, ref_h, ref_c = lstm_encoder_reference(params, x, num_layers=NUM_LAYERS)
    jax.block_until_ready((ref_out, ref_h, ref_c))
    assert bool(jnp.max(jnp.abs(outputs - ref_out)) < 5e-2)
    assert bool(jnp.max(jnp.abs(hidden - ref_h)) < 5e-2)
    assert bool(jnp.max(jnp.abs(cell - ref_c)) < 5e-2)

    print("KERNEL_OK")
</pallas_src>

<mosaic_0001>
module attributes {stable_mosaic.version = 11 : i64} {
  func.func @_lstm_layer_kernel(%arg0: i32, %arg1: i32, %arg2: memref<8x8x128xbf16, #tpu.memory_space<vmem>>, %arg3: memref<128x512xbf16, #tpu.memory_space<vmem>>, %arg4: memref<128x512xbf16, #tpu.memory_space<vmem>>, %arg5: memref<1x512xf32, #tpu.memory_space<vmem>>, %arg6: memref<8x8x128xbf16, #tpu.memory_space<vmem>>, %arg7: memref<8x128xf32, #tpu.memory_space<vmem>>, %arg8: memref<8x128xf32, #tpu.memory_space<vmem>>, %arg9: memref<64x512xf32, #tpu.memory_space<vmem>>) attributes {dimension_semantics = [#tpu.dimension_semantics<parallel>, #tpu.dimension_semantics<arbitrary>], iteration_bounds = array<i64: 1, 1>, scalar_prefetch = 0 : i64, scratch_operands = 1 : i64, tpu.core_type = #tpu.core_type<tc>, window_params = [{transform_indices = @transform_0, window_bounds = array<i64: 8, 8, 128>}, {pipeline_mode = #tpu.pipeline_mode<synchronous>, transform_indices = @transform_1, window_bounds = array<i64: 128, 512>}, {pipeline_mode = #tpu.pipeline_mode<synchronous>, transform_indices = @transform_2, window_bounds = array<i64: 128, 512>}, {pipeline_mode = #tpu.pipeline_mode<synchronous>, transform_indices = @transform_3, window_bounds = array<i64: 1, 512>}, {transform_indices = @transform_4, window_bounds = array<i64: 8, 8, 128>}, {transform_indices = @transform_5, window_bounds = array<i64: 8, 128>}, {transform_indices = @transform_6, window_bounds = array<i64: 8, 128>}]} {
    %c0_i32 = arith.constant 0 : i32
    %0 = arith.cmpi eq, %arg1, %c0_i32 : i32
    %1 = arith.extui %0 : i1 to i32
    %c0_i32_0 = arith.constant 0 : i32
    %2 = arith.cmpi ne, %1, %c0_i32_0 : i32
    scf.if %2 {
      %cst_90 = arith.constant 0.000000e+00 : f32
      %287 = vector.broadcast %cst_90 : f32 to vector<8x128xf32>
      %c0_91 = arith.constant 0 : index
      %c0_92 = arith.constant 0 : index
      %288 = vector.load %arg7[%c0_91, %c0_92] : memref<8x128xf32, #tpu.memory_space<vmem>>, vector<8x128xf32>
      tpu.vector_store %arg7[%c0_91, %c0_92], %287 {strides = array<i32>} : memref<8x128xf32, #tpu.memory_space<vmem>>, vector<8x128xf32>,
      %cst_93 = arith.constant 0.000000e+00 : f32
      %289 = vector.broadcast %cst_93 : f32 to vector<8x128xf32>
      %c0_94 = arith.constant 0 : index
      %c0_95 = arith.constant 0 : index
      %290 = vector.load %arg8[%c0_94, %c0_95] : memref<8x128xf32, #tpu.memory_space<vmem>>, vector<8x128xf32>
      tpu.vector_store %arg8[%c0_94, %c0_95], %289 {strides = array<i32>} : memref<8x128xf32, #tpu.memory_space<vmem>>, vector<8x128xf32>,
    } else {
    }
    %c0 = arith.constant 0 : index
    %c0_1 = arith.constant 0 : index
    %c0_2 = arith.constant 0 : index
    %3 = vector.load %arg2[%c0, %c0_1, %c0_2] : memref<8x8x128xbf16, #tpu.memory_space<vmem>>, vector<8x8x128xbf16>
    %4 = vector.shape_cast %3 : vector<8x8x128xbf16> to vector<64x128xbf16>
    %c0_3 = arith.constant 0 : index
    %c0_4 = arith.constant 0 : index
    %5 = vector.load %arg3[%c0_3, %c0_4] : memref<128x512xbf16, #tpu.memory_space<vmem>>, vector<128x512xbf16>
    %cst = arith.constant dense<0.000000e+00> : vector<64x512xf32>
    %6 = tpu.matmul %4, %5, %cst {dimension_numbers = #tpu.dot_dimension_numbers<[1], [0], [0], [1], [0, 0, 1, 1], [], []>} : vector<64x128xbf16>, vector<128x512xbf16>, vector<64x512xf32> -> vector<64x512xf32>
    %c0_5 = arith.constant 0 : index
    %c0_6 = arith.constant 0 : index
    %7 = vector.load %arg5[%c0_5, %c0_6] : memref<1x512xf32, #tpu.memory_space<vmem>>, vector<1x512xf32>
    %8 = vector.broadcast %7 : vector<1x512xf32> to vector<64x512xf32>
    %9 = arith.addf %6, %8 : vector<64x512xf32>
    %c0_7 = arith.constant 0 : index
    %c0_8 = arith.constant 0 : index
    %10 = vector.load %arg9[%c0_7, %c0_8] : memref<64x512xf32, #tpu.memory_space<vmem>>, vector<64x512xf32>
    tpu.vector_store %arg9[%c0_7, %c0_8], %9 {strides = array<i32>} : memref<64x512xf32, #tpu.memory_space<vmem>>, vector<64x512xf32>,
    %c0_9 = arith.constant 0 : index
    %c0_10 = arith.constant 0 : index
    %11 = vector.load %arg7[%c0_9, %c0_10] : memref<8x128xf32, #tpu.memory_space<vmem>>, vector<8x128xf32>
    %c0_11 = arith.constant 0 : index
    %c0_12 = arith.constant 0 : index
    %12 = vector.load %arg8[%c0_11, %c0_12] : memref<8x128xf32, #tpu.memory_space<vmem>>, vector<8x128xf32>
    %c0_i32_13 = arith.constant 0 : i32
    %c8_i32 = arith.constant 8 : i32
    %13 = arith.muli %c0_i32_13, %c8_i32 : i32
    %14 = tpu.assume_multiple %13, 8 : i32
    %15 = arith.index_cast %14 : i32 to index
    %c0_14 = arith.constant 0 : index
    %16 = vector.load %arg9[%15, %c0_14] : memref<64x512xf32, #tpu.memory_space<vmem>>, vector<8x512xf32>
    %17 = arith.truncf %11 : vector<8x128xf32> to vector<8x128xbf16>
    %c0_15 = arith.constant 0 : index
    %c0_16 = arith.constant 0 : index
    %18 = vector.load %arg4[%c0_15, %c0_16] : memref<128x512xbf16, #tpu.memory_space<vmem>>, vector<128x512xbf16>
    %cst_17 = arith.constant dense<0.000000e+00> : vector<8x512xf32>
    %19 = tpu.matmul %17, %18, %cst_17 {dimension_numbers = #tpu.dot_dimension_numbers<[1], [0], [0], [1], [0, 0, 1, 1], [], []>} : vector<8x128xbf16>, vector<128x512xbf16>, vector<8x512xf32> -> vector<8x512xf32>
    %20 = arith.addf %16, %19 : vector<8x512xf32>
    %21 = vector.extract_strided_slice %20 {offsets = [0, 0], sizes = [8, 256], strides = [1, 1]} : vector<8x512xf32> to vector<8x256xf32>
    %22 = arith.negf %21 : vector<8x256xf32>
    %23 = math.exp %22 : vector<8x256xf32>
    %cst_18 = arith.constant 1.000000e+00 : f32
    %24 = vector.broadcast %cst_18 : f32 to vector<8x256xf32>
    %25 = arith.addf %24, %23 : vector<8x256xf32>
    %26 = arith.divf %24, %25 : vector<8x256xf32>
    %27 = vector.extract_strided_slice %20 {offsets = [0, 256], sizes = [8, 128], strides = [1, 1]} : vector<8x512xf32> to vector<8x128xf32>
    %28 = math.tanh %27 : vector<8x128xf32>
    %29 = vector.extract_strided_slice %20 {offsets = [0, 384], sizes = [8, 128], strides = [1, 1]} : vector<8x512xf32> to vector<8x128xf32>
    %30 = arith.negf %29 : vector<8x128xf32>
    %31 = math.exp %30 : vector<8x128xf32>
    %cst_19 = arith.constant 1.000000e+00 : f32
    %32 = vector.broadcast %cst_19 : f32 to vector<8x128xf32>
    %33 = arith.addf %32, %31 : vector<8x128xf32>
    %34 = arith.divf %32, %33 : vector<8x128xf32>
    %35 = vector.extract_strided_slice %26 {offsets = [0, 128], sizes = [8, 128], strides = [1, 1]} : vector<8x256xf32> to vector<8x128xf32>
    %36 = arith.mulf %35, %12 : vector<8x128xf32>
    %37 = vector.extract_strided_slice %26 {offsets = [0, 0], sizes = [8, 128], strides = [1, 1]} : vector<8x256xf32> to vector<8x128xf32>
    %38 = arith.mulf %37, %28 : vector<8x128xf32>
    %39 = arith.addf %36, %38 : vector<8x128xf32>
    %40 = math.tanh %39 : vector<8x128xf32>
    %41 = arith.mulf %34, %40 : vector<8x128xf32>
    %42 = arith.truncf %41 : vector<8x128xf32> to vector<8x128xbf16>
    %43 = arith.index_cast %c0_i32_13 : i32 to index
    %c0_20 = arith.constant 0 : index
    %c0_21 = arith.constant 0 : index
    %44 = vector.load %arg6[%43, %c0_20, %c0_21] : memref<8x8x128xbf16, #tpu.memory_space<vmem>>, vector<1x8x128xbf16>
    %45 = vector.shape_cast %44 : vector<1x8x128xbf16> to vector<8x128xbf16>
    %46 = vector.shape_cast %42 : vector<8x128xbf16> to vector<1x8x128xbf16>
    tpu.vector_store %arg6[%43, %c0_20, %c0_21], %46 {strides = array<i32>} : memref<8x8x128xbf16, #tpu.memory_space<vmem>>, vector<1x8x128xbf16>,
    %c1_i32 = arith.constant 1 : i32
    %c8_i32_22 = arith.constant 8 : i32
    %47 = arith.muli %c1_i32, %c8_i32_22 : i32
    %48 = tpu.assume_multiple %47, 8 : i32
    %49 = arith.index_cast %48 : i32 to index
    %c0_23 = arith.constant 0 : index
    %50 = vector.load %arg9[%49, %c0_23] : memref<64x512xf32, #tpu.memory_space<vmem>>, vector<8x512xf32>
    %51 = arith.truncf %41 : vector<8x128xf32> to vector<8x128xbf16>
    %c0_24 = arith.constant 0 : index
    %c0_25 = arith.constant 0 : index
    %52 = vector.load %arg4[%c0_24, %c0_25] : memref<128x512xbf16, #tpu.memory_space<vmem>>, vector<128x512xbf16>
    %cst_26 = arith.constant dense<0.000000e+00> : vector<8x512xf32>
    %53 = tpu.matmul %51, %52, %cst_26 {dimension_numbers = #tpu.dot_dimension_numbers<[1], [0], [0], [1], [0, 0, 1, 1], [], []>} : vector<8x128xbf16>, vector<128x512xbf16>, vector<8x512xf32> -> vector<8x512xf32>
    %54 = arith.addf %50, %53 : vector<8x512xf32>
    %55 = vector.extract_strided_slice %54 {offsets = [0, 0], sizes = [8, 256], strides = [1, 1]} : vector<8x512xf32> to vector<8x256xf32>
    %56 = arith.negf %55 : vector<8x256xf32>
    %57 = math.exp %56 : vector<8x256xf32>
    %cst_27 = arith.constant 1.000000e+00 : f32
    %58 = vector.broadcast %cst_27 : f32 to vector<8x256xf32>
    %59 = arith.addf %58, %57 : vector<8x256xf32>
    %60 = arith.divf %58, %59 : vector<8x256xf32>
    %61 = vector.extract_strided_slice %54 {offsets = [0, 256], sizes = [8, 128], strides = [1, 1]} : vector<8x512xf32> to vector<8x128xf32>
    %62 = math.tanh %61 : vector<8x128xf32>
    %63 = vector.extract_strided_slice %54 {offsets = [0, 384], sizes = [8, 128], strides = [1, 1]} : vector<8x512xf32> to vector<8x128xf32>
    %64 = arith.negf %63 : vector<8x128xf32>
    %65 = math.exp %64 : vector<8x128xf32>
    %cst_28 = arith.constant 1.000000e+00 : f32
    %66 = vector.broadcast %cst_28 : f32 to vector<8x128xf32>
    %67 = arith.addf %66, %65 : vector<8x128xf32>
    %68 = arith.divf %66, %67 : vector<8x128xf32>
    %69 = vector.extract_strided_slice %60 {offsets = [0, 128], sizes = [8, 128], strides = [1, 1]} : vector<8x256xf32> to vector<8x128xf32>
    %70 = arith.mulf %69, %39 : vector<8x128xf32>
    %71 = vector.extract_strided_slice %60 {offsets = [0, 0], sizes = [8, 128], strides = [1, 1]} : vector<8x256xf32> to vector<8x128xf32>
    %72 = arith.mulf %71, %62 : vector<8x128xf32>
    %73 = arith.addf %70, %72 : vector<8x128xf32>
    %74 = math.tanh %73 : vector<8x128xf32>
    %75 = arith.mulf %68, %74 : vector<8x128xf32>
    %76 = arith.truncf %75 : vector<8x128xf32> to vector<8x128xbf16>
    %77 = arith.index_cast %c1_i32 : i32 to index
    %c0_29 = arith.constant 0 : index
    %c0_30 = arith.constant 0 : index
    %78 = vector.load %arg6[%77, %c0_29, %c0_30] : memref<8x8x128xbf16, #tpu.memory_space<vmem>>, vector<1x8x128xbf16>
    %79 = vector.shape_cast %78 : vector<1x8x128xbf16> to vector<8x128xbf16>
    %80 = vector.shape_cast %76 : vector<8x128xbf16> to vector<1x8x128xbf16>
    tpu.vector_store %arg6[%77, %c0_29, %c0_30], %80 {strides = array<i32>} : memref<8x8x128xbf16, #tpu.memory_space<vmem>>, vector<1x8x128xbf16>,
    %c2_i32 = arith.constant 2 : i32
    %c8_i32_31 = arith.constant 8 : i32
    %81 = arith.muli %c2_i32, %c8_i32_31 : i32
    %82 = tpu.assume_multiple %81, 8 : i32
    %83 = arith.index_cast %82 : i32 to index
    %c0_32 = arith.constant 0 : index
    %84 = vector.load %arg9[%83, %c0_32] : memref<64x512xf32, #tpu.memory_space<vmem>>, vector<8x512xf32>
    %85 = arith.truncf %75 : vector<8x128xf32> to vector<8x128xbf16>
    %c0_33 = arith.constant 0 : index
    %c0_34 = arith.constant 0 : index
    %86 = vector.load %arg4[%c0_33, %c0_34] : memref<128x512xbf16, #tpu.memory_space<vmem>>, vector<128x512xbf16>
    %cst_35 = arith.constant dense<0.000000e+00> : vector<8x512xf32>
    %87 = tpu.matmul %85, %86, %cst_35 {dimension_numbers = #tpu.dot_dimension_numbers<[1], [0], [0], [1], [0, 0, 1, 1], [], []>} : vector<8x128xbf16>, vector<128x512xbf16>, vector<8x512xf32> -> vector<8x512xf32>
    %88 = arith.addf %84, %87 : vector<8x512xf32>
    %89 = vector.extract_strided_slice %88 {offsets = [0, 0], sizes = [8, 256], strides = [1, 1]} : vector<8x512xf32> to vector<8x256xf32>
    %90 = arith.negf %89 : vector<8x256xf32>
    %91 = math.exp %90 : vector<8x256xf32>
    %cst_36 = arith.constant 1.000000e+00 : f32
    %92 = vector.broadcast %cst_36 : f32 to vector<8x256xf32>
    %93 = arith.addf %92, %91 : vector<8x256xf32>
    %94 = arith.divf %92, %93 : vector<8x256xf32>
    %95 = vector.extract_strided_slice %88 {offsets = [0, 256], sizes = [8, 128], strides = [1, 1]} : vector<8x512xf32> to vector<8x128xf32>
    %96 = math.tanh %95 : vector<8x128xf32>
    %97 = vector.extract_strided_slice %88 {offsets = [0, 384], sizes = [8, 128], strides = [1, 1]} : vector<8x512xf32> to vector<8x128xf32>
    %98 = arith.negf %97 : vector<8x128xf32>
    %99 = math.exp %98 : vector<8x128xf32>
    %cst_37 = arith.constant 1.000000e+00 : f32
    %100 = vector.broadcast %cst_37 : f32 to vector<8x128xf32>
    %101 = arith.addf %100, %99 : vector<8x128xf32>
    %102 = arith.divf %100, %101 : vector<8x128xf32>
    %103 = vector.extract_strided_slice %94 {offsets = [0, 128], sizes = [8, 128], strides = [1, 1]} : vector<8x256xf32> to vector<8x128xf32>
    %104 = arith.mulf %103, %73 : vector<8x128xf32>
    %105 = vector.extract_strided_slice %94 {offsets = [0, 0], sizes = [8, 128], strides = [1, 1]} : vector<8x256xf32> to vector<8x128xf32>
    %106 = arith.mulf %105, %96 : vector<8x128xf32>
    %107 = arith.addf %104, %106 : vector<8x128xf32>
    %108 = math.tanh %107 : vector<8x128xf32>
    %109 = arith.mulf %102, %108 : vector<8x128xf32>
    %110 = arith.truncf %109 : vector<8x128xf32> to vector<8x128xbf16>
    %111 = arith.index_cast %c2_i32 : i32 to index
    %c0_38 = arith.constant 0 : index
    %c0_39 = arith.constant 0 : index
    %112 = vector.load %arg6[%111, %c0_38, %c0_39] : memref<8x8x128xbf16, #tpu.memory_space<vmem>>, vector<1x8x128xbf16>
    %113 = vector.shape_cast %112 : vector<1x8x128xbf16> to vector<8x128xbf16>
    %114 = vector.shape_cast %110 : vector<8x128xbf16> to vector<1x8x128xbf16>
    tpu.vector_store %arg6[%111, %c0_38, %c0_39], %114 {strides = array<i32>} : memref<8x8x128xbf16, #tpu.memory_space<vmem>>, vector<1x8x128xbf16>,
    %c3_i32 = arith.constant 3 : i32
    %c8_i32_40 = arith.constant 8 : i32
    %115 = arith.muli %c3_i32, %c8_i32_40 : i32
    %116 = tpu.assume_multiple %115, 8 : i32
    %117 = arith.index_cast %116 : i32 to index
    %c0_41 = arith.constant 0 : index
    %118 = vector.load %arg9[%117, %c0_41] : memref<64x512xf32, #tpu.memory_space<vmem>>, vector<8x512xf32>
    %119 = arith.truncf %109 : vector<8x128xf32> to vector<8x128xbf16>
    %c0_42 = arith.constant 0 : index
    %c0_43 = arith.constant 0 : index
    %120 = vector.load %arg4[%c0_42, %c0_43] : memref<128x512xbf16, #tpu.memory_space<vmem>>, vector<128x512xbf16>
    %cst_44 = arith.constant dense<0.000000e+00> : vector<8x512xf32>
    %121 = tpu.matmul %119, %120, %cst_44 {dimension_numbers = #tpu.dot_dimension_numbers<[1], [0], [0], [1], [0, 0, 1, 1], [], []>} : vector<8x128xbf16>, vector<128x512xbf16>, vector<8x512xf32> -> vector<8x512xf32>
    %122 = arith.addf %118, %121 : vector<8x512xf32>
    %123 = vector.extract_strided_slice %122 {offsets = [0, 0], sizes = [8, 256], strides = [1, 1]} : vector<8x512xf32> to vector<8x256xf32>
    %124 = arith.negf %123 : vector<8x256xf32>
    %125 = math.exp %124 : vector<8x256xf32>
    %cst_45 = arith.constant 1.000000e+00 : f32
    %126 = vector.broadcast %cst_45 : f32 to vector<8x256xf32>
    %127 = arith.addf %126, %125 : vector<8x256xf32>
    %128 = arith.divf %126, %127 : vector<8x256xf32>
    %129 = vector.extract_strided_slice %122 {offsets = [0, 256], sizes = [8, 128], strides = [1, 1]} : vector<8x512xf32> to vector<8x128xf32>
    %130 = math.tanh %129 : vector<8x128xf32>
    %131 = vector.extract_strided_slice %122 {offsets = [0, 384], sizes = [8, 128], strides = [1, 1]} : vector<8x512xf32> to vector<8x128xf32>
    %132 = arith.negf %131 : vector<8x128xf32>
    %133 = math.exp %132 : vector<8x128xf32>
    %cst_46 = arith.constant 1.000000e+00 : f32
    %134 = vector.broadcast %cst_46 : f32 to vector<8x128xf32>
    %135 = arith.addf %134, %133 : vector<8x128xf32>
    %136 = arith.divf %134, %135 : vector<8x128xf32>
    %137 = vector.extract_strided_slice %128 {offsets = [0, 128], sizes = [8, 128], strides = [1, 1]} : vector<8x256xf32> to vector<8x128xf32>
    %138 = arith.mulf %137, %107 : vector<8x128xf32>
    %139 = vector.extract_strided_slice %128 {offsets = [0, 0], sizes = [8, 128], strides = [1, 1]} : vector<8x256xf32> to vector<8x128xf32>
    %140 = arith.mulf %139, %130 : vector<8x128xf32>
    %141 = arith.addf %138, %140 : vector<8x128xf32>
    %142 = math.tanh %141 : vector<8x128xf32>
    %143 = arith.mulf %136, %142 : vector<8x128xf32>
    %144 = arith.truncf %143 : vector<8x128xf32> to vector<8x128xbf16>
    %145 = arith.index_cast %c3_i32 : i32 to index
    %c0_47 = arith.constant 0 : index
    %c0_48 = arith.constant 0 : index
    %146 = vector.load %arg6[%145, %c0_47, %c0_48] : memref<8x8x128xbf16, #tpu.memory_space<vmem>>, vector<1x8x128xbf16>
    %147 = vector.shape_cast %146 : vector<1x8x128xbf16> to vector<8x128xbf16>
    %148 = vector.shape_cast %144 : vector<8x128xbf16> to vector<1x8x128xbf16>
    tpu.vector_store %arg6[%145, %c0_47, %c0_48], %148 {strides = array<i32>} : memref<8x8x128xbf16, #tpu.memory_space<vmem>>, vector<1x8x128xbf16>,
    %c4_i32 = arith.constant 4 : i32
    %c8_i32_49 = arith.constant 8 : i32
    %149 = arith.muli %c4_i32, %c8_i32_49 : i32
    %150 = tpu.assume_multiple %149, 8 : i32
    %151 = arith.index_cast %150 : i32 to index
    %c0_50 = arith.constant 0 : index
    %152 = vector.load %arg9[%151, %c0_50] : memref<64x512xf32, #tpu.memory_space<vmem>>, vector<8x512xf32>
    %153 = arith.truncf %143 : vector<8x128xf32> to vector<8x128xbf16>
    %c0_51 = arith.constant 0 : index
    %c0_52 = arith.constant 0 : index
    %154 = vector.load %arg4[%c0_51, %c0_52] : memref<128x512xbf16, #tpu.memory_space<vmem>>, vector<128x512xbf16>
    %cst_53 = arith.constant dense<0.000000e+00> : vector<8x512xf32>
    %155 = tpu.matmul %153, %154, %cst_53 {dimension_numbers = #tpu.dot_dimension_numbers<[1], [0], [0], [1], [0, 0, 1, 1], [], []>} : vector<8x128xbf16>, vector<128x512xbf16>, vector<8x512xf32> -> vector<8x512xf32>
    %156 = arith.addf %152, %155 : vector<8x512xf32>
    %157 = vector.extract_strided_slice %156 {offsets = [0, 0], sizes = [8, 256], strides = [1, 1]} : vector<8x512xf32> to vector<8x256xf32>
    %158 = arith.negf %157 : vector<8x256xf32>
    %159 = math.exp %158 : vector<8x256xf32>
    %cst_54 = arith.constant 1.000000e+00 : f32
    %160 = vector.broadcast %cst_54 : f32 to vector<8x256xf32>
    %161 = arith.addf %160, %159 : vector<8x256xf32>
    %162 = arith.divf %160, %161 : vector<8x256xf32>
    %163 = vector.extract_strided_slice %156 {offsets = [0, 256], sizes = [8, 128], strides = [1, 1]} : vector<8x512xf32> to vector<8x128xf32>
    %164 = math.tanh %163 : vector<8x128xf32>
    %165 = vector.extract_strided_slice %156 {offsets = [0, 384], sizes = [8, 128], strides = [1, 1]} : vector<8x512xf32> to vector<8x128xf32>
    %166 = arith.negf %165 : vector<8x128xf32>
    %167 = math.exp %166 : vector<8x128xf32>
    %cst_55 = arith.constant 1.000000e+00 : f32
    %168 = vector.broadcast %cst_55 : f32 to vector<8x128xf32>
    %169 = arith.addf %168, %167 : vector<8x128xf32>
    %170 = arith.divf %168, %169 : vector<8x128xf32>
    %171 = vector.extract_strided_slice %162 {offsets = [0, 128], sizes = [8, 128], strides = [1, 1]} : vector<8x256xf32> to vector<8x128xf32>
    %172 = arith.mulf %171, %141 : vector<8x128xf32>
    %173 = vector.extract_strided_slice %162 {offsets = [0, 0], sizes = [8, 128], strides = [1, 1]} : vector<8x256xf32> to vector<8x128xf32>
    %174 = arith.mulf %173, %164 : vector<8x128xf32>
    %175 = arith.addf %172, %174 : vector<8x128xf32>
    %176 = math.tanh %175 : vector<8x128xf32>
    %177 = arith.mulf %170, %176 : vector<8x128xf32>
    %178 = arith.truncf %177 : vector<8x128xf32> to vector<8x128xbf16>
    %179 = arith.index_cast %c4_i32 : i32 to index
    %c0_56 = arith.constant 0 : index
    %c0_57 = arith.constant 0 : index
    %180 = vector.load %arg6[%179, %c0_56, %c0_57] : memref<8x8x128xbf16, #tpu.memory_space<vmem>>, vector<1x8x128xbf16>
    %181 = vector.shape_cast %180 : vector<1x8x128xbf16> to vector<8x128xbf16>
    %182 = vector.shape_cast %178 : vector<8x128xbf16> to vector<1x8x128xbf16>
    tpu.vector_store %arg6[%179, %c0_56, %c0_57], %182 {strides = array<i32>} : memref<8x8x128xbf16, #tpu.memory_space<vmem>>, vector<1x8x128xbf16>,
    %c5_i32 = arith.constant 5 : i32
    %c8_i32_58 = arith.constant 8 : i32
    %183 = arith.muli %c5_i32, %c8_i32_58 : i32
    %184 = tpu.assume_multiple %183, 8 : i32
    %185 = arith.index_cast %184 : i32 to index
    %c0_59 = arith.constant 0 : index
    %186 = vector.load %arg9[%185, %c0_59] : memref<64x512xf32, #tpu.memory_space<vmem>>, vector<8x512xf32>
    %187 = arith.truncf %177 : vector<8x128xf32> to vector<8x128xbf16>
    %c0_60 = arith.constant 0 : index
    %c0_61 = arith.constant 0 : index
    %188 = vector.load %arg4[%c0_60, %c0_61] : memref<128x512xbf16, #tpu.memory_space<vmem>>, vector<128x512xbf16>
    %cst_62 = arith.constant dense<0.000000e+00> : vector<8x512xf32>
    %189 = tpu.matmul %187, %188, %cst_62 {dimension_numbers = #tpu.dot_dimension_numbers<[1], [0], [0], [1], [0, 0, 1, 1], [], []>} : vector<8x128xbf16>, vector<128x512xbf16>, vector<8x512xf32> -> vector<8x512xf32>
    %190 = arith.addf %186, %189 : vector<8x512xf32>
    %191 = vector.extract_strided_slice %190 {offsets = [0, 0], sizes = [8, 256], strides = [1, 1]} : vector<8x512xf32> to vector<8x256xf32>
    %192 = arith.negf %191 : vector<8x256xf32>
    %193 = math.exp %192 : vector<8x256xf32>
    %cst_63 = arith.constant 1.000000e+00 : f32
    %194 = vector.broadcast %cst_63 : f32 to vector<8x256xf32>
    %195 = arith.addf %194, %193 : vector<8x256xf32>
    %196 = arith.divf %194, %195 : vector<8x256xf32>
    %197 = vector.extract_strided_slice %190 {offsets = [0, 256], sizes = [8, 128], strides = [1, 1]} : vector<8x512xf32> to vector<8x128xf32>
    %198 = math.tanh %197 : vector<8x128xf32>
    %199 = vector.extract_strided_slice %190 {offsets = [0, 384], sizes = [8, 128], strides = [1, 1]} : vector<8x512xf32> to vector<8x128xf32>
    %200 = arith.negf %199 : vector<8x128xf32>
    %201 = math.exp %200 : vector<8x128xf32>
    %cst_64 = arith.constant 1.000000e+00 : f32
    %202 = vector.broadcast %cst_64 : f32 to vector<8x128xf32>
    %203 = arith.addf %202, %201 : vector<8x128xf32>
    %204 = arith.divf %202, %203 : vector<8x128xf32>
    %205 = vector.extract_strided_slice %196 {offsets = [0, 128], sizes = [8, 128], strides = [1, 1]} : vector<8x256xf32> to vector<8x128xf32>
    %206 = arith.mulf %205, %175 : vector<8x128xf32>
    %207 = vector.extract_strided_slice %196 {offsets = [0, 0], sizes = [8, 128], strides = [1, 1]} : vector<8x256xf32> to vector<8x128xf32>
    %208 = arith.mulf %207, %198 : vector<8x128xf32>
    %209 = arith.addf %206, %208 : vector<8x128xf32>
    %210 = math.tanh %209 : vector<8x128xf32>
    %211 = arith.mulf %204, %210 : vector<8x128xf32>
    %212 = arith.truncf %211 : vector<8x128xf32> to vector<8x128xbf16>
    %213 = arith.index_cast %c5_i32 : i32 to index
    %c0_65 = arith.constant 0 : index
    %c0_66 = arith.constant 0 : index
    %214 = vector.load %arg6[%213, %c0_65, %c0_66] : memref<8x8x128xbf16, #tpu.memory_space<vmem>>, vector<1x8x128xbf16>
    %215 = vector.shape_cast %214 : vector<1x8x128xbf16> to vector<8x128xbf16>
    %216 = vector.shape_cast %212 : vector<8x128xbf16> to vector<1x8x128xbf16>
    tpu.vector_store %arg6[%213, %c0_65, %c0_66], %216 {strides = array<i32>} : memref<8x8x128xbf16, #tpu.memory_space<vmem>>, vector<1x8x128xbf16>,
    %c6_i32 = arith.constant 6 : i32
    %c8_i32_67 = arith.constant 8 : i32
    %217 = arith.muli %c6_i32, %c8_i32_67 : i32
    %218 = tpu.assume_multiple %217, 8 : i32
    %219 = arith.index_cast %218 : i32 to index
    %c0_68 = arith.constant 0 : index
    %220 = vector.load %arg9[%219, %c0_68] : memref<64x512xf32, #tpu.memory_space<vmem>>, vector<8x512xf32>
    %221 = arith.truncf %211 : vector<8x128xf32> to vector<8x128xbf16>
    %c0_69 = arith.constant 0 : index
    %c0_70 = arith.constant 0 : index
    %222 = vector.load %arg4[%c0_69, %c0_70] : memref<128x512xbf16, #tpu.memory_space<vmem>>, vector<128x512xbf16>
    %cst_71 = arith.constant dense<0.000000e+00> : vector<8x512xf32>
    %223 = tpu.matmul %221, %222, %cst_71 {dimension_numbers = #tpu.dot_dimension_numbers<[1], [0], [0], [1], [0, 0, 1, 1], [], []>} : vector<8x128xbf16>, vector<128x512xbf16>, vector<8x512xf32> -> vector<8x512xf32>
    %224 = arith.addf %220, %223 : vector<8x512xf32>
    %225 = vector.extract_strided_slice %224 {offsets = [0, 0], sizes = [8, 256], strides = [1, 1]} : vector<8x512xf32> to vector<8x256xf32>
    %226 = arith.negf %225 : vector<8x256xf32>
    %227 = math.exp %226 : vector<8x256xf32>
    %cst_72 = arith.constant 1.000000e+00 : f32
    %228 = vector.broadcast %cst_72 : f32 to vector<8x256xf32>
    %229 = arith.addf %228, %227 : vector<8x256xf32>
    %230 = arith.divf %228, %229 : vector<8x256xf32>
    %231 = vector.extract_strided_slice %224 {offsets = [0, 256], sizes = [8, 128], strides = [1, 1]} : vector<8x512xf32> to vector<8x128xf32>
    %232 = math.tanh %231 : vector<8x128xf32>
    %233 = vector.extract_strided_slice %224 {offsets = [0, 384], sizes = [8, 128], strides = [1, 1]} : vector<8x512xf32> to vector<8x128xf32>
    %234 = arith.negf %233 : vector<8x128xf32>
    %235 = math.exp %234 : vector<8x128xf32>
    %cst_73 = arith.constant 1.000000e+00 : f32
    %236 = vector.broadcast %cst_73 : f32 to vector<8x128xf32>
    %237 = arith.addf %236, %235 : vector<8x128xf32>
    %238 = arith.divf %236, %237 : vector<8x128xf32>
    %239 = vector.extract_strided_slice %230 {offsets = [0, 128], sizes = [8, 128], strides = [1, 1]} : vector<8x256xf32> to vector<8x128xf32>
    %240 = arith.mulf %239, %209 : vector<8x128xf32>
    %241 = vector.extract_strided_slice %230 {offsets = [0, 0], sizes = [8, 128], strides = [1, 1]} : vector<8x256xf32> to vector<8x128xf32>
    %242 = arith.mulf %241, %232 : vector<8x128xf32>
    %243 = arith.addf %240, %242 : vector<8x128xf32>
    %244 = math.tanh %243 : vector<8x128xf32>
    %245 = arith.mulf %238, %244 : vector<8x128xf32>
    %246 = arith.truncf %245 : vector<8x128xf32> to vector<8x128xbf16>
    %247 = arith.index_cast %c6_i32 : i32 to index
    %c0_74 = arith.constant 0 : index
    %c0_75 = arith.constant 0 : index
    %248 = vector.load %arg6[%247, %c0_74, %c0_75] : memref<8x8x128xbf16, #tpu.memory_space<vmem>>, vector<1x8x128xbf16>
    %249 = vector.shape_cast %248 : vector<1x8x128xbf16> to vector<8x128xbf16>
    %250 = vector.shape_cast %246 : vector<8x128xbf16> to vector<1x8x128xbf16>
    tpu.vector_store %arg6[%247, %c0_74, %c0_75], %250 {strides = array<i32>} : memref<8x8x128xbf16, #tpu.memory_space<vmem>>, vector<1x8x128xbf16>,
    %c7_i32 = arith.constant 7 : i32
    %c8_i32_76 = arith.constant 8 : i32
    %251 = arith.muli %c7_i32, %c8_i32_76 : i32
    %252 = tpu.assume_multiple %251, 8 : i32
    %253 = arith.index_cast %252 : i32 to index
    %c0_77 = arith.constant 0 : index
    %254 = vector.load %arg9[%253, %c0_77] : memref<64x512xf32, #tpu.memory_space<vmem>>, vector<8x512xf32>
    %255 = arith.truncf %245 : vector<8x128xf32> to vector<8x128xbf16>
    %c0_78 = arith.constant 0 : index
    %c0_79 = arith.constant 0 : index
    %256 = vector.load %arg4[%c0_78, %c0_79] : memref<128x512xbf16, #tpu.memory_space<vmem>>, vector<128x512xbf16>
    %cst_80 = arith.constant dense<0.000000e+00> : vector<8x512xf32>
    %257 = tpu.matmul %255, %256, %cst_80 {dimension_numbers = #tpu.dot_dimension_numbers<[1], [0], [0], [1], [0, 0, 1, 1], [], []>} : vector<8x128xbf16>, vector<128x512xbf16>, vector<8x512xf32> -> vector<8x512xf32>
    %258 = arith.addf %254, %257 : vector<8x512xf32>
    %259 = vector.extract_strided_slice %258 {offsets = [0, 0], sizes = [8, 256], strides = [1, 1]} : vector<8x512xf32> to vector<8x256xf32>
    %260 = arith.negf %259 : vector<8x256xf32>
    %261 = math.exp %260 : vector<8x256xf32>
    %cst_81 = arith.constant 1.000000e+00 : f32
    %262 = vector.broadcast %cst_81 : f32 to vector<8x256xf32>
    %263 = arith.addf %262, %261 : vector<8x256xf32>
    %264 = arith.divf %262, %263 : vector<8x256xf32>
    %265 = vector.extract_strided_slice %258 {offsets = [0, 256], sizes = [8, 128], strides = [1, 1]} : vector<8x512xf32> to vector<8x128xf32>
    %266 = math.tanh %265 : vector<8x128xf32>
    %267 = vector.extract_strided_slice %258 {offsets = [0, 384], sizes = [8, 128], strides = [1, 1]} : vector<8x512xf32> to vector<8x128xf32>
    %268 = arith.negf %267 : vector<8x128xf32>
    %269 = math.exp %268 : vector<8x128xf32>
    %cst_82 = arith.constant 1.000000e+00 : f32
    %270 = vector.broadcast %cst_82 : f32 to vector<8x128xf32>
    %271 = arith.addf %270, %269 : vector<8x128xf32>
    %272 = arith.divf %270, %271 : vector<8x128xf32>
    %273 = vector.extract_strided_slice %264 {offsets = [0, 128], sizes = [8, 128], strides = [1, 1]} : vector<8x256xf32> to vector<8x128xf32>
    %274 = arith.mulf %273, %243 : vector<8x128xf32>
    %275 = vector.extract_strided_slice %264 {offsets = [0, 0], sizes = [8, 128], strides = [1, 1]} : vector<8x256xf32> to vector<8x128xf32>
    %276 = arith.mulf %275, %266 : vector<8x128xf32>
    %277 = arith.addf %274, %276 : vector<8x128xf32>
    %278 = math.tanh %277 : vector<8x128xf32>
    %279 = arith.mulf %272, %278 : vector<8x128xf32>
    %280 = arith.truncf %279 : vector<8x128xf32> to vector<8x128xbf16>
    %281 = arith.index_cast %c7_i32 : i32 to index
    %c0_83 = arith.constant 0 : index
    %c0_84 = arith.constant 0 : index
    %282 = vector.load %arg6[%281, %c0_83, %c0_84] : memref<8x8x128xbf16, #tpu.memory_space<vmem>>, vector<1x8x128xbf16>
    %283 = vector.shape_cast %282 : vector<1x8x128xbf16> to vector<8x128xbf16>
    %284 = vector.shape_cast %280 : vector<8x128xbf16> to vector<1x8x128xbf16>
    tpu.vector_store %arg6[%281, %c0_83, %c0_84], %284 {strides = array<i32>} : memref<8x8x128xbf16, #tpu.memory_space<vmem>>, vector<1x8x128xbf16>,
    %c8_i32_85 = arith.constant 8 : i32
    %c0_86 = arith.constant 0 : index
    %c0_87 = arith.constant 0 : index
    %285 = vector.load %arg7[%c0_86, %c0_87] : memref<8x128xf32, #tpu.memory_space<vmem>>, vector<8x128xf32>
    tpu.vector_store %arg7[%c0_86, %c0_87], %279 {strides = array<i32>} : memref<8x128xf32, #tpu.memory_space<vmem>>, vector<8x128xf32>,
    %c0_88 = arith.constant 0 : index
    %c0_89 = arith.constant 0 : index
    %286 = vector.load %arg8[%c0_88, %c0_89] : memref<8x128xf32, #tpu.memory_space<vmem>>, vector<8x128xf32>
    tpu.vector_store %arg8[%c0_88, %c0_89], %277 {strides = array<i32>} : memref<8x128xf32, #tpu.memory_space<vmem>>, vector<8x128xf32>,
    return
  }
  func.func @transform_0(%arg0: i32, %arg1: i32) -> (i32, i32, i32) {
    %c0_i32 = arith.constant 0 : i32
    %c0_i32_0 = arith.constant 0 : i32
    return %arg1, %arg0, %c0_i32 : i32, i32, i32
  }
  func.func @transform_1(%arg0: i32, %arg1: i32) -> (i32, i32) {
    %c0_i32 = arith.constant 0 : i32
    %c0_i32_0 = arith.constant 0 : i32
    %c0_i32_1 = arith.constant 0 : i32
    return %c0_i32, %c0_i32_0 : i32, i32
  }
  func.func @transform_2(%arg0: i32, %arg1: i32) -> (i32, i32) {
    %c0_i32 = arith.constant 0 : i32
    %c0_i32_0 = arith.constant 0 : i32
    %c0_i32_1 = arith.constant 0 : i32
    return %c0_i32, %c0_i32_0 : i32, i32
  }
  func.func @transform_3(%arg0: i32, %arg1: i32) -> (i32, i32) {
    %c0_i32 = arith.constant 0 : i32
    %c0_i32_0 = arith.constant 0 : i32
    %c0_i32_1 = arith.constant 0 : i32
    return %c0_i32, %c0_i32_0 : i32, i32
  }
  func.func @transform_4(%arg0: i32, %arg1: i32) -> (i32, i32, i32) {
    %c0_i32 = arith.constant 0 : i32
    %c0_i32_0 = arith.constant 0 : i32
    return %arg1, %arg0, %c0_i32 : i32, i32, i32
  }
  func.func @transform_5(%arg0: i32, %arg1: i32) -> (i32, i32) {
    %c0_i32 = arith.constant 0 : i32
    %c0_i32_0 = arith.constant 0 : i32
    return %arg0, %c0_i32 : i32, i32
  }
  func.func @transform_6(%arg0: i32, %arg1: i32) -> (i32, i32) {
    %c0_i32 = arith.constant 0 : i32
    %c0_i32_0 = arith.constant 0 : i32
    return %arg0, %c0_i32 : i32, i32
  }
}

module attributes {stable_mosaic.version = 11 : i64} {
  func.func @_lstm_layer_kernel(%arg0: i32, %arg1: i32, %arg2: memref<8x8x128xbf16, #tpu.memory_space<vmem>>, %arg3: memref<128x512xbf16, #tpu.memory_space<vmem>>, %arg4: memref<128x512xbf16, #tpu.memory_space<vmem>>, %arg5: memref<1x512xf32, #tpu.memory_space<vmem>>, %arg6: memref<8x8x128xbf16, #tpu.memory_space<vmem>>, %arg7: memref<8x128xf32, #tpu.memory_space<vmem>>, %arg8: memref<8x128xf32, #tpu.memory_space<vmem>>, %arg9: memref<64x512xf32, #tpu.memory_space<vmem>>) attributes {dimension_semantics = [#tpu.dimension_semantics<parallel>, #tpu.dimension_semantics<arbitrary>], iteration_bounds = array<i64: 1, 1>, scalar_prefetch = 0 : i64, scratch_operands = 1 : i64, tpu.core_type = #tpu.core_type<tc>, window_params = [{transform_indices = @transform_0, window_bounds = array<i64: 8, 8, 128>}, {pipeline_mode = #tpu.pipeline_mode<synchronous>, transform_indices = @transform_1, window_bounds = array<i64: 128, 512>}, {pipeline_mode = #tpu.pipeline_mode<synchronous>, transform_indices = @transform_2, window_bounds = array<i64: 128, 512>}, {pipeline_mode = #tpu.pipeline_mode<synchronous>, transform_indices = @transform_3, window_bounds = array<i64: 1, 512>}, {transform_indices = @transform_4, window_bounds = array<i64: 8, 8, 128>}, {transform_indices = @transform_5, window_bounds = array<i64: 8, 128>}, {transform_indices = @transform_6, window_bounds = array<i64: 8, 128>}]} {
    %c0_i32 = arith.constant 0 : i32
    %0 = arith.cmpi eq, %arg1, %c0_i32 : i32
    %1 = arith.extui %0 : i1 to i32
    %c0_i32_0 = arith.constant 0 : i32
    %2 = arith.cmpi ne, %1, %c0_i32_0 : i32
    scf.if %2 {
      %cst_90 = arith.constant 0.000000e+00 : f32
      %287 = vector.broadcast %cst_90 : f32 to vector<8x128xf32>
      %c0_91 = arith.constant 0 : index
      %c0_92 = arith.constant 0 : index
      %288 = vector.load %arg7[%c0_91, %c0_92] : memref<8x128xf32, #tpu.memory_space<vmem>>, vector<8x128xf32>
      tpu.vector_store %arg7[%c0_91, %c0_92], %287 {strides = array<i32>} : memref<8x128xf32, #tpu.memory_space<vmem>>, vector<8x128xf32>,
      %cst_93 = arith.constant 0.000000e+00 : f32
      %289 = vector.broadcast %cst_93 : f32 to vector<8x128xf32>
      %c0_94 = arith.constant 0 : index
      %c0_95 = arith.constant 0 : index
      %290 = vector.load %arg8[%c0_94, %c0_95] : memref<8x128xf32, #tpu.memory_space<vmem>>, vector<8x128xf32>
      tpu.vector_store %arg8[%c0_94, %c0_95], %289 {strides = array<i32>} : memref<8x128xf32, #tpu.memory_space<vmem>>, vector<8x128xf32>,
    } else {
    }
    %c0 = arith.constant 0 : index
    %c0_1 = arith.constant 0 : index
    %c0_2 = arith.constant 0 : index
    %3 = vector.load %arg2[%c0, %c0_1, %c0_2] : memref<8x8x128xbf16, #tpu.memory_space<vmem>>, vector<8x8x128xbf16>
    %4 = vector.shape_cast %3 : vector<8x8x128xbf16> to vector<64x128xbf16>
    %c0_3 = arith.constant 0 : index
    %c0_4 = arith.constant 0 : index
    %5 = vector.load %arg3[%c0_3, %c0_4] : memref<128x512xbf16, #tpu.memory_space<vmem>>, vector<128x512xbf16>
    %cst = arith.constant dense<0.000000e+00> : vector<64x512xf32>
    %6 = tpu.matmul %4, %5, %cst {dimension_numbers = #tpu.dot_dimension_numbers<[1], [0], [0], [1], [0, 0, 1, 1], [], []>} : vector<64x128xbf16>, vector<128x512xbf16>, vector<64x512xf32> -> vector<64x512xf32>
    %c0_5 = arith.constant 0 : index
    %c0_6 = arith.constant 0 : index
    %7 = vector.load %arg5[%c0_5, %c0_6] : memref<1x512xf32, #tpu.memory_space<vmem>>, vector<1x512xf32>
    %8 = vector.broadcast %7 : vector<1x512xf32> to vector<64x512xf32>
    %9 = arith.addf %6, %8 : vector<64x512xf32>
    %c0_7 = arith.constant 0 : index
    %c0_8 = arith.constant 0 : index
    %10 = vector.load %arg9[%c0_7, %c0_8] : memref<64x512xf32, #tpu.memory_space<vmem>>, vector<64x512xf32>
    tpu.vector_store %arg9[%c0_7, %c0_8], %9 {strides = array<i32>} : memref<64x512xf32, #tpu.memory_space<vmem>>, vector<64x512xf32>,
    %c0_9 = arith.constant 0 : index
    %c0_10 = arith.constant 0 : index
    %11 = vector.load %arg7[%c0_9, %c0_10] : memref<8x128xf32, #tpu.memory_space<vmem>>, vector<8x128xf32>
    %c0_11 = arith.constant 0 : index
    %c0_12 = arith.constant 0 : index
    %12 = vector.load %arg8[%c0_11, %c0_12] : memref<8x128xf32, #tpu.memory_space<vmem>>, vector<8x128xf32>
    %c0_i32_13 = arith.constant 0 : i32
    %c8_i32 = arith.constant 8 : i32
    %13 = arith.muli %c0_i32_13, %c8_i32 : i32
    %14 = tpu.assume_multiple %13, 8 : i32
    %15 = arith.index_cast %14 : i32 to index
    %c0_14 = arith.constant 0 : index
    %16 = vector.load %arg9[%15, %c0_14] : memref<64x512xf32, #tpu.memory_space<vmem>>, vector<8x512xf32>
    %17 = arith.truncf %11 : vector<8x128xf32> to vector<8x128xbf16>
    %c0_15 = arith.constant 0 : index
    %c0_16 = arith.constant 0 : index
    %18 = vector.load %arg4[%c0_15, %c0_16] : memref<128x512xbf16, #tpu.memory_space<vmem>>, vector<128x512xbf16>
    %cst_17 = arith.constant dense<0.000000e+00> : vector<8x512xf32>
    %19 = tpu.matmul %17, %18, %cst_17 {dimension_numbers = #tpu.dot_dimension_numbers<[1], [0], [0], [1], [0, 0, 1, 1], [], []>} : vector<8x128xbf16>, vector<128x512xbf16>, vector<8x512xf32> -> vector<8x512xf32>
    %20 = arith.addf %16, %19 : vector<8x512xf32>
    %21 = vector.extract_strided_slice %20 {offsets = [0, 0], sizes = [8, 256], strides = [1, 1]} : vector<8x512xf32> to vector<8x256xf32>
    %22 = arith.negf %21 : vector<8x256xf32>
    %23 = math.exp %22 : vector<8x256xf32>
    %cst_18 = arith.constant 1.000000e+00 : f32
    %24 = vector.broadcast %cst_18 : f32 to vector<8x256xf32>
    %25 = arith.addf %24, %23 : vector<8x256xf32>
    %26 = arith.divf %24, %25 : vector<8x256xf32>
    %27 = vector.extract_strided_slice %20 {offsets = [0, 256], sizes = [8, 128], strides = [1, 1]} : vector<8x512xf32> to vector<8x128xf32>
    %28 = math.tanh %27 : vector<8x128xf32>
    %29 = vector.extract_strided_slice %20 {offsets = [0, 384], sizes = [8, 128], strides = [1, 1]} : vector<8x512xf32> to vector<8x128xf32>
    %30 = arith.negf %29 : vector<8x128xf32>
    %31 = math.exp %30 : vector<8x128xf32>
    %cst_19 = arith.constant 1.000000e+00 : f32
    %32 = vector.broadcast %cst_19 : f32 to vector<8x128xf32>
    %33 = arith.addf %32, %31 : vector<8x128xf32>
    %34 = arith.divf %32, %33 : vector<8x128xf32>
    %35 = vector.extract_strided_slice %26 {offsets = [0, 128], sizes = [8, 128], strides = [1, 1]} : vector<8x256xf32> to vector<8x128xf32>
    %36 = arith.mulf %35, %12 : vector<8x128xf32>
    %37 = vector.extract_strided_slice %26 {offsets = [0, 0], sizes = [8, 128], strides = [1, 1]} : vector<8x256xf32> to vector<8x128xf32>
    %38 = arith.mulf %37, %28 : vector<8x128xf32>
    %39 = arith.addf %36, %38 : vector<8x128xf32>
    %40 = math.tanh %39 : vector<8x128xf32>
    %41 = arith.mulf %34, %40 : vector<8x128xf32>
    %42 = arith.truncf %41 : vector<8x128xf32> to vector<8x128xbf16>
    %43 = arith.index_cast %c0_i32_13 : i32 to index
    %c0_20 = arith.constant 0 : index
    %c0_21 = arith.constant 0 : index
    %44 = vector.load %arg6[%43, %c0_20, %c0_21] : memref<8x8x128xbf16, #tpu.memory_space<vmem>>, vector<1x8x128xbf16>
    %45 = vector.shape_cast %44 : vector<1x8x128xbf16> to vector<8x128xbf16>
    %46 = vector.shape_cast %42 : vector<8x128xbf16> to vector<1x8x128xbf16>
    tpu.vector_store %arg6[%43, %c0_20, %c0_21], %46 {strides = array<i32>} : memref<8x8x128xbf16, #tpu.memory_space<vmem>>, vector<1x8x128xbf16>,
    %c1_i32 = arith.constant 1 : i32
    %c8_i32_22 = arith.constant 8 : i32
    %47 = arith.muli %c1_i32, %c8_i32_22 : i32
    %48 = tpu.assume_multiple %47, 8 : i32
    %49 = arith.index_cast %48 : i32 to index
    %c0_23 = arith.constant 0 : index
    %50 = vector.load %arg9[%49, %c0_23] : memref<64x512xf32, #tpu.memory_space<vmem>>, vector<8x512xf32>
    %51 = arith.truncf %41 : vector<8x128xf32> to vector<8x128xbf16>
    %c0_24 = arith.constant 0 : index
    %c0_25 = arith.constant 0 : index
    %52 = vector.load %arg4[%c0_24, %c0_25] : memref<128x512xbf16, #tpu.memory_space<vmem>>, vector<128x512xbf16>
    %cst_26 = arith.constant dense<0.000000e+00> : vector<8x512xf32>
    %53 = tpu.matmul %51, %52, %cst_26 {dimension_numbers = #tpu.dot_dimension_numbers<[1], [0], [0], [1], [0, 0, 1, 1], [], []>} : vector<8x128xbf16>, vector<128x512xbf16>, vector<8x512xf32> -> vector<8x512xf32>
    %54 = arith.addf %50, %53 : vector<8x512xf32>
    %55 = vector.extract_strided_slice %54 {offsets = [0, 0], sizes = [8, 256], strides = [1, 1]} : vector<8x512xf32> to vector<8x256xf32>
    %56 = arith.negf %55 : vector<8x256xf32>
    %57 = math.exp %56 : vector<8x256xf32>
    %cst_27 = arith.constant 1.000000e+00 : f32
    %58 = vector.broadcast %cst_27 : f32 to vector<8x256xf32>
    %59 = arith.addf %58, %57 : vector<8x256xf32>
    %60 = arith.divf %58, %59 : vector<8x256xf32>
    %61 = vector.extract_strided_slice %54 {offsets = [0, 256], sizes = [8, 128], strides = [1, 1]} : vector<8x512xf32> to vector<8x128xf32>
    %62 = math.tanh %61 : vector<8x128xf32>
    %63 = vector.extract_strided_slice %54 {offsets = [0, 384], sizes = [8, 128], strides = [1, 1]} : vector<8x512xf32> to vector<8x128xf32>
    %64 = arith.negf %63 : vector<8x128xf32>
    %65 = math.exp %64 : vector<8x128xf32>
    %cst_28 = arith.constant 1.000000e+00 : f32
    %66 = vector.broadcast %cst_28 : f32 to vector<8x128xf32>
    %67 = arith.addf %66, %65 : vector<8x128xf32>
    %68 = arith.divf %66, %67 : vector<8x128xf32>
    %69 = vector.extract_strided_slice %60 {offsets = [0, 128], sizes = [8, 128], strides = [1, 1]} : vector<8x256xf32> to vector<8x128xf32>
    %70 = arith.mulf %69, %39 : vector<8x128xf32>
    %71 = vector.extract_strided_slice %60 {offsets = [0, 0], sizes = [8, 128], strides = [1, 1]} : vector<8x256xf32> to vector<8x128xf32>
    %72 = arith.mulf %71, %62 : vector<8x128xf32>
    %73 = arith.addf %70, %72 : vector<8x128xf32>
    %74 = math.tanh %73 : vector<8x128xf32>
    %75 = arith.mulf %68, %74 : vector<8x128xf32>
    %76 = arith.truncf %75 : vector<8x128xf32> to vector<8x128xbf16>
    %77 = arith.index_cast %c1_i32 : i32 to index
    %c0_29 = arith.constant 0 : index
    %c0_30 = arith.constant 0 : index
    %78 = vector.load %arg6[%77, %c0_29, %c0_30] : memref<8x8x128xbf16, #tpu.memory_space<vmem>>, vector<1x8x128xbf16>
    %79 = vector.shape_cast %78 : vector<1x8x128xbf16> to vector<8x128xbf16>
    %80 = vector.shape_cast %76 : vector<8x128xbf16> to vector<1x8x128xbf16>
    tpu.vector_store %arg6[%77, %c0_29, %c0_30], %80 {strides = array<i32>} : memref<8x8x128xbf16, #tpu.memory_space<vmem>>, vector<1x8x128xbf16>,
    %c2_i32 = arith.constant 2 : i32
    %c8_i32_31 = arith.constant 8 : i32
    %81 = arith.muli %c2_i32, %c8_i32_31 : i32
    %82 = tpu.assume_multiple %81, 8 : i32
    %83 = arith.index_cast %82 : i32 to index
    %c0_32 = arith.constant 0 : index
    %84 = vector.load %arg9[%83, %c0_32] : memref<64x512xf32, #tpu.memory_space<vmem>>, vector<8x512xf32>
    %85 = arith.truncf %75 : vector<8x128xf32> to vector<8x128xbf16>
    %c0_33 = arith.constant 0 : index
    %c0_34 = arith.constant 0 : index
    %86 = vector.load %arg4[%c0_33, %c0_34] : memref<128x512xbf16, #tpu.memory_space<vmem>>, vector<128x512xbf16>
    %cst_35 = arith.constant dense<0.000000e+00> : vector<8x512xf32>
    %87 = tpu.matmul %85, %86, %cst_35 {dimension_numbers = #tpu.dot_dimension_numbers<[1], [0], [0], [1], [0, 0, 1, 1], [], []>} : vector<8x128xbf16>, vector<128x512xbf16>, vector<8x512xf32> -> vector<8x512xf32>
    %88 = arith.addf %84, %87 : vector<8x512xf32>
    %89 = vector.extract_strided_slice %88 {offsets = [0, 0], sizes = [8, 256], strides = [1, 1]} : vector<8x512xf32> to vector<8x256xf32>
    %90 = arith.negf %89 : vector<8x256xf32>
    %91 = math.exp %90 : vector<8x256xf32>
    %cst_36 = arith.constant 1.000000e+00 : f32
    %92 = vector.broadcast %cst_36 : f32 to vector<8x256xf32>
    %93 = arith.addf %92, %91 : vector<8x256xf32>
    %94 = arith.divf %92, %93 : vector<8x256xf32>
    %95 = vector.extract_strided_slice %88 {offsets = [0, 256], sizes = [8, 128], strides = [1, 1]} : vector<8x512xf32> to vector<8x128xf32>
    %96 = math.tanh %95 : vector<8x128xf32>
    %97 = vector.extract_strided_slice %88 {offsets = [0, 384], sizes = [8, 128], strides = [1, 1]} : vector<8x512xf32> to vector<8x128xf32>
    %98 = arith.negf %97 : vector<8x128xf32>
    %99 = math.exp %98 : vector<8x128xf32>
    %cst_37 = arith.constant 1.000000e+00 : f32
    %100 = vector.broadcast %cst_37 : f32 to vector<8x128xf32>
    %101 = arith.addf %100, %99 : vector<8x128xf32>
    %102 = arith.divf %100, %101 : vector<8x128xf32>
    %103 = vector.extract_strided_slice %94 {offsets = [0, 128], sizes = [8, 128], strides = [1, 1]} : vector<8x256xf32> to vector<8x128xf32>
    %104 = arith.mulf %103, %73 : vector<8x128xf32>
    %105 = vector.extract_strided_slice %94 {offsets = [0, 0], sizes = [8, 128], strides = [1, 1]} : vector<8x256xf32> to vector<8x128xf32>
    %106 = arith.mulf %105, %96 : vector<8x128xf32>
    %107 = arith.addf %104, %106 : vector<8x128xf32>
    %108 = math.tanh %107 : vector<8x128xf32>
    %109 = arith.mulf %102, %108 : vector<8x128xf32>
    %110 = arith.truncf %109 : vector<8x128xf32> to vector<8x128xbf16>
    %111 = arith.index_cast %c2_i32 : i32 to index
    %c0_38 = arith.constant 0 : index
    %c0_39 = arith.constant 0 : index
    %112 = vector.load %arg6[%111, %c0_38, %c0_39] : memref<8x8x128xbf16, #tpu.memory_space<vmem>>, vector<1x8x128xbf16>
    %113 = vector.shape_cast %112 : vector<1x8x128xbf16> to vector<8x128xbf16>
    %114 = vector.shape_cast %110 : vector<8x128xbf16> to vector<1x8x128xbf16>
    tpu.vector_store %arg6[%111, %c0_38, %c0_39], %114 {strides = array<i32>} : memref<8x8x128xbf16, #tpu.memory_space<vmem>>, vector<1x8x128xbf16>,
    %c3_i32 = arith.constant 3 : i32
    %c8_i32_40 = arith.constant 8 : i32
    %115 = arith.muli %c3_i32, %c8_i32_40 : i32
    %116 = tpu.assume_multiple %115, 8 : i32
    %117 = arith.index_cast %116 : i32 to index
    %c0_41 = arith.constant 0 : index
    %118 = vector.load %arg9[%117, %c0_41] : memref<64x512xf32, #tpu.memory_space<vmem>>, vector<8x512xf32>
    %119 = arith.truncf %109 : vector<8x128xf32> to vector<8x128xbf16>
    %c0_42 = arith.constant 0 : index
    %c0_43 = arith.constant 0 : index
    %120 = vector.load %arg4[%c0_42, %c0_43] : memref<128x512xbf16, #tpu.memory_space<vmem>>, vector<128x512xbf16>
    %cst_44 = arith.constant dense<0.000000e+00> : vector<8x512xf32>
    %121 = tpu.matmul %119, %120, %cst_44 {dimension_numbers = #tpu.dot_dimension_numbers<[1], [0], [0], [1], [0, 0, 1, 1], [], []>} : vector<8x128xbf16>, vector<128x512xbf16>, vector<8x512xf32> -> vector<8x512xf32>
    %122 = arith.addf %118, %121 : vector<8x512xf32>
    %123 = vector.extract_strided_slice %122 {offsets = [0, 0], sizes = [8, 256], strides = [1, 1]} : vector<8x512xf32> to vector<8x256xf32>
    %124 = arith.negf %123 : vector<8x256xf32>
    %125 = math.exp %124 : vector<8x256xf32>
    %cst_45 = arith.constant 1.000000e+00 : f32
    %126 = vector.broadcast %cst_45 : f32 to vector<8x256xf32>
    %127 = arith.addf %126, %125 : vector<8x256xf32>
    %128 = arith.divf %126, %127 : vector<8x256xf32>
    %129 = vector.extract_strided_slice %122 {offsets = [0, 256], sizes = [8, 128], strides = [1, 1]} : vector<8x512xf32> to vector<8x128xf32>
    %130 = math.tanh %129 : vector<8x128xf32>
    %131 = vector.extract_strided_slice %122 {offsets = [0, 384], sizes = [8, 128], strides = [1, 1]} : vector<8x512xf32> to vector<8x128xf32>
    %132 = arith.negf %131 : vector<8x128xf32>
    %133 = math.exp %132 : vector<8x128xf32>
    %cst_46 = arith.constant 1.000000e+00 : f32
    %134 = vector.broadcast %cst_46 : f32 to vector<8x128xf32>
    %135 = arith.addf %134, %133 : vector<8x128xf32>
    %136 = arith.divf %134, %135 : vector<8x128xf32>
    %137 = vector.extract_strided_slice %128 {offsets = [0, 128], sizes = [8, 128], strides = [1, 1]} : vector<8x256xf32> to vector<8x128xf32>
    %138 = arith.mulf %137, %107 : vector<8x128xf32>
    %139 = vector.extract_strided_slice %128 {offsets = [0, 0], sizes = [8, 128], strides = [1, 1]} : vector<8x256xf32> to vector<8x128xf32>
    %140 = arith.mulf %139, %130 : vector<8x128xf32>
    %141 = arith.addf %138, %140 : vector<8x128xf32>
    %142 = math.tanh %141 : vector<8x128xf32>
    %143 = arith.mulf %136, %142 : vector<8x128xf32>
    %144 = arith.truncf %143 : vector<8x128xf32> to vector<8x128xbf16>
    %145 = arith.index_cast %c3_i32 : i32 to index
    %c0_47 = arith.constant 0 : index
    %c0_48 = arith.constant 0 : index
    %146 = vector.load %arg6[%145, %c0_47, %c0_48] : memref<8x8x128xbf16, #tpu.memory_space<vmem>>, vector<1x8x128xbf16>
    %147 = vector.shape_cast %146 : vector<1x8x128xbf16> to vector<8x128xbf16>
    %148 = vector.shape_cast %144 : vector<8x128xbf16> to vector<1x8x128xbf16>
    tpu.vector_store %arg6[%145, %c0_47, %c0_48], %148 {strides = array<i32>} : memref<8x8x128xbf16, #tpu.memory_space<vmem>>, vector<1x8x128xbf16>,
    %c4_i32 = arith.constant 4 : i32
    %c8_i32_49 = arith.constant 8 : i32
    %149 = arith.muli %c4_i32, %c8_i32_49 : i32
    %150 = tpu.assume_multiple %149, 8 : i32
    %151 = arith.index_cast %150 : i32 to index
    %c0_50 = arith.constant 0 : index
    %152 = vector.load %arg9[%151, %c0_50] : memref<64x512xf32, #tpu.memory_space<vmem>>, vector<8x512xf32>
    %153 = arith.truncf %143 : vector<8x128xf32> to vector<8x128xbf16>
    %c0_51 = arith.constant 0 : index
    %c0_52 = arith.constant 0 : index
    %154 = vector.load %arg4[%c0_51, %c0_52] : memref<128x512xbf16, #tpu.memory_space<vmem>>, vector<128x512xbf16>
    %cst_53 = arith.constant dense<0.000000e+00> : vector<8x512xf32>
    %155 = tpu.matmul %153, %154, %cst_53 {dimension_numbers = #tpu.dot_dimension_numbers<[1], [0], [0], [1], [0, 0, 1, 1], [], []>} : vector<8x128xbf16>, vector<128x512xbf16>, vector<8x512xf32> -> vector<8x512xf32>
    %156 = arith.addf %152, %155 : vector<8x512xf32>
    %157 = vector.extract_strided_slice %156 {offsets = [0, 0], sizes = [8, 256], strides = [1, 1]} : vector<8x512xf32> to vector<8x256xf32>
    %158 = arith.negf %157 : vector<8x256xf32>
    %159 = math.exp %158 : vector<8x256xf32>
    %cst_54 = arith.constant 1.000000e+00 : f32
    %160 = vector.broadcast %cst_54 : f32 to vector<8x256xf32>
    %161 = arith.addf %160, %159 : vector<8x256xf32>
    %162 = arith.divf %160, %161 : vector<8x256xf32>
    %163 = vector.extract_strided_slice %156 {offsets = [0, 256], sizes = [8, 128], strides = [1, 1]} : vector<8x512xf32> to vector<8x128xf32>
    %164 = math.tanh %163 : vector<8x128xf32>
    %165 = vector.extract_strided_slice %156 {offsets = [0, 384], sizes = [8, 128], strides = [1, 1]} : vector<8x512xf32> to vector<8x128xf32>
    %166 = arith.negf %165 : vector<8x128xf32>
    %167 = math.exp %166 : vector<8x128xf32>
    %cst_55 = arith.constant 1.000000e+00 : f32
    %168 = vector.broadcast %cst_55 : f32 to vector<8x128xf32>
    %169 = arith.addf %168, %167 : vector<8x128xf32>
    %170 = arith.divf %168, %169 : vector<8x128xf32>
    %171 = vector.extract_strided_slice %162 {offsets = [0, 128], sizes = [8, 128], strides = [1, 1]} : vector<8x256xf32> to vector<8x128xf32>
    %172 = arith.mulf %171, %141 : vector<8x128xf32>
    %173 = vector.extract_strided_slice %162 {offsets = [0, 0], sizes = [8, 128], strides = [1, 1]} : vector<8x256xf32> to vector<8x128xf32>
    %174 = arith.mulf %173, %164 : vector<8x128xf32>
    %175 = arith.addf %172, %174 : vector<8x128xf32>
    %176 = math.tanh %175 : vector<8x128xf32>
    %177 = arith.mulf %170, %176 : vector<8x128xf32>
    %178 = arith.truncf %177 : vector<8x128xf32> to vector<8x128xbf16>
    %179 = arith.index_cast %c4_i32 : i32 to index
    %c0_56 = arith.constant 0 : index
    %c0_57 = arith.constant 0 : index
    %180 = vector.load %arg6[%179, %c0_56, %c0_57] : memref<8x8x128xbf16, #tpu.memory_space<vmem>>, vector<1x8x128xbf16>
    %181 = vector.shape_cast %180 : vector<1x8x128xbf16> to vector<8x128xbf16>
    %182 = vector.shape_cast %178 : vector<8x128xbf16> to vector<1x8x128xbf16>
    tpu.vector_store %arg6[%179, %c0_56, %c0_57], %182 {strides = array<i32>} : memref<8x8x128xbf16, #tpu.memory_space<vmem>>, vector<1x8x128xbf16>,
    %c5_i32 = arith.constant 5 : i32
    %c8_i32_58 = arith.constant 8 : i32
    %183 = arith.muli %c5_i32, %c8_i32_58 : i32
    %184 = tpu.assume_multiple %183, 8 : i32
    %185 = arith.index_cast %184 : i32 to index
    %c0_59 = arith.constant 0 : index
    %186 = vector.load %arg9[%185, %c0_59] : memref<64x512xf32, #tpu.memory_space<vmem>>, vector<8x512xf32>
    %187 = arith.truncf %177 : vector<8x128xf32> to vector<8x128xbf16>
    %c0_60 = arith.constant 0 : index
    %c0_61 = arith.constant 0 : index
    %188 = vector.load %arg4[%c0_60, %c0_61] : memref<128x512xbf16, #tpu.memory_space<vmem>>, vector<128x512xbf16>
    %cst_62 = arith.constant dense<0.000000e+00> : vector<8x512xf32>
    %189 = tpu.matmul %187, %188, %cst_62 {dimension_numbers = #tpu.dot_dimension_numbers<[1], [0], [0], [1], [0, 0, 1, 1], [], []>} : vector<8x128xbf16>, vector<128x512xbf16>, vector<8x512xf32> -> vector<8x512xf32>
    %190 = arith.addf %186, %189 : vector<8x512xf32>
    %191 = vector.extract_strided_slice %190 {offsets = [0, 0], sizes = [8, 256], strides = [1, 1]} : vector<8x512xf32> to vector<8x256xf32>
    %192 = arith.negf %191 : vector<8x256xf32>
    %193 = math.exp %192 : vector<8x256xf32>
    %cst_63 = arith.constant 1.000000e+00 : f32
    %194 = vector.broadcast %cst_63 : f32 to vector<8x256xf32>
    %195 = arith.addf %194, %193 : vector<8x256xf32>
    %196 = arith.divf %194, %195 : vector<8x256xf32>
    %197 = vector.extract_strided_slice %190 {offsets = [0, 256], sizes = [8, 128], strides = [1, 1]} : vector<8x512xf32> to vector<8x128xf32>
    %198 = math.tanh %197 : vector<8x128xf32>
    %199 = vector.extract_strided_slice %190 {offsets = [0, 384], sizes = [8, 128], strides = [1, 1]} : vector<8x512xf32> to vector<8x128xf32>
    %200 = arith.negf %199 : vector<8x128xf32>
    %201 = math.exp %200 : vector<8x128xf32>
    %cst_64 = arith.constant 1.000000e+00 : f32
    %202 = vector.broadcast %cst_64 : f32 to vector<8x128xf32>
    %203 = arith.addf %202, %201 : vector<8x128xf32>
    %204 = arith.divf %202, %203 : vector<8x128xf32>
    %205 = vector.extract_strided_slice %196 {offsets = [0, 128], sizes = [8, 128], strides = [1, 1]} : vector<8x256xf32> to vector<8x128xf32>
    %206 = arith.mulf %205, %175 : vector<8x128xf32>
    %207 = vector.extract_strided_slice %196 {offsets = [0, 0], sizes = [8, 128], strides = [1, 1]} : vector<8x256xf32> to vector<8x128xf32>
    %208 = arith.mulf %207, %198 : vector<8x128xf32>
    %209 = arith.addf %206, %208 : vector<8x128xf32>
    %210 = math.tanh %209 : vector<8x128xf32>
    %211 = arith.mulf %204, %210 : vector<8x128xf32>
    %212 = arith.truncf %211 : vector<8x128xf32> to vector<8x128xbf16>
    %213 = arith.index_cast %c5_i32 : i32 to index
    %c0_65 = arith.constant 0 : index
    %c0_66 = arith.constant 0 : index
    %214 = vector.load %arg6[%213, %c0_65, %c0_66] : memref<8x8x128xbf16, #tpu.memory_space<vmem>>, vector<1x8x128xbf16>
    %215 = vector.shape_cast %214 : vector<1x8x128xbf16> to vector<8x128xbf16>
    %216 = vector.shape_cast %212 : vector<8x128xbf16> to vector<1x8x128xbf16>
    tpu.vector_store %arg6[%213, %c0_65, %c0_66], %216 {strides = array<i32>} : memref<8x8x128xbf16, #tpu.memory_space<vmem>>, vector<1x8x128xbf16>,
    %c6_i32 = arith.constant 6 : i32
    %c8_i32_67 = arith.constant 8 : i32
    %217 = arith.muli %c6_i32, %c8_i32_67 : i32
    %218 = tpu.assume_multiple %217, 8 : i32
    %219 = arith.index_cast %218 : i32 to index
    %c0_68 = arith.constant 0 : index
    %220 = vector.load %arg9[%219, %c0_68] : memref<64x512xf32, #tpu.memory_space<vmem>>, vector<8x512xf32>
    %221 = arith.truncf %211 : vector<8x128xf32> to vector<8x128xbf16>
    %c0_69 = arith.constant 0 : index
    %c0_70 = arith.constant 0 : index
    %222 = vector.load %arg4[%c0_69, %c0_70] : memref<128x512xbf16, #tpu.memory_space<vmem>>, vector<128x512xbf16>
    %cst_71 = arith.constant dense<0.000000e+00> : vector<8x512xf32>
    %223 = tpu.matmul %221, %222, %cst_71 {dimension_numbers = #tpu.dot_dimension_numbers<[1], [0], [0], [1], [0, 0, 1, 1], [], []>} : vector<8x128xbf16>, vector<128x512xbf16>, vector<8x512xf32> -> vector<8x512xf32>
    %224 = arith.addf %220, %223 : vector<8x512xf32>
    %225 = vector.extract_strided_slice %224 {offsets = [0, 0], sizes = [8, 256], strides = [1, 1]} : vector<8x512xf32> to vector<8x256xf32>
    %226 = arith.negf %225 : vector<8x256xf32>
    %227 = math.exp %226 : vector<8x256xf32>
    %cst_72 = arith.constant 1.000000e+00 : f32
    %228 = vector.broadcast %cst_72 : f32 to vector<8x256xf32>
    %229 = arith.addf %228, %227 : vector<8x256xf32>
    %230 = arith.divf %228, %229 : vector<8x256xf32>
    %231 = vector.extract_strided_slice %224 {offsets = [0, 256], sizes = [8, 128], strides = [1, 1]} : vector<8x512xf32> to vector<8x128xf32>
    %232 = math.tanh %231 : vector<8x128xf32>
    %233 = vector.extract_strided_slice %224 {offsets = [0, 384], sizes = [8, 128], strides = [1, 1]} : vector<8x512xf32> to vector<8x128xf32>
    %234 = arith.negf %233 : vector<8x128xf32>
    %235 = math.exp %234 : vector<8x128xf32>
    %cst_73 = arith.constant 1.000000e+00 : f32
    %236 = vector.broadcast %cst_73 : f32 to vector<8x128xf32>
    %237 = arith.addf %236, %235 : vector<8x128xf32>
    %238 = arith.divf %236, %237 : vector<8x128xf32>
    %239 = vector.extract_strided_slice %230 {offsets = [0, 128], sizes = [8, 128], strides = [1, 1]} : vector<8x256xf32> to vector<8x128xf32>
    %240 = arith.mulf %239, %209 : vector<8x128xf32>
    %241 = vector.extract_strided_slice %230 {offsets = [0, 0], sizes = [8, 128], strides = [1, 1]} : vector<8x256xf32> to vector<8x128xf32>
    %242 = arith.mulf %241, %232 : vector<8x128xf32>
    %243 = arith.addf %240, %242 : vector<8x128xf32>
    %244 = math.tanh %243 : vector<8x128xf32>
    %245 = arith.mulf %238, %244 : vector<8x128xf32>
    %246 = arith.truncf %245 : vector<8x128xf32> to vector<8x128xbf16>
    %247 = arith.index_cast %c6_i32 : i32 to index
    %c0_74 = arith.constant 0 : index
    %c0_75 = arith.constant 0 : index
    %248 = vector.load %arg6[%247, %c0_74, %c0_75] : memref<8x8x128xbf16, #tpu.memory_space<vmem>>, vector<1x8x128xbf16>
    %249 = vector.shape_cast %248 : vector<1x8x128xbf16> to vector<8x128xbf16>
    %250 = vector.shape_cast %246 : vector<8x128xbf16> to vector<1x8x128xbf16>
    tpu.vector_store %arg6[%247, %c0_74, %c0_75], %250 {strides = array<i32>} : memref<8x8x128xbf16, #tpu.memory_space<vmem>>, vector<1x8x128xbf16>,
    %c7_i32 = arith.constant 7 : i32
    %c8_i32_76 = arith.constant 8 : i32
    %251 = arith.muli %c7_i32, %c8_i32_76 : i32
    %252 = tpu.assume_multiple %251, 8 : i32
    %253 = arith.index_cast %252 : i32 to index
    %c0_77 = arith.constant 0 : index
    %254 = vector.load %arg9[%253, %c0_77] : memref<64x512xf32, #tpu.memory_space<vmem>>, vector<8x512xf32>
    %255 = arith.truncf %245 : vector<8x128xf32> to vector<8x128xbf16>
    %c0_78 = arith.constant 0 : index
    %c0_79 = arith.constant 0 : index
    %256 = vector.load %arg4[%c0_78, %c0_79] : memref<128x512xbf16, #tpu.memory_space<vmem>>, vector<128x512xbf16>
    %cst_80 = arith.constant dense<0.000000e+00> : vector<8x512xf32>
    %257 = tpu.matmul %255, %256, %cst_80 {dimension_numbers = #tpu.dot_dimension_numbers<[1], [0], [0], [1], [0, 0, 1, 1], [], []>} : vector<8x128xbf16>, vector<128x512xbf16>, vector<8x512xf32> -> vector<8x512xf32>
    %258 = arith.addf %254, %257 : vector<8x512xf32>
    %259 = vector.extract_strided_slice %258 {offsets = [0, 0], sizes = [8, 256], strides = [1, 1]} : vector<8x512xf32> to vector<8x256xf32>
    %260 = arith.negf %259 : vector<8x256xf32>
    %261 = math.exp %260 : vector<8x256xf32>
    %cst_81 = arith.constant 1.000000e+00 : f32
    %262 = vector.broadcast %cst_81 : f32 to vector<8x256xf32>
    %263 = arith.addf %262, %261 : vector<8x256xf32>
    %264 = arith.divf %262, %263 : vector<8x256xf32>
    %265 = vector.extract_strided_slice %258 {offsets = [0, 256], sizes = [8, 128], strides = [1, 1]} : vector<8x512xf32> to vector<8x128xf32>
    %266 = math.tanh %265 : vector<8x128xf32>
    %267 = vector.extract_strided_slice %258 {offsets = [0, 384], sizes = [8, 128], strides = [1, 1]} : vector<8x512xf32> to vector<8x128xf32>
    %268 = arith.negf %267 : vector<8x128xf32>
    %269 = math.exp %268 : vector<8x128xf32>
    %cst_82 = arith.constant 1.000000e+00 : f32
    %270 = vector.broadcast %cst_82 : f32 to vector<8x128xf32>
    %271 = arith.addf %270, %269 : vector<8x128xf32>
    %272 = arith.divf %270, %271 : vector<8x128xf32>
    %273 = vector.extract_strided_slice %264 {offsets = [0, 128], sizes = [8, 128], strides = [1, 1]} : vector<8x256xf32> to vector<8x128xf32>
    %274 = arith.mulf %273, %243 : vector<8x128xf32>
    %275 = vector.extract_strided_slice %264 {offsets = [0, 0], sizes = [8, 128], strides = [1, 1]} : vector<8x256xf32> to vector<8x128xf32>
    %276 = arith.mulf %275, %266 : vector<8x128xf32>
    %277 = arith.addf %274, %276 : vector<8x128xf32>
    %278 = math.tanh %277 : vector<8x128xf32>
    %279 = arith.mulf %272, %278 : vector<8x128xf32>
    %280 = arith.truncf %279 : vector<8x128xf32> to vector<8x128xbf16>
    %281 = arith.index_cast %c7_i32 : i32 to index
    %c0_83 = arith.constant 0 : index
    %c0_84 = arith.constant 0 : index
    %282 = vector.load %arg6[%281, %c0_83, %c0_84] : memref<8x8x128xbf16, #tpu.memory_space<vmem>>, vector<1x8x128xbf16>
    %283 = vector.shape_cast %282 : vector<1x8x128xbf16> to vector<8x128xbf16>
    %284 = vector.shape_cast %280 : vector<8x128xbf16> to vector<1x8x128xbf16>
    tpu.vector_store %arg6[%281, %c0_83, %c0_84], %284 {strides = array<i32>} : memref<8x8x128xbf16, #tpu.memory_space<vmem>>, vector<1x8x128xbf16>,
    %c8_i32_85 = arith.constant 8 : i32
    %c0_86 = arith.constant 0 : index
    %c0_87 = arith.constant 0 : index
    %285 = vector.load %arg7[%c0_86, %c0_87] : memref<8x128xf32, #tpu.memory_space<vmem>>, vector<8x128xf32>
    tpu.vector_store %arg7[%c0_86, %c0_87], %279 {strides = array<i32>} : memref<8x128xf32, #tpu.memory_space<vmem>>, vector<8x128xf32>,
    %c0_88 = arith.constant 0 : index
    %c0_89 = arith.constant 0 : index
    %286 = vector.load %arg8[%c0_88, %c0_89] : memref<8x128xf32, #tpu.memory_space<vmem>>, vector<8x128xf32>
    tpu.vector_store %arg8[%c0_88, %c0_89], %277 {strides = array<i32>} : memref<8x128xf32, #tpu.memory_space<vmem>>, vector<8x128xf32>,
    return
  }
  func.func @transform_0(%arg0: i32, %arg1: i32) -> (i32, i32, i32) {
    %c0_i32 = arith.constant 0 : i32
    %c0_i32_0 = arith.constant 0 : i32
    return %arg1, %arg0, %c0_i32 : i32, i32, i32
  }
  func.func @transform_1(%arg0: i32, %arg1: i32) -> (i32, i32) {
    %c0_i32 = arith.constant 0 : i32
    %c0_i32_0 = arith.constant 0 : i32
    %c0_i32_1 = arith.constant 0 : i32
    return %c0_i32, %c0_i32_0 : i32, i32
  }
  func.func @transform_2(%arg0: i32, %arg1: i32) -> (i32, i32) {
    %c0_i32 = arith.constant 0 : i32
    %c0_i32_0 = arith.constant 0 : i32
    %c0_i32_1 = arith.constant 0 : i32
    return %c0_i32, %c0_i32_0 : i32, i32
  }
  func.func @transform_3(%arg0: i32, %arg1: i32) -> (i32, i32) {
    %c0_i32 = arith.constant 0 : i32
    %c0_i32_0 = arith.constant 0 : i32
    %c0_i32_1 = arith.constant 0 : i32
    return %c0_i32, %c0_i32_0 : i32, i32
  }
  func.func @transform_4(%arg0: i32, %arg1: i32) -> (i32, i32, i32) {
    %c0_i32 = arith.constant 0 : i32
    %c0_i32_0 = arith.constant 0 : i32
    return %arg1, %arg0, %c0_i32 : i32, i32, i32
  }
  func.func @transform_5(%arg0: i32, %arg1: i32) -> (i32, i32) {
    %c0_i32 = arith.constant 0 : i32
    %c0_i32_0 = arith.constant 0 : i32
    return %arg0, %c0_i32 : i32, i32
  }
  func.func @transform_6(%arg0: i32, %arg1: i32) -> (i32, i32) {
    %c0_i32 = arith.constant 0 : i32
    %c0_i32_0 = arith.constant 0 : i32
    return %arg0, %c0_i32 : i32, i32
  }
}

</mosaic_0001>

<bundles_post_ra>
// kernel: lstm_encoder_forward.3
= control target key start
LH: loop header
LB: loop body
LE: loop exit
PB: predicated region body
PF: predicated region fallthrough
CT: control target
= control target key end

     0   :  { %v4490_v1 = vmov 0   ;;  %s4483_s1 = inlined_call_operand.vmem [shape: bf16[128,512], index: 1, kind: input, shape index: {}]   ;;  %s4484_s0 = inlined_call_operand.vmem [shape: bf16[8,8,128], index: 0, kind: input, shape index: {}]   ;;  %s4485_s2 = inlined_call_operand.vmem [shape: bf16[128,512], index: 2, kind: input, shape index: {}]   ;;  %s4486_s3 = inlined_call_operand.vmem [shape: f32[1,512], index: 3, kind: input, shape index: {}]   ;;  %s4487_s4 = inlined_call_operand.vmem [shape: bf16[8,8,128], index: 4, kind: output, shape index: {0}]   ;;  %s4488_s6 = inlined_call_operand.vmem [shape: f32[8,128], index: 6, kind: output, shape index: {2}]   ;;  %s4489_s5 = inlined_call_operand.vmem [shape: f32[8,128], index: 5, kind: output, shape index: {1}]  }
   0x1   :  { %v3295_v0 = vld [vmem:[%s4483_s1 + $0x4] ss:$16 sps:$4 sm:$0xff]   ;;  %305 = vmatprep.mubr.bf16.mxu0 %v4490_v1  ;;  %378 = vmatprep.mubr.bf16.mxu1 %v4490_v1  ;;  %v3297_v2 = vld [vmem:[%s4483_s1 + $0xc] ss:$16 sps:$4 sm:$0xff]   ;;  %v3299_v3 = vld [vmem:[%s4483_s1] ss:$16 sps:$4 sm:$0xff]  }
   0x2   :  { %273 = vmatprep.subr.bf16.mxu0 %v3295_v0  ;;  %v3300_v4 = vld [vmem:[%s4483_s1 + $0x8] ss:$16 sps:$4 sm:$0xff]   ;;  %346 = vmatprep.subr.bf16.mxu1 %v3297_v2  ;;  %v3301_v5 = vld [vmem:[%s4483_s1 + $0x24] ss:$16 sps:$4 sm:$0xff]   ;;  %v3303_v6 = vld [vmem:[%s4483_s1 + $0x2c] ss:$16 sps:$4 sm:$0xff]  }
   0x3   :  { %274 = vmatpush1.bf16.msra.mxu0 %v3299_v3  ;;  %347 = vmatpush1.bf16.msra.mxu1 %v3300_v4  ;;  %v3305_v7 = vld [vmem:[%s4483_s1 + $0x20] ss:$16 sps:$4 sm:$0xff]   ;;  %v3306_v8 = vld [vmem:[%s4483_s1 + $0x28] ss:$16 sps:$4 sm:$0xff]   ;;  %v3307_v9 = vld [vmem:[%s4483_s1 + $0x44] ss:$16 sps:$4 sm:$0xff]  }
   0x4   :  { %275 = vmatprep.subr.bf16.mxu0 %v3301_v5  ;;  %348 = vmatprep.subr.bf16.mxu1 %v3303_v6  ;;  %v3309_v10 = vld [vmem:[%s4483_s1 + $0x4c] ss:$16 sps:$4 sm:$0xff]   ;;  %v3311_v11 = vld [vmem:[%s4483_s1 + $0x40] ss:$16 sps:$4 sm:$0xff]   ;;  %v3312_v12 = vld [vmem:[%s4483_s1 + $0x48] ss:$16 sps:$4 sm:$0xff]  }
   0x5   :  { %v3313_v13 = vld [vmem:[%s4483_s1 + $0x64] ss:$16 sps:$4 sm:$0xff]   ;;  %v3315_v14 = vld [vmem:[%s4483_s1 + $0x6c] ss:$16 sps:$4 sm:$0xff]   ;;  %v3317_v15 = vld [vmem:[%s4483_s1 + $0x60] ss:$16 sps:$4 sm:$0xff]  }
   0x6   :  { %v3318_v16 = vld [vmem:[%s4483_s1 + $0x68] ss:$16 sps:$4 sm:$0xff]   ;;  %v3319_v17 = vld [vmem:[%s4483_s1 + $0x84] ss:$16 sps:$4 sm:$0xff]   ;;  %v3321_v18 = vld [vmem:[%s4483_s1 + $0x8c] ss:$16 sps:$4 sm:$0xff]  }
   0x7   :  { %276 = vmatpush1.bf16.msra.mxu0 %v3305_v7  ;;  %349 = vmatpush1.bf16.msra.mxu1 %v3306_v8  ;;  %v3323_v19 = vld [vmem:[%s4483_s1 + $0x80] ss:$16 sps:$4 sm:$0xff]   ;;  %v3324_v20 = vld [vmem:[%s4483_s1 + $0x88] ss:$16 sps:$4 sm:$0xff]   ;;  %v3325_v21 = vld [vmem:[%s4483_s1 + $0xa4] ss:$16 sps:$4 sm:$0xff]   ;;  %v69_v7 = vlaneseq }
   0x8   :  { %277 = vmatprep.subr.bf16.mxu0 %v3307_v9  ;;  %350 = vmatprep.subr.bf16.mxu1 %v3309_v10  ;;  %v3327_v22 = vld [vmem:[%s4483_s1 + $0xac] ss:$16 sps:$4 sm:$0xff]   ;;  %v3329_v23 = vld [vmem:[%s4483_s1 + $0xa0] ss:$16 sps:$4 sm:$0xff]   ;;  %v3330_v24 = vld [vmem:[%s4483_s1 + $0xa8] ss:$16 sps:$4 sm:$0xff]  }
   0x9   :  { %v3331_v25 = vld [vmem:[%s4483_s1 + $0xc4] ss:$16 sps:$4 sm:$0xff]   ;;  %v3333_v26 = vld [vmem:[%s4483_s1 + $0xcc] ss:$16 sps:$4 sm:$0xff]   ;;  %v3335_v27 = vld [vmem:[%s4483_s1 + $0xc0] ss:$16 sps:$4 sm:$0xff]  }
   0xa   :  { %v3336_v28 = vld [vmem:[%s4483_s1 + $0xc8] ss:$16 sps:$4 sm:$0xff]   ;;  %v3337_v29 = vld [vmem:[%s4483_s1 + $0xe4] ss:$16 sps:$4 sm:$0xff]   ;;  %v3339_v30 = vld [vmem:[%s4483_s1 + $0xec] ss:$16 sps:$4 sm:$0xff]  }
   0xb   :  { %278 = vmatpush1.bf16.msra.mxu0 %v3311_v11  ;;  %351 = vmatpush1.bf16.msra.mxu1 %v3312_v12  ;;  %v3341_v31 = vld [vmem:[%s4483_s1 + $0xe0] ss:$16 sps:$4 sm:$0xff]   ;;  %v3342_v32 = vld [vmem:[%s4483_s1 + $0xe8] ss:$16 sps:$4 sm:$0xff]   ;;  %v3709_v33 = vld [vmem:[%s4485_s2 + $0x4] ss:$16 sps:$4 sm:$0xff]  }
   0xc   :  { %279 = vmatprep.subr.bf16.mxu0 %v3313_v13  ;;  %352 = vmatprep.subr.bf16.mxu1 %v3315_v14  ;;  %v3714_v34 = vld [vmem:[%s4485_s2 + $0xc] ss:$16 sps:$4 sm:$0xff]   ;;  %v3343_v35 = vld [vmem:[%s4484_s0] sm:$0xff]   ;;  %v3727_v37 = vld [vmem:[%s4485_s2 + $0x8] ss:$16 sps:$4 sm:$0xff]   ;;  %v3572_v6 = vmov 0.0|0.0  }
   0xd   :  { %v3722_v36 = vld [vmem:[%s4485_s2] ss:$16 sps:$4 sm:$0xff]   ;;  %v3734_v38 = vld [vmem:[%s4485_s2 + $0x24] ss:$16 sps:$4 sm:$0xff]   ;;  %v3739_v39 = vld [vmem:[%s4485_s2 + $0x2c] ss:$16 sps:$4 sm:$0xff]  }
   0xe   :  { %v3744_v40 = vld [vmem:[%s4485_s2 + $0x20] ss:$16 sps:$4 sm:$0xff]   ;;  %v3751_v41 = vld [vmem:[%s4485_s2 + $0x28] ss:$16 sps:$4 sm:$0xff]   ;;  %v3758_v42 = vld [vmem:[%s4485_s2 + $0x44] ss:$16 sps:$4 sm:$0xff]  }
   0xf   :  { %280 = vmatpush1.bf16.msra.mxu0 %v3317_v15  ;;  %353 = vmatpush1.bf16.msra.mxu1 %v3318_v16  ;;  %v3763_v43 = vld [vmem:[%s4485_s2 + $0x4c] ss:$16 sps:$4 sm:$0xff]   ;;  %v3773_v45 = vld [vmem:[%s4485_s2 + $0x40] ss:$16 sps:$4 sm:$0xff]   ;;  %v3778_v46 = vld [vmem:[%s4485_s2 + $0x48] ss:$16 sps:$4 sm:$0xff]  }
  0x10   :  { %281 = vmatprep.subr.bf16.mxu0 %v3319_v17  ;;  %354 = vmatprep.subr.bf16.mxu1 %v3321_v18  ;;  %v3356_v44 = vld [vmem:[%s4484_s0 + $0x8] sm:$0xff]   ;;  %v3785_v47 = vld [vmem:[%s4485_s2 + $0x64] ss:$16 sps:$4 sm:$0xff]   ;;  %v3797_v49 = vld [vmem:[%s4485_s2 + $0x60] ss:$16 sps:$4 sm:$0xff]   ;;  %v70_v8 = vshrl.u32 %v69_v7, 7 }
  0x11   :  { %v3792_v48 = vld [vmem:[%s4485_s2 + $0x6c] ss:$16 sps:$4 sm:$0xff]   ;;  %v3802_v50 = vld [vmem:[%s4485_s2 + $0x68] ss:$16 sps:$4 sm:$0xff]   ;;  %v3809_v51 = vld [vmem:[%s4485_s2 + $0x84] ss:$16 sps:$4 sm:$0xff]  }
  0x12   :  { %v3816_v52 = vld [vmem:[%s4485_s2 + $0x8c] ss:$16 sps:$4 sm:$0xff]   ;;  %v3369_v53 = vld [vmem:[%s4484_s0 + $0x10] sm:$0xff]   ;;  %v3831_v55 = vld [vmem:[%s4485_s2 + $0x88] ss:$16 sps:$4 sm:$0xff]   ;;  %v79_v9 = vsub.s32 2, %v70_v8 }
  0x13   :  { %282 = vmatpush1.bf16.msra.mxu0 %v3323_v19  ;;  %355 = vmatpush1.bf16.msra.mxu1 %v3324_v20  ;;  %v3826_v54 = vld [vmem:[%s4485_s2 + $0x80] ss:$16 sps:$4 sm:$0xff]   ;;  %v3836_v56 = vld [vmem:[%s4485_s2 + $0xa4] ss:$16 sps:$4 sm:$0xff]   ;;  %v3841_v57 = vld [vmem:[%s4485_s2 + $0xac] ss:$16 sps:$4 sm:$0xff]  }
  0x14   :  { %283 = vmatprep.subr.bf16.mxu0 %v3325_v21  ;;  %356 = vmatprep.subr.bf16.mxu1 %v3327_v22  ;;  %v3850_v58 = vld [vmem:[%s4485_s2 + $0xa0] ss:$16 sps:$4 sm:$0xff]   ;;  %v3855_v59 = vld [vmem:[%s4485_s2 + $0xa8] ss:$16 sps:$4 sm:$0xff]   ;;  %v3860_v60 = vld [vmem:[%s4485_s2 + $0xc4] ss:$16 sps:$4 sm:$0xff]  }
  0x15   :  { %v3865_v61 = vld [vmem:[%s4485_s2 + $0xcc] ss:$16 sps:$4 sm:$0xff]   ;;  %v3879_v63 = vld [vmem:[%s4485_s2 + $0xc0] ss:$16 sps:$4 sm:$0xff]   ;;  %v3884_v0 = vld [vmem:[%s4485_s2 + $0xc8] ss:$16 sps:$4 sm:$0xff]  }
  0x16   :  { %v3382_v62 = vld [vmem:[%s4484_s0 + $0x18] sm:$0xff]   ;;  %v3889_v2 = vld [vmem:[%s4485_s2 + $0xe4] ss:$16 sps:$4 sm:$0xff]   ;;  %v3905_v4 = vld [vmem:[%s4485_s2 + $0xe0] ss:$16 sps:$4 sm:$0xff]   ;;  %v83_v10 = vsub.s32 3, %v70_v8 }
  0x17   :  { %284 = vmatpush1.bf16.msra.mxu0 %v3329_v23  ;;  %357 = vmatpush1.bf16.msra.mxu1 %v3330_v24  ;;  %v3898_v3 = vld [vmem:[%s4485_s2 + $0xec] ss:$16 sps:$4 sm:$0xff]   ;;  %v3910_v5 = vld [vmem:[%s4485_s2 + $0xe8] ss:$16 sps:$4 sm:$0xff]   ;;  %v71_v11 = vsub.s32 0, %v70_v8  ;;  %v75_v13 = vsub.s32 1, %v70_v8 }
  0x18   :  { %285 = vmatprep.subr.bf16.mxu0 %v3331_v25  ;;  %358 = vmatprep.subr.bf16.mxu1 %v3333_v26  ;;  %v67_v12 = vld [vmem:[%s4486_s3] sm:$0xf] }
  0x19   :  { %v3957_v14 = vrot.slane %v67_v12, %v79_v9  ;;  %v3963_v17 = vrot.slane %v67_v12, %v83_v10  ;;  %v72_v18 = vrot.slane %v67_v12, %v71_v11  ;;  %v76_v21 = vrot.slane %v67_v12, %v75_v13 }
  0x1b   :  { %286 = vmatpush1.bf16.msra.mxu0 %v3335_v27  ;;  %359 = vmatpush1.bf16.msra.mxu1 %v3336_v28 }
  0x1c   :  { %287 = vmatprep.subr.bf16.mxu0 %v3337_v29  ;;  %360 = vmatprep.subr.bf16.mxu1 %v3339_v30 }
  0x1f   :  { %288 = vmatpush1.bf16.msra.mxu0 %v3341_v31  ;;  %361 = vmatpush1.bf16.msra.mxu1 %v3342_v32 }
  0x20   :  { %653 = vmatprep.subr.bf16.mxu0 %v3709_v33  ;;  %694 = vmatprep.subr.bf16.mxu1 %v3714_v34 }
  0x22   :  { %306 = vmatmul.mubr.bf16.vlgmr.msra.gmra.mrb[0].mxu0 %v3343_v35  ;;  %379 = vmatmul.mubr.bf16.vlgmr.msra.gmra.mrb[0].mxu1 %v3343_v35 }
  0x23   :  { %654 = vmatpush1.bf16.msra.mxu0 %v3722_v36  ;;  %695 = vmatpush1.bf16.msra.mxu1 %v3727_v37 }
  0x24   :  { %655 = vmatprep.subr.bf16.mxu0 %v3734_v38  ;;  %696 = vmatprep.subr.bf16.mxu1 %v3739_v39 }
  0x25   :  { %315 = vmatprep.mubr.bf16.mxu0 %v4490_v1  ;;  %388 = vmatprep.mubr.bf16.mxu1 %v4490_v1 }
  0x27   :  { %656 = vmatpush1.bf16.msra.mxu0 %v3744_v40  ;;  %697 = vmatpush1.bf16.msra.mxu1 %v3751_v41 }
  0x28   :  { %657 = vmatprep.subr.bf16.mxu0 %v3758_v42  ;;  %698 = vmatprep.subr.bf16.mxu1 %v3763_v43 }
  0x2a   :  { %316 = vmatmul.mubr.bf16.gmra.mrb[4].mxu0 %v3356_v44  ;;  %389 = vmatmul.mubr.bf16.gmra.mrb[4].mxu1 %v3356_v44 }
  0x2b   :  { %658 = vmatpush1.bf16.msra.mxu0 %v3773_v45  ;;  %699 = vmatpush1.bf16.msra.mxu1 %v3778_v46 }
  0x2c   :  { %659 = vmatprep.subr.bf16.mxu0 %v3785_v47  ;;  %700 = vmatprep.subr.bf16.mxu1 %v3792_v48 }
  0x2d   :  { %325 = vmatprep.mubr.bf16.mxu0 %v4490_v1  ;;  %398 = vmatprep.mubr.bf16.mxu1 %v4490_v1 }
  0x2f   :  { %660 = vmatpush1.bf16.msra.mxu0 %v3797_v49  ;;  %701 = vmatpush1.bf16.msra.mxu1 %v3802_v50 }
  0x30   :  { %661 = vmatprep.subr.bf16.mxu0 %v3809_v51  ;;  %702 = vmatprep.subr.bf16.mxu1 %v3816_v52 }
  0x32   :  { %326 = vmatmul.mubr.bf16.gmra.mrb[8].mxu0 %v3369_v53  ;;  %399 = vmatmul.mubr.bf16.gmra.mrb[8].mxu1 %v3369_v53 }
  0x33   :  { %662 = vmatpush1.bf16.msra.mxu0 %v3826_v54  ;;  %703 = vmatpush1.bf16.msra.mxu1 %v3831_v55 }
  0x34   :  { %663 = vmatprep.subr.bf16.mxu0 %v3836_v56  ;;  %704 = vmatprep.subr.bf16.mxu1 %v3841_v57 }
  0x35   :  { %335 = vmatprep.mubr.bf16.mxu0 %v4490_v1  ;;  %408 = vmatprep.mubr.bf16.mxu1 %v4490_v1 }
  0x37   :  { %664 = vmatpush1.bf16.msra.mxu0 %v3850_v58  ;;  %705 = vmatpush1.bf16.msra.mxu1 %v3855_v59 }
  0x38   :  { %665 = vmatprep.subr.bf16.mxu0 %v3860_v60  ;;  %706 = vmatprep.subr.bf16.mxu1 %v3865_v61 }
  0x3a   :  { %336 = vmatmul.mubr.bf16.gmra.mrb[12].mxu0 %v3382_v62  ;;  %409 = vmatmul.mubr.bf16.gmra.mrb[12].mxu1 %v3382_v62 }
  0x3b   :  { %666 = vmatpush1.bf16.msra.mxu0 %v3879_v63  ;;  %707 = vmatpush1.bf16.msra.mxu1 %v3884_v0 }
  0x3c   :  { %667 = vmatprep.subr.bf16.mxu0 %v3889_v2  ;;  %708 = vmatprep.subr.bf16.mxu1 %v3898_v3 }
  0x3d   :  { %685 = vmatprep.mubr.bf16.mxu0 %v4490_v1  ;;  %726 = vmatprep.mubr.bf16.mxu1 %v4490_v1 }
  0x3f   :  { %668 = vmatpush1.bf16.msra.mxu0 %v3905_v4  ;;  %709 = vmatpush1.bf16.msra.mxu1 %v3910_v5 }
  0x40   :  { %964 = vmatprep.subr.bf16.mxu0 %v3709_v33  ;;  %1005 = vmatprep.subr.bf16.mxu1 %v3714_v34 }
  0x42   :  { %686 = vmatmul.mubr.bf16.vlgmr.msra.gmra.mrb[16].mxu0 %v3572_v6  ;;  %727 = vmatmul.mubr.bf16.vlgmr.msra.gmra.mrb[16].mxu1 %v3572_v6 }
  0x43   :  { %965 = vmatpush1.bf16.msra.mxu0 %v3722_v36  ;;  %1006 = vmatpush1.bf16.msra.mxu1 %v3727_v37 }
  0x44   :  { %966 = vmatprep.subr.bf16.mxu0 %v3734_v38  ;;  %1007 = vmatprep.subr.bf16.mxu1 %v3739_v39 }
  0x45   :  { %996 = vmatprep.mubr.bf16.mxu0 %v4490_v1  ;;  %1037 = vmatprep.mubr.bf16.mxu1 %v4490_v1 }
  0x47   :  { %967 = vmatpush1.bf16.msra.mxu0 %v3744_v40  ;;  %1008 = vmatpush1.bf16.msra.mxu1 %v3751_v41 }
  0x48   :  { %968 = vmatprep.subr.bf16.mxu0 %v3758_v42  ;;  %1009 = vmatprep.subr.bf16.mxu1 %v3763_v43 }
  0x4b   :  { %969 = vmatpush1.bf16.msra.mxu0 %v3773_v45  ;;  %1010 = vmatpush1.bf16.msra.mxu1 %v3778_v46 }
  0x4c   :  { %970 = vmatprep.subr.bf16.mxu0 %v3785_v47  ;;  %1011 = vmatprep.subr.bf16.mxu1 %v3792_v48 }
  0x4f   :  { %971 = vmatpush1.bf16.msra.mxu0 %v3797_v49  ;;  %1012 = vmatpush1.bf16.msra.mxu1 %v3802_v50 }
  0x50   :  { %972 = vmatprep.subr.bf16.mxu0 %v3809_v51  ;;  %1013 = vmatprep.subr.bf16.mxu1 %v3816_v52 }
  0x53   :  { %973 = vmatpush1.bf16.msra.mxu0 %v3826_v54  ;;  %1014 = vmatpush1.bf16.msra.mxu1 %v3831_v55 }
  0x54   :  { %974 = vmatprep.subr.bf16.mxu0 %v3836_v56  ;;  %1015 = vmatprep.subr.bf16.mxu1 %v3841_v57 }
  0x57   :  { %975 = vmatpush1.bf16.msra.mxu0 %v3850_v58  ;;  %1016 = vmatpush1.bf16.msra.mxu1 %v3855_v59 }
  0x58   :  { %976 = vmatprep.subr.bf16.mxu0 %v3860_v60  ;;  %1017 = vmatprep.subr.bf16.mxu1 %v3865_v61 }
  0x5b   :  { %977 = vmatpush1.bf16.msra.mxu0 %v3879_v63  ;;  %1018 = vmatpush1.bf16.msra.mxu1 %v3884_v0 }
  0x5c   :  { %978 = vmatprep.subr.bf16.mxu0 %v3889_v2  ;;  %1019 = vmatprep.subr.bf16.mxu1 %v3898_v3 }
  0x5f   :  { %979 = vmatpush1.bf16.msra.mxu0 %v3905_v4  ;;  %1020 = vmatpush1.bf16.msra.mxu1 %v3910_v5 }
  0x60   :  { %1276 = vmatprep.subr.bf16.mxu0 %v3709_v33  ;;  %1317 = vmatprep.subr.bf16.mxu1 %v3714_v34 }
  0xf5   :  { %v3959_v15 = vpop.f32.mrb[0].mxu0  ;;  %v3961_v16 = vpop.f32.mrb[0].mxu1 }
  0xf6   :  { %v309_v19 = vpop.f32.mrb[1].mxu0  ;;  %v382_v20 = vpop.f32.mrb[1].mxu1 }
  0xf7   :  { %v311_v22 = vpop.f32.mrb[2].mxu0  ;;  %v384_v23 = vpop.f32.mrb[2].mxu1 }
  0xf8   :  { %v3965_v24 = vadd.f32 %v311_v22, %v72_v18  ;;  %v313_v25 = vpop.f32.mrb[3].mxu0  ;;  %v3968_v26 = vadd.f32 %v384_v23, %v3957_v14  ;;  %v386_v27 = vpop.f32.mrb[3].mxu1 }
  0xf9   :  { %v3970_v28 = vadd.f32 %v313_v25, %v76_v21  ;;  %v3973_v29 = vadd.f32 %v386_v27, %v3963_v17 }
  0xfd   :  { %v317_v30 = vpop.f32.mrb[4].mxu0  ;;  %v390_v31 = vpop.f32.mrb[4].mxu1 }
  0xfe   :  { %v3975_v32 = vadd.f32 %v317_v30, %v72_v18  ;;  %v319_v35 = vpop.f32.mrb[5].mxu0  ;;  %v3978_v44 = vadd.f32 %v390_v31, %v3957_v14  ;;  %v392_v53 = vpop.f32.mrb[5].mxu1 }
  0xff   :  { %v3980_v62 = vadd.f32 %v319_v35, %v76_v21  ;;  %v321_v6 = vpop.f32.mrb[6].mxu0  ;;  %v3983_v7 = vadd.f32 %v392_v53, %v3963_v17  ;;  %v394_v8 = vpop.f32.mrb[6].mxu1 }
 0x100   :  { %v3985_v9 = vadd.f32 %v321_v6, %v72_v18  ;;  %v323_v10 = vpop.f32.mrb[7].mxu0  ;;  %v3988_v11 = vadd.f32 %v394_v8, %v3957_v14  ;;  %v396_v12 = vpop.f32.mrb[7].mxu1 }
 0x101   :  { %4492 = vst [vmem:[#allocation3_spill] sm:$0xff] %v3983_v7  ;;  %v3990_v13 = vadd.f32 %v323_v10, %v76_v21  ;;  %v3993_v22 = vadd.f32 %v396_v12, %v3963_v17 }
 0x102   :  { %4493 = vst [vmem:[#allocation4_spill] sm:$0xff] %v3985_v9  ;;  %4494 = vst [vmem:[#allocation5_spill] sm:$0xff] %v3988_v11 }
 0x103   :  { %4495 = vst [vmem:[#allocation6_spill] sm:$0xff] %v3990_v13  ;;  %4496 = vst [vmem:[#allocation7_spill] sm:$0xff] %v3993_v22 }
 0x105   :  { %v327_v23 = vpop.f32.mrb[8].mxu0  ;;  %v400_v25 = vpop.f32.mrb[8].mxu1 }
 0x106   :  { %v3995_v27 = vadd.f32 %v327_v23, %v72_v18  ;;  %v329_v30 = vpop.f32.mrb[9].mxu0  ;;  %v3998_v31 = vadd.f32 %v400_v25, %v3957_v14  ;;  %v402_v35 = vpop.f32.mrb[9].mxu1 }
 0x107   :  { %v4000_v53 = vadd.f32 %v329_v30, %v76_v21  ;;  %v331_v6 = vpop.f32.mrb[10].mxu0  ;;  %v4003_v8 = vadd.f32 %v402_v35, %v3963_v17  ;;  %v404_v10 = vpop.f32.mrb[10].mxu1 }
 0x108   :  { %4497 = vst [vmem:[#allocation8_spill] sm:$0xff] %v3995_v27  ;;  %4498 = vst [vmem:[#allocation9_spill] sm:$0xff] %v3998_v31  ;;  %v4005_v1 = vadd.f32 %v331_v6, %v72_v18  ;;  %v333_v12 = vpop.f32.mrb[11].mxu0  ;;  %v4008_v22 = vadd.f32 %v404_v10, %v3957_v14  ;;  %v406_v23 = vpop.f32.mrb[11].mxu1 }
 0x109   :  { %4499 = vst [vmem:[#allocation10_spill] sm:$0xff] %v4000_v53  ;;  %4500 = vst [vmem:[#allocation11_spill] sm:$0xff] %v4003_v8  ;;  %v4010_v27 = vadd.f32 %v333_v12, %v76_v21  ;;  %v4013_v25 = vadd.f32 %v406_v23, %v3963_v17 }
 0x10a   :  { %4501 = vst [vmem:[#allocation12_spill] sm:$0xff] %v4005_v1  ;;  %4502 = vst [vmem:[#allocation13_spill] sm:$0xff] %v4008_v22 }
 0x10b   :  { %4503 = vst [vmem:[#allocation14_spill] sm:$0xff] %v4010_v27  ;;  %4504 = vst [vmem:[#allocation15_spill] sm:$0xff] %v4013_v25 }
 0x10d   :  { %v337_v31 = vpop.f32.mrb[12].mxu0  ;;  %v410_v30 = vpop.f32.mrb[12].mxu1 }
 0x10e   :  { %v4015_v53 = vadd.f32 %v337_v31, %v72_v18  ;;  %v339_v13 = vpop.f32.mrb[13].mxu0  ;;  %v4018_v35 = vadd.f32 %v410_v30, %v3957_v14  ;;  %v412_v6 = vpop.f32.mrb[13].mxu1 }
 0x10f   :  { %v4020_v1 = vadd.f32 %v339_v13, %v76_v21  ;;  %v341_v8 = vpop.f32.mrb[14].mxu0  ;;  %v4023_v10 = vadd.f32 %v412_v6, %v3963_v17  ;;  %v414_v12 = vpop.f32.mrb[14].mxu1  ;;  %v308_v13 = vadd.f32 %v3959_v15, %v72_v18  ;;  %v310_v6 = vadd.f32 %v309_v19, %v76_v21 }
 0x110   :  { %4505 = vst [vmem:[#allocation16_spill] sm:$0xff] %v4015_v53  ;;  %4506 = vst [vmem:[#allocation17_spill] sm:$0xff] %v4018_v35  ;;  %v4025_v27 = vadd.f32 %v341_v8, %v72_v18  ;;  %v343_v23 = vpop.f32.mrb[15].mxu0  ;;  %v4028_v25 = vadd.f32 %v414_v12, %v3957_v14  ;;  %v416_v31 = vpop.f32.mrb[15].mxu1 }
 0x111   :  { %4507 = vst [vmem:[#allocation18_spill] sm:$0xff] %v4020_v1  ;;  %4508 = vst [vmem:[#allocation19_spill] sm:$0xff] %v4023_v10  ;;  %v4030_v53 = vadd.f32 %v343_v23, %v76_v21  ;;  %v4033_v30 = vadd.f32 %v416_v31, %v3963_v17  ;;  %v381_v1 = vadd.f32 %v3961_v16, %v3957_v14 }
 0x112   :  { %4509 = vst [vmem:[#allocation20_spill] sm:$0xff] %v4025_v27  ;;  %4510 = vst [vmem:[#allocation21_spill] sm:$0xff] %v4028_v25  ;;  %v383_v10 = vadd.f32 %v382_v20, %v3963_v17 }
 0x113   :  { %4511 = vst [vmem:[#allocation22_spill] sm:$0xff] %v4030_v53  ;;  %4512 = vst [vmem:[#allocation23_spill] sm:$0xff] %v4033_v30 }
 0x115   :  { %v687_v8 = vpop.f32.mrb[16].mxu0  ;;  %v728_v27 = vpop.f32.mrb[16].mxu1 }
 0x116   :  { %v735_v35 = vadd.f32 %v687_v8, %v308_v13  ;;  %v737_v22 = vadd.f32 %v728_v27, %v381_v1  ;;  %v689_v12 = vpop.f32.mrb[17].mxu0  ;;  %v730_v25 = vpop.f32.mrb[17].mxu1 }
 0x117   :  { %v736_v11 = vadd.f32 %v689_v12, %v310_v6  ;;  %v738_v23 = vadd.f32 %v730_v25, %v383_v10  ;;  %v691_v53 = vpop.f32.mrb[18].mxu0  ;;  %v732_v9 = vpop.f32.mrb[18].mxu1 }
 0x118   :  { %v3038_v31 = vmul.f32 -1.442695, %v735_v35  ;;  %v692_v30 = vpop.f32.mrb[19].mxu0  ;;  %v733_v7 = vpop.f32.mrb[19].mxu1 }
 0x119   :  { %v3039_v15 = vmul.f32 -1.442695, %v736_v11  ;;  %v3040_v14 = vmul.f32 -1.442695, %v738_v23 }
 0x11a   :  { %3443 = vpow2.f32 %v3038_v31 }
 0x11b   :  { %3445 = vpow2.f32 %v3039_v15 }
 0x11c   :  { %3447 = vpow2.f32 %v3040_v14 }
 0x11d   :  { %3449 = vtanh.f32 %v737_v22  ;;  %v4513_v22 = vmov 0  }
 0x124   :  { %v3444_v16 = vpop.eup %3443 }
 0x125   :  { %v3446_v18 = vpop.eup %3445  ;;  %v745_v17 = vadd.f32 1.0, %v3444_v16 }
 0x126   :  { %v746_v19 = vadd.f32 1.0, %v3446_v18  ;;  %v3448_v1 = vpop.eup %3447 }
 0x127   :  { %3451 = vrcp.f32 %v745_v17  ;;  %v3450_v20 = vpop.eup %3449  ;;  %v755_v53 = vadd.f32 1.0, %v3448_v1 }
 0x128   :  { %3453 = vrcp.f32 %v746_v19 }
 0x129   :  { %3455 = vrcp.f32 %v755_v53 }
 0x131   :  { %v3452_v21 = vpop.eup %3451 }
 0x132   :  { %v3454_v27 = vpop.eup %3453  ;;  %v759_v9 = vmul.f32 %v3452_v21, %v3450_v20 }
 0x133   :  { %v758_v25 = vmul.f32 0.0, %v3454_v27  ;;  %v3456_v11 = vpop.eup %3455 }
 0x135   :  { %v4039_v7 = vadd.f32 %v759_v9, %v758_v25 }
 0x137   :  { %3457 = vtanh.f32 %v4039_v7 }
 0x141   :  { %v3458_v35 = vpop.eup %3457 }
 0x142   :  { %v762_v10 = vmul.f32 %v3458_v35, %v3456_v11 }
 0x144   :  { %v763_v30 = vpack.c.bf16 %v762_v10, %v762_v10 }
 0x146   :  { %764 = vst [vmem:[%s4487_s4] sm:$0xf] %v763_v30  ;;  %997 = vmatmul.mubr.bf16.vlgmr.msra.gmra.mrb[20].mxu0 %v763_v30  ;;  %1038 = vmatmul.mubr.bf16.vlgmr.msra.gmra.mrb[20].mxu1 %v763_v30 }
 0x147   :  { %1277 = vmatpush1.bf16.msra.mxu0 %v3722_v36  ;;  %1318 = vmatpush1.bf16.msra.mxu1 %v3727_v37 }
 0x148   :  { %1278 = vmatprep.subr.bf16.mxu0 %v3734_v38  ;;  %1319 = vmatprep.subr.bf16.mxu1 %v3739_v39 }
 0x149   :  { %1308 = vmatprep.mubr.bf16.mxu0 %v4513_v22  ;;  %1349 = vmatprep.mubr.bf16.mxu1 %v4513_v22 }
 0x14b   :  { %1279 = vmatpush1.bf16.msra.mxu0 %v3744_v40  ;;  %1320 = vmatpush1.bf16.msra.mxu1 %v3751_v41 }
 0x14c   :  { %1280 = vmatprep.subr.bf16.mxu0 %v3758_v42  ;;  %1321 = vmatprep.subr.bf16.mxu1 %v3763_v43 }
 0x14f   :  { %1281 = vmatpush1.bf16.msra.mxu0 %v3773_v45  ;;  %1322 = vmatpush1.bf16.msra.mxu1 %v3778_v46 }
 0x150   :  { %1282 = vmatprep.subr.bf16.mxu0 %v3785_v47  ;;  %1323 = vmatprep.subr.bf16.mxu1 %v3792_v48 }
 0x153   :  { %1283 = vmatpush1.bf16.msra.mxu0 %v3797_v49  ;;  %1324 = vmatpush1.bf16.msra.mxu1 %v3802_v50 }
 0x154   :  { %1284 = vmatprep.subr.bf16.mxu0 %v3809_v51  ;;  %1325 = vmatprep.subr.bf16.mxu1 %v3816_v52 }
 0x157   :  { %1285 = vmatpush1.bf16.msra.mxu0 %v3826_v54  ;;  %1326 = vmatpush1.bf16.msra.mxu1 %v3831_v55 }
 0x158   :  { %1286 = vmatprep.subr.bf16.mxu0 %v3836_v56  ;;  %1327 = vmatprep.subr.bf16.mxu1 %v3841_v57 }
 0x15b   :  { %1287 = vmatpush1.bf16.msra.mxu0 %v3850_v58  ;;  %1328 = vmatpush1.bf16.msra.mxu1 %v3855_v59 }
 0x15c   :  { %1288 = vmatprep.subr.bf16.mxu0 %v3860_v60  ;;  %1329 = vmatprep.subr.bf16.mxu1 %v3865_v61 }
 0x15f   :  { %1289 = vmatpush1.bf16.msra.mxu0 %v3879_v63  ;;  %1330 = vmatpush1.bf16.msra.mxu1 %v3884_v0 }
 0x160   :  { %1290 = vmatprep.subr.bf16.mxu0 %v3889_v2  ;;  %1331 = vmatprep.subr.bf16.mxu1 %v3898_v3 }
 0x163   :  { %1291 = vmatpush1.bf16.msra.mxu0 %v3905_v4  ;;  %1332 = vmatpush1.bf16.msra.mxu1 %v3910_v5 }
 0x164   :  { %1588 = vmatprep.subr.bf16.mxu0 %v3709_v33  ;;  %1629 = vmatprep.subr.bf16.mxu1 %v3714_v34 }
 0x219   :  { %v998_v13 = vpop.f32.mrb[20].mxu0  ;;  %v1039_v6 = vpop.f32.mrb[20].mxu1 }
 0x21a   :  { %v1046_v8 = vadd.f32 %v998_v13, %v3965_v24  ;;  %v1048_v12 = vadd.f32 %v1039_v6, %v3968_v26  ;;  %v1000_v23 = vpop.f32.mrb[21].mxu0  ;;  %v1041_v31 = vpop.f32.mrb[21].mxu1 }
 0x21b   :  { %v1047_v15 = vadd.f32 %v1000_v23, %v3970_v28  ;;  %v1049_v14 = vadd.f32 %v1041_v31, %v3973_v29  ;;  %v1002_v16 = vpop.f32.mrb[22].mxu0  ;;  %v1043_v18 = vpop.f32.mrb[22].mxu1  ;;  %v4162_v23 = vld [vmem:[%s4485_s2 + $0x24] ss:$16 sps:$4 sm:$0xff]   ;;  %v4167_v31 = vld [vmem:[%s4485_s2 + $0x2c] ss:$16 sps:$4 sm:$0xff]  }
 0x21c   :  { %v3073_v17 = vmul.f32 -1.442695, %v1046_v8  ;;  %v1003_v19 = vpop.f32.mrb[23].mxu0  ;;  %v1044_v1 = vpop.f32.mrb[23].mxu1  ;;  %v4148_v8 = vld [vmem:[%s4485_s2] ss:$16 sps:$4 sm:$0xff]  }
 0x21d   :  { %v3074_v33 = vmul.f32 -1.442695, %v1047_v15  ;;  %v3075_v34 = vmul.f32 -1.442695, %v1049_v14  ;;  %v4172_v15 = vld [vmem:[%s4485_s2 + $0x20] ss:$16 sps:$4 sm:$0xff]  }
 0x21e   :  { %3459 = vpow2.f32 %v3073_v17  ;;  %v4177_v14 = vld [vmem:[%s4485_s2 + $0x28] ss:$16 sps:$4 sm:$0xff]   ;;  %v4186_v16 = vld [vmem:[%s4485_s2 + $0x44] ss:$16 sps:$4 sm:$0xff]   ;;  %v4191_v18 = vld [vmem:[%s4485_s2 + $0x4c] ss:$16 sps:$4 sm:$0xff]  }
 0x21f   :  { %3461 = vpow2.f32 %v3074_v33  ;;  %v4196_v17 = vld [vmem:[%s4485_s2 + $0x40] ss:$16 sps:$4 sm:$0xff]   ;;  %v4201_v19 = vld [vmem:[%s4485_s2 + $0x48] ss:$16 sps:$4 sm:$0xff]   ;;  %v4210_v1 = vld [vmem:[%s4485_s2 + $0x64] ss:$16 sps:$4 sm:$0xff]  }
 0x220   :  { %3463 = vpow2.f32 %v3075_v34  ;;  %v4215_v33 = vld [vmem:[%s4485_s2 + $0x6c] ss:$16 sps:$4 sm:$0xff]   ;;  %v4220_v34 = vld [vmem:[%s4485_s2 + $0x60] ss:$16 sps:$4 sm:$0xff]  }
 0x221   :  { %3465 = vtanh.f32 %v1048_v12  ;;  %v4153_v12 = vld [vmem:[%s4485_s2 + $0x8] ss:$16 sps:$4 sm:$0xff]  }
 0x228   :  { %v3460_v20 = vpop.eup %3459 }
 0x229   :  { %v3462_v21 = vpop.eup %3461  ;;  %v1056_v24 = vadd.f32 1.0, %v3460_v20  ;;  %v4225_v20 = vld [vmem:[%s4485_s2 + $0x68] ss:$16 sps:$4 sm:$0xff]  }
 0x22a   :  { %v1057_v26 = vadd.f32 1.0, %v3462_v21  ;;  %v3464_v28 = vpop.eup %3463  ;;  %v4234_v21 = vld [vmem:[%s4485_s2 + $0x80] ss:$16 sps:$4 sm:$0xff]  }
 0x22b   :  { %3467 = vrcp.f32 %v1056_v24  ;;  %v3466_v27 = vpop.eup %3465  ;;  %v1066_v25 = vadd.f32 1.0, %v3464_v28  ;;  %v4239_v24 = vld [vmem:[%s4485_s2 + $0x84] ss:$16 sps:$4 sm:$0xff]   ;;  %v4249_v28 = vld [vmem:[%s4485_s2 + $0x8c] ss:$16 sps:$4 sm:$0xff]  }
 0x22c   :  { %3469 = vrcp.f32 %v1057_v26  ;;  %v4244_v26 = vld [vmem:[%s4485_s2 + $0x88] ss:$16 sps:$4 sm:$0xff]  }
 0x22d   :  { %3471 = vrcp.f32 %v1066_v25  ;;  %v4279_v25 = vld [vmem:[%s4485_s2 + $0xc4] ss:$16 sps:$4 sm:$0xff]  }
 0x235   :  { %v3468_v29 = vpop.eup %3467 }
 0x236   :  { %v3470_v9 = vpop.eup %3469  ;;  %v1070_v53 = vmul.f32 %v3468_v29, %v3466_v27  ;;  %v4254_v27 = vld [vmem:[%s4485_s2 + $0xa4] ss:$16 sps:$4 sm:$0xff]   ;;  %v4260_v29 = vld [vmem:[%s4485_s2 + $0xac] ss:$16 sps:$4 sm:$0xff]  }
 0x237   :  { %v1069_v11 = vmul.f32 %v3470_v9, %v4039_v7  ;;  %v3472_v10 = vpop.eup %3471  ;;  %v4143_v7 = vld [vmem:[%s4485_s2 + $0xc] ss:$16 sps:$4 sm:$0xff]   ;;  %v4267_v9 = vld [vmem:[%s4485_s2 + $0xa0] ss:$16 sps:$4 sm:$0xff]  }
 0x239   :  { %v4084_v35 = vadd.f32 %v1070_v53, %v1069_v11  ;;  %v4274_v53 = vld [vmem:[%s4485_s2 + $0xa8] ss:$16 sps:$4 sm:$0xff]   ;;  %v4285_v11 = vld [vmem:[%s4485_s2 + $0xcc] ss:$16 sps:$4 sm:$0xff]  }
 0x23b   :  { %3473 = vtanh.f32 %v4084_v35 }
 0x245   :  { %v3474_v30 = vpop.eup %3473 }
 0x246   :  { %v1073_v13 = vmul.f32 %v3474_v30, %v3472_v10  ;;  %v4298_v10 = vld [vmem:[%s4485_s2 + $0xc8] ss:$16 sps:$4 sm:$0xff]   ;;  %v4303_v30 = vld [vmem:[%s4485_s2 + $0xe4] ss:$16 sps:$4 sm:$0xff]  }
 0x248   :  { %v1074_v6 = vpack.c.bf16 %v1073_v13, %v1073_v13  ;;  %v4309_v13 = vld [vmem:[%s4485_s2 + $0xec] ss:$16 sps:$4 sm:$0xff]  }
 0x24a   :  { %3076 = vst [vmem:[%s4487_s4 + $0x4] sm:$0xf] %v1074_v6  ;;  %1309 = vmatmul.mubr.bf16.vlgmr.msra.gmra.mrb[24].mxu0 %v1074_v6  ;;  %1350 = vmatmul.mubr.bf16.vlgmr.msra.gmra.mrb[24].mxu1 %v1074_v6  ;;  %v4315_v6 = vld [vmem:[%s4485_s2 + $0xe0] ss:$16 sps:$4 sm:$0xff]  }
 0x24b   :  { %1589 = vmatpush1.bf16.msra.mxu0 %v3722_v36  ;;  %1630 = vmatpush1.bf16.msra.mxu1 %v3727_v37 }
 0x24c   :  { %1590 = vmatprep.subr.bf16.mxu0 %v3734_v38  ;;  %1631 = vmatprep.subr.bf16.mxu1 %v3739_v39 }
 0x24d   :  { %1620 = vmatprep.mubr.bf16.mxu0 %v4513_v22  ;;  %1661 = vmatprep.mubr.bf16.mxu1 %v4513_v22 }
 0x24f   :  { %1591 = vmatpush1.bf16.msra.mxu0 %v3744_v40  ;;  %1632 = vmatpush1.bf16.msra.mxu1 %v3751_v41 }
 0x250   :  { %1592 = vmatprep.subr.bf16.mxu0 %v3758_v42  ;;  %1633 = vmatprep.subr.bf16.mxu1 %v3763_v43  ;;  %v4514_v43 = vld [vmem:[#allocation3_spill] sm:$0xff] }
 0x253   :  { %1593 = vmatpush1.bf16.msra.mxu0 %v3773_v45  ;;  %1634 = vmatpush1.bf16.msra.mxu1 %v3778_v46 }
 0x254   :  { %1594 = vmatprep.subr.bf16.mxu0 %v3785_v47  ;;  %1635 = vmatprep.subr.bf16.mxu1 %v3792_v48 }
 0x257   :  { %1595 = vmatpush1.bf16.msra.mxu0 %v3797_v49  ;;  %1636 = vmatpush1.bf16.msra.mxu1 %v3802_v50 }
 0x258   :  { %1596 = vmatprep.subr.bf16.mxu0 %v3809_v51  ;;  %1637 = vmatprep.subr.bf16.mxu1 %v3816_v52 }
 0x25b   :  { %1597 = vmatpush1.bf16.msra.mxu0 %v3826_v54  ;;  %1638 = vmatpush1.bf16.msra.mxu1 %v3831_v55 }
 0x25c   :  { %1598 = vmatprep.subr.bf16.mxu0 %v3836_v56  ;;  %1639 = vmatprep.subr.bf16.mxu1 %v3841_v57 }
 0x25f   :  { %1599 = vmatpush1.bf16.msra.mxu0 %v3850_v58  ;;  %1640 = vmatpush1.bf16.msra.mxu1 %v3855_v59 }
 0x260   :  { %1600 = vmatprep.subr.bf16.mxu0 %v3860_v60  ;;  %1641 = vmatprep.subr.bf16.mxu1 %v3865_v61 }
 0x263   :  { %1601 = vmatpush1.bf16.msra.mxu0 %v3879_v63  ;;  %1642 = vmatpush1.bf16.msra.mxu1 %v3884_v0 }
 0x264   :  { %1602 = vmatprep.subr.bf16.mxu0 %v3889_v2  ;;  %1643 = vmatprep.subr.bf16.mxu1 %v3898_v3 }
 0x267   :  { %1603 = vmatpush1.bf16.msra.mxu0 %v3905_v4  ;;  %1644 = vmatpush1.bf16.msra.mxu1 %v3910_v5 }
 0x268   :  { %1941 = vmatprep.subr.bf16.mxu1 %v4143_v7 }
 0x31d   :  { %v1310_v36 = vpop.f32.mrb[24].mxu0  ;;  %v1351_v37 = vpop.f32.mrb[24].mxu1 }
 0x31e   :  { %v1358_v38 = vadd.f32 %v1310_v36, %v3975_v32  ;;  %v1360_v39 = vadd.f32 %v1351_v37, %v3978_v44  ;;  %v1312_v40 = vpop.f32.mrb[25].mxu0  ;;  %v1353_v41 = vpop.f32.mrb[25].mxu1  ;;  %v4322_v36 = vld [vmem:[%s4485_s2 + $0xe8] ss:$16 sps:$4 sm:$0xff]  }
 0x31f   :  { %v1359_v42 = vadd.f32 %v1312_v40, %v3980_v62  ;;  %v1361_v45 = vadd.f32 %v1353_v41, %v4514_v43  ;;  %v1314_v46 = vpop.f32.mrb[26].mxu0  ;;  %v1355_v47 = vpop.f32.mrb[26].mxu1  ;;  %v4138_v62 = vld [vmem:[%s4485_s2 + $0x4] ss:$16 sps:$4 sm:$0xff]  }
 0x320   :  { %v3109_v48 = vmul.f32 -1.442695, %v1358_v38  ;;  %v1315_v49 = vpop.f32.mrb[27].mxu0  ;;  %v1356_v50 = vpop.f32.mrb[27].mxu1  ;;  %1900 = vmatprep.subr.bf16.mxu0 %v4138_v62  ;;  %v4516_v41 = vld [vmem:[#allocation5_spill] sm:$0xff]  ;;  %v4517_v46 = vld [vmem:[#allocation6_spill] sm:$0xff] }
 0x321   :  { %v3110_v51 = vmul.f32 -1.442695, %v1359_v42  ;;  %v3111_v52 = vmul.f32 -1.442695, %v1361_v45 }
 0x322   :  { %3475 = vpow2.f32 %v3109_v48  ;;  %v4518_v48 = vld [vmem:[#allocation7_spill] sm:$0xff] }
 0x323   :  { %3477 = vpow2.f32 %v3110_v51 }
 0x324   :  { %3479 = vpow2.f32 %v3111_v52 }
 0x325   :  { %3481 = vtanh.f32 %v1360_v39  ;;  %v4515_v39 = vld [vmem:[#allocation4_spill] sm:$0xff] }
 0x32c   :  { %v3476_v54 = vpop.eup %3475 }
 0x32d   :  { %v3478_v55 = vpop.eup %3477  ;;  %v1368_v56 = vadd.f32 1.0, %v3476_v54 }
 0x32e   :  { %v1369_v57 = vadd.f32 1.0, %v3478_v55  ;;  %v3480_v58 = vpop.eup %3479 }
 0x32f   :  { %3483 = vrcp.f32 %v1368_v56  ;;  %v3482_v59 = vpop.eup %3481  ;;  %v1378_v0 = vadd.f32 1.0, %v3480_v58 }
 0x330   :  { %3485 = vrcp.f32 %v1369_v57 }
 0x331   :  { %3487 = vrcp.f32 %v1378_v0 }
 0x339   :  { %v3484_v60 = vpop.eup %3483 }
 0x33a   :  { %v3486_v61 = vpop.eup %3485  ;;  %v1382_v63 = vmul.f32 %v3484_v60, %v3482_v59 }
 0x33b   :  { %v1381_v2 = vmul.f32 %v3486_v61, %v4084_v35  ;;  %v3488_v4 = vpop.eup %3487  ;;  %v4291_v35 = vld [vmem:[%s4485_s2 + $0xc0] ss:$16 sps:$4 sm:$0xff]  }
 0x33d   :  { %v4127_v3 = vadd.f32 %v1382_v63, %v1381_v2 }
 0x33f   :  { %3489 = vtanh.f32 %v4127_v3 }
 0x349   :  { %v3490_v5 = vpop.eup %3489 }
 0x34a   :  { %v1385_v32 = vmul.f32 %v3490_v5, %v3488_v4 }
 0x34c   :  { %v1386_v44 = vpack.c.bf16 %v1385_v32, %v1385_v32 }
 0x34e   :  { %3112 = vst [vmem:[%s4487_s4 + $0x8] sm:$0xf] %v1386_v44  ;;  %1621 = vmatmul.mubr.bf16.vlgmr.msra.gmra.mrb[28].mxu0 %v1386_v44  ;;  %1662 = vmatmul.mubr.bf16.vlgmr.msra.gmra.mrb[28].mxu1 %v1386_v44 }
 0x34f   :  { %1932 = vmatprep.mubr.bf16.mxu0 %v4513_v22  ;;  %1973 = vmatprep.mubr.bf16.mxu1 %v4513_v22 }
 0x350   :  { %1901 = vmatpush1.bf16.msra.mxu0 %v4148_v8  ;;  %1942 = vmatpush1.bf16.msra.mxu1 %v4153_v12 }
 0x351   :  { %1902 = vmatprep.subr.bf16.mxu0 %v4162_v23  ;;  %1943 = vmatprep.subr.bf16.mxu1 %v4167_v31 }
 0x354   :  { %1903 = vmatpush1.bf16.msra.mxu0 %v4172_v15  ;;  %1944 = vmatpush1.bf16.msra.mxu1 %v4177_v14 }
 0x355   :  { %1904 = vmatprep.subr.bf16.mxu0 %v4186_v16  ;;  %1945 = vmatprep.subr.bf16.mxu1 %v4191_v18 }
 0x358   :  { %1905 = vmatpush1.bf16.msra.mxu0 %v4196_v17  ;;  %1946 = vmatpush1.bf16.msra.mxu1 %v4201_v19 }
 0x359   :  { %1906 = vmatprep.subr.bf16.mxu0 %v4210_v1  ;;  %1947 = vmatprep.subr.bf16.mxu1 %v4215_v33 }
 0x35c   :  { %1907 = vmatpush1.bf16.msra.mxu0 %v4220_v34  ;;  %1948 = vmatpush1.bf16.msra.mxu1 %v4225_v20 }
 0x35d   :  { %1908 = vmatprep.subr.bf16.mxu0 %v4239_v24  ;;  %1949 = vmatprep.subr.bf16.mxu1 %v4249_v28 }
 0x360   :  { %1909 = vmatpush1.bf16.msra.mxu0 %v4234_v21  ;;  %1950 = vmatpush1.bf16.msra.mxu1 %v4244_v26 }
 0x361   :  { %1910 = vmatprep.subr.bf16.mxu0 %v4254_v27  ;;  %1951 = vmatprep.subr.bf16.mxu1 %v4260_v29 }
 0x364   :  { %1911 = vmatpush1.bf16.msra.mxu0 %v4267_v9  ;;  %1952 = vmatpush1.bf16.msra.mxu1 %v4274_v53 }
 0x365   :  { %1912 = vmatprep.subr.bf16.mxu0 %v4279_v25  ;;  %1953 = vmatprep.subr.bf16.mxu1 %v4285_v11 }
 0x368   :  { %1913 = vmatpush1.bf16.msra.mxu0 %v4291_v35  ;;  %1954 = vmatpush1.bf16.msra.mxu1 %v4298_v10 }
 0x369   :  { %1914 = vmatprep.subr.bf16.mxu0 %v4303_v30  ;;  %1955 = vmatprep.subr.bf16.mxu1 %v4309_v13 }
 0x36c   :  { %1915 = vmatpush1.bf16.msra.mxu0 %v4315_v6  ;;  %1956 = vmatpush1.bf16.msra.mxu1 %v4322_v36 }
 0x36d   :  { %2212 = vmatprep.subr.bf16.mxu0 %v4138_v62  ;;  %2253 = vmatprep.subr.bf16.mxu1 %v4143_v7 }
 0x421   :  { %v1622_v37 = vpop.f32.mrb[28].mxu0  ;;  %v1663_v38 = vpop.f32.mrb[28].mxu1 }
 0x422   :  { %v1670_v40 = vadd.f32 %v1622_v37, %v4515_v39  ;;  %v1672_v42 = vadd.f32 %v1663_v38, %v4516_v41  ;;  %v1624_v43 = vpop.f32.mrb[29].mxu0  ;;  %v1665_v45 = vpop.f32.mrb[29].mxu1 }
 0x423   :  { %v1671_v47 = vadd.f32 %v1624_v43, %v4517_v46  ;;  %v1673_v49 = vadd.f32 %v1665_v45, %v4518_v48  ;;  %v1626_v50 = vpop.f32.mrb[30].mxu0  ;;  %v1667_v51 = vpop.f32.mrb[30].mxu1  ;;  %v4519_v43 = vld [vmem:[#allocation8_spill] sm:$0xff]  ;;  %v4520_v46 = vld [vmem:[#allocation9_spill] sm:$0xff] }
 0x424   :  { %v3145_v52 = vmul.f32 -1.442695, %v1670_v40  ;;  %v1627_v54 = vpop.f32.mrb[31].mxu0  ;;  %v1668_v55 = vpop.f32.mrb[31].mxu1  ;;  %v4521_v50 = vld [vmem:[#allocation10_spill] sm:$0xff] }
 0x425   :  { %v3146_v56 = vmul.f32 -1.442695, %v1671_v47  ;;  %v3147_v57 = vmul.f32 -1.442695, %v1673_v49 }
 0x426   :  { %3491 = vpow2.f32 %v3145_v52  ;;  %v4522_v52 = vld [vmem:[#allocation11_spill] sm:$0xff] }
 0x427   :  { %3493 = vpow2.f32 %v3146_v56 }
 0x428   :  { %3495 = vpow2.f32 %v3147_v57 }
 0x429   :  { %3497 = vtanh.f32 %v1672_v42 }
 0x430   :  { %v3492_v58 = vpop.eup %3491 }
 0x431   :  { %v3494_v59 = vpop.eup %3493  ;;  %v1680_v60 = vadd.f32 1.0, %v3492_v58 }
 0x432   :  { %v1681_v61 = vadd.f32 1.0, %v3494_v59  ;;  %v3496_v63 = vpop.eup %3495 }
 0x433   :  { %3499 = vrcp.f32 %v1680_v60  ;;  %v3498_v0 = vpop.eup %3497  ;;  %v1690_v32 = vadd.f32 1.0, %v3496_v63 }
 0x434   :  { %3501 = vrcp.f32 %v1681_v61 }
 0x435   :  { %3503 = vrcp.f32 %v1690_v32 }
 0x43d   :  { %v3500_v2 = vpop.eup %3499 }
 0x43e   :  { %v3502_v4 = vpop.eup %3501  ;;  %v1694_v5 = vmul.f32 %v3500_v2, %v3498_v0 }
 0x43f   :  { %v1693_v44 = vmul.f32 %v3502_v4, %v4127_v3  ;;  %v3504_v38 = vpop.eup %3503 }
 0x441   :  { %v4334_v37 = vadd.f32 %v1694_v5, %v1693_v44 }
 0x443   :  { %3505 = vtanh.f32 %v4334_v37 }
 0x44d   :  { %v3506_v39 = vpop.eup %3505 }
 0x44e   :  { %v1697_v40 = vmul.f32 %v3506_v39, %v3504_v38 }
 0x450   :  { %v1698_v41 = vpack.c.bf16 %v1697_v40, %v1697_v40 }
 0x452   :  { %3148 = vst [vmem:[%s4487_s4 + $0xc] sm:$0xf] %v1698_v41  ;;  %1933 = vmatmul.mubr.bf16.vlgmr.msra.gmra.mrb[32].mxu0 %v1698_v41  ;;  %1974 = vmatmul.mubr.bf16.vlgmr.msra.gmra.mrb[32].mxu1 %v1698_v41 }
 0x453   :  { %2213 = vmatpush1.bf16.msra.mxu0 %v4148_v8  ;;  %2254 = vmatpush1.bf16.msra.mxu1 %v4153_v12 }
 0x454   :  { %2214 = vmatprep.subr.bf16.mxu0 %v4162_v23  ;;  %2255 = vmatprep.subr.bf16.mxu1 %v4167_v31 }
 0x455   :  { %2244 = vmatprep.mubr.bf16.mxu0 %v4513_v22  ;;  %2285 = vmatprep.mubr.bf16.mxu1 %v4513_v22 }
 0x457   :  { %2215 = vmatpush1.bf16.msra.mxu0 %v4172_v15  ;;  %2256 = vmatpush1.bf16.msra.mxu1 %v4177_v14 }
 0x458   :  { %2216 = vmatprep.subr.bf16.mxu0 %v4186_v16  ;;  %2257 = vmatprep.subr.bf16.mxu1 %v4191_v18 }
 0x45b   :  { %2217 = vmatpush1.bf16.msra.mxu0 %v4196_v17  ;;  %2258 = vmatpush1.bf16.msra.mxu1 %v4201_v19 }
 0x45c   :  { %2218 = vmatprep.subr.bf16.mxu0 %v4210_v1  ;;  %2259 = vmatprep.subr.bf16.mxu1 %v4215_v33 }
 0x45f   :  { %2219 = vmatpush1.bf16.msra.mxu0 %v4220_v34  ;;  %2260 = vmatpush1.bf16.msra.mxu1 %v4225_v20 }
 0x460   :  { %2220 = vmatprep.subr.bf16.mxu0 %v4239_v24  ;;  %2261 = vmatprep.subr.bf16.mxu1 %v4249_v28 }
 0x463   :  { %2221 = vmatpush1.bf16.msra.mxu0 %v4234_v21  ;;  %2262 = vmatpush1.bf16.msra.mxu1 %v4244_v26 }
 0x464   :  { %2222 = vmatprep.subr.bf16.mxu0 %v4254_v27  ;;  %2263 = vmatprep.subr.bf16.mxu1 %v4260_v29 }
 0x467   :  { %2223 = vmatpush1.bf16.msra.mxu0 %v4267_v9  ;;  %2264 = vmatpush1.bf16.msra.mxu1 %v4274_v53 }
 0x468   :  { %2224 = vmatprep.subr.bf16.mxu0 %v4279_v25  ;;  %2265 = vmatprep.subr.bf16.mxu1 %v4285_v11 }
 0x46b   :  { %2225 = vmatpush1.bf16.msra.mxu0 %v4291_v35  ;;  %2266 = vmatpush1.bf16.msra.mxu1 %v4298_v10 }
 0x46c   :  { %2226 = vmatprep.subr.bf16.mxu0 %v4303_v30  ;;  %2267 = vmatprep.subr.bf16.mxu1 %v4309_v13 }
 0x46f   :  { %2227 = vmatpush1.bf16.msra.mxu0 %v4315_v6  ;;  %2268 = vmatpush1.bf16.msra.mxu1 %v4322_v36 }
 0x470   :  { %2524 = vmatprep.subr.bf16.mxu0 %v4138_v62  ;;  %2565 = vmatprep.subr.bf16.mxu1 %v4143_v7 }
 0x525   :  { %v1934_v3 = vpop.f32.mrb[32].mxu0  ;;  %v1975_v42 = vpop.f32.mrb[32].mxu1 }
 0x526   :  { %v1982_v45 = vadd.f32 %v1934_v3, %v4519_v43  ;;  %v1984_v47 = vadd.f32 %v1975_v42, %v4520_v46  ;;  %v1936_v48 = vpop.f32.mrb[33].mxu0  ;;  %v1977_v49 = vpop.f32.mrb[33].mxu1 }
 0x527   :  { %v1983_v51 = vadd.f32 %v1936_v48, %v4521_v50  ;;  %v1985_v54 = vadd.f32 %v1977_v49, %v4522_v52  ;;  %v1938_v55 = vpop.f32.mrb[34].mxu0  ;;  %v1979_v56 = vpop.f32.mrb[34].mxu1  ;;  %v4523_v48 = vld [vmem:[#allocation12_spill] sm:$0xff]  ;;  %v4524_v50 = vld [vmem:[#allocation13_spill] sm:$0xff] }
 0x528   :  { %v3181_v57 = vmul.f32 -1.442695, %v1982_v45  ;;  %v1939_v58 = vpop.f32.mrb[35].mxu0  ;;  %v1980_v59 = vpop.f32.mrb[35].mxu1  ;;  %v4525_v55 = vld [vmem:[#allocation14_spill] sm:$0xff] }
 0x529   :  { %v3182_v60 = vmul.f32 -1.442695, %v1983_v51  ;;  %v3183_v61 = vmul.f32 -1.442695, %v1985_v54 }
 0x52a   :  { %3507 = vpow2.f32 %v3181_v57  ;;  %v4526_v57 = vld [vmem:[#allocation15_spill] sm:$0xff] }
 0x52b   :  { %3509 = vpow2.f32 %v3182_v60 }
 0x52c   :  { %3511 = vpow2.f32 %v3183_v61 }
 0x52d   :  { %3513 = vtanh.f32 %v1984_v47 }
 0x534   :  { %v3508_v63 = vpop.eup %3507 }
 0x535   :  { %v3510_v0 = vpop.eup %3509  ;;  %v1992_v2 = vadd.f32 1.0, %v3508_v63 }
 0x536   :  { %v1993_v4 = vadd.f32 1.0, %v3510_v0  ;;  %v3512_v5 = vpop.eup %3511 }
 0x537   :  { %3515 = vrcp.f32 %v1992_v2  ;;  %v3514_v32 = vpop.eup %3513  ;;  %v2002_v40 = vadd.f32 1.0, %v3512_v5 }
 0x538   :  { %3517 = vrcp.f32 %v1993_v4 }
 0x539   :  { %3519 = vrcp.f32 %v2002_v40 }
 0x541   :  { %v3516_v44 = vpop.eup %3515 }
 0x542   :  { %v3518_v38 = vpop.eup %3517  ;;  %v2006_v39 = vmul.f32 %v3516_v44, %v3514_v32 }
 0x543   :  { %v2005_v41 = vmul.f32 %v3518_v38, %v4334_v37  ;;  %v3520_v42 = vpop.eup %3519 }
 0x545   :  { %v4379_v3 = vadd.f32 %v2006_v39, %v2005_v41 }
 0x547   :  { %3521 = vtanh.f32 %v4379_v3 }
 0x551   :  { %v3522_v43 = vpop.eup %3521 }
 0x552   :  { %v2009_v45 = vmul.f32 %v3522_v43, %v3520_v42 }
 0x554   :  { %v2010_v46 = vpack.c.bf16 %v2009_v45, %v2009_v45 }
 0x556   :  { %3184 = vst [vmem:[%s4487_s4 + $0x10] sm:$0xf] %v2010_v46  ;;  %2245 = vmatmul.mubr.bf16.vlgmr.msra.gmra.mrb[36].mxu0 %v2010_v46  ;;  %2286 = vmatmul.mubr.bf16.vlgmr.msra.gmra.mrb[36].mxu1 %v2010_v46 }
 0x557   :  { %2525 = vmatpush1.bf16.msra.mxu0 %v4148_v8  ;;  %2566 = vmatpush1.bf16.msra.mxu1 %v4153_v12 }
 0x558   :  { %2526 = vmatprep.subr.bf16.mxu0 %v4162_v23  ;;  %2567 = vmatprep.subr.bf16.mxu1 %v4167_v31 }
 0x559   :  { %2556 = vmatprep.mubr.bf16.mxu0 %v4513_v22  ;;  %2597 = vmatprep.mubr.bf16.mxu1 %v4513_v22 }
 0x55b   :  { %2527 = vmatpush1.bf16.msra.mxu0 %v4172_v15  ;;  %2568 = vmatpush1.bf16.msra.mxu1 %v4177_v14 }
 0x55c   :  { %2528 = vmatprep.subr.bf16.mxu0 %v4186_v16  ;;  %2569 = vmatprep.subr.bf16.mxu1 %v4191_v18 }
 0x55f   :  { %2529 = vmatpush1.bf16.msra.mxu0 %v4196_v17  ;;  %2570 = vmatpush1.bf16.msra.mxu1 %v4201_v19 }
 0x560   :  { %2530 = vmatprep.subr.bf16.mxu0 %v4210_v1  ;;  %2571 = vmatprep.subr.bf16.mxu1 %v4215_v33 }
 0x563   :  { %2531 = vmatpush1.bf16.msra.mxu0 %v4220_v34  ;;  %2572 = vmatpush1.bf16.msra.mxu1 %v4225_v20 }
 0x564   :  { %2532 = vmatprep.subr.bf16.mxu0 %v4239_v24  ;;  %2573 = vmatprep.subr.bf16.mxu1 %v4249_v28 }
 0x567   :  { %2533 = vmatpush1.bf16.msra.mxu0 %v4234_v21  ;;  %2574 = vmatpush1.bf16.msra.mxu1 %v4244_v26 }
 0x568   :  { %2534 = vmatprep.subr.bf16.mxu0 %v4254_v27  ;;  %2575 = vmatprep.subr.bf16.mxu1 %v4260_v29 }
 0x56b   :  { %2535 = vmatpush1.bf16.msra.mxu0 %v4267_v9  ;;  %2576 = vmatpush1.bf16.msra.mxu1 %v4274_v53 }
 0x56c   :  { %2536 = vmatprep.subr.bf16.mxu0 %v4279_v25  ;;  %2577 = vmatprep.subr.bf16.mxu1 %v4285_v11 }
 0x56f   :  { %2537 = vmatpush1.bf16.msra.mxu0 %v4291_v35  ;;  %2578 = vmatpush1.bf16.msra.mxu1 %v4298_v10 }
 0x570   :  { %2538 = vmatprep.subr.bf16.mxu0 %v4303_v30  ;;  %2579 = vmatprep.subr.bf16.mxu1 %v4309_v13 }
 0x573   :  { %2539 = vmatpush1.bf16.msra.mxu0 %v4315_v6  ;;  %2580 = vmatpush1.bf16.msra.mxu1 %v4322_v36 }
 0x574   :  { %2836 = vmatprep.subr.bf16.mxu0 %v4138_v62  ;;  %2877 = vmatprep.subr.bf16.mxu1 %v4143_v7 }
 0x629   :  { %v2246_v37 = vpop.f32.mrb[36].mxu0  ;;  %v2287_v47 = vpop.f32.mrb[36].mxu1 }
 0x62a   :  { %v2294_v49 = vadd.f32 %v2246_v37, %v4523_v48  ;;  %v2296_v51 = vadd.f32 %v2287_v47, %v4524_v50  ;;  %v2248_v52 = vpop.f32.mrb[37].mxu0  ;;  %v2289_v54 = vpop.f32.mrb[37].mxu1 }
 0x62b   :  { %v2295_v56 = vadd.f32 %v2248_v52, %v4525_v55  ;;  %v2297_v58 = vadd.f32 %v2289_v54, %v4526_v57  ;;  %v2250_v59 = vpop.f32.mrb[38].mxu0  ;;  %v2291_v60 = vpop.f32.mrb[38].mxu1  ;;  %v4531_v55 = vld [vmem:[#allocation20_spill] sm:$0xff]  ;;  %v4532_v57 = vld [vmem:[#allocation21_spill] sm:$0xff] }
 0x62c   :  { %v3217_v61 = vmul.f32 -1.442695, %v2294_v49  ;;  %v2251_v63 = vpop.f32.mrb[39].mxu0  ;;  %v2292_v0 = vpop.f32.mrb[39].mxu1 }
 0x62d   :  { %v3218_v62 = vmul.f32 -1.442695, %v2295_v56  ;;  %v3219_v7 = vmul.f32 -1.442695, %v2297_v58  ;;  %v4534_v0 = vld [vmem:[#allocation23_spill] sm:$0xff] }
 0x62e   :  { %3523 = vpow2.f32 %v3217_v61  ;;  %v4533_v61 = vld [vmem:[#allocation22_spill] sm:$0xff] }
 0x62f   :  { %3525 = vpow2.f32 %v3218_v62 }
 0x630   :  { %3527 = vpow2.f32 %v3219_v7 }
 0x631   :  { %3529 = vtanh.f32 %v2296_v51 }
 0x638   :  { %v3524_v2 = vpop.eup %3523 }
 0x639   :  { %v3526_v4 = vpop.eup %3525  ;;  %v2304_v5 = vadd.f32 1.0, %v3524_v2 }
 0x63a   :  { %v2305_v32 = vadd.f32 1.0, %v3526_v4  ;;  %v3528_v44 = vpop.eup %3527 }
 0x63b   :  { %3531 = vrcp.f32 %v2304_v5  ;;  %v3530_v38 = vpop.eup %3529  ;;  %v2314_v42 = vadd.f32 1.0, %v3528_v44 }
 0x63c   :  { %3533 = vrcp.f32 %v2305_v32 }
 0x63d   :  { %3535 = vrcp.f32 %v2314_v42 }
 0x645   :  { %v3532_v39 = vpop.eup %3531 }
 0x646   :  { %v3534_v40 = vpop.eup %3533  ;;  %v2318_v41 = vmul.f32 %v3532_v39, %v3530_v38 }
 0x647   :  { %v2317_v43 = vmul.f32 %v3534_v40, %v4379_v3  ;;  %v3536_v46 = vpop.eup %3535 }
 0x649   :  { %v4424_v45 = vadd.f32 %v2318_v41, %v2317_v43 }
 0x64b   :  { %3537 = vtanh.f32 %v4424_v45 }
 0x655   :  { %v3538_v37 = vpop.eup %3537 }
 0x656   :  { %v2321_v47 = vmul.f32 %v3538_v37, %v3536_v46 }
 0x658   :  { %v2322_v48 = vpack.c.bf16 %v2321_v47, %v2321_v47 }
 0x65a   :  { %3220 = vst [vmem:[%s4487_s4 + $0x14] sm:$0xf] %v2322_v48  ;;  %2557 = vmatmul.mubr.bf16.vlgmr.msra.gmra.mrb[40].mxu0 %v2322_v48  ;;  %2598 = vmatmul.mubr.bf16.vlgmr.msra.gmra.mrb[40].mxu1 %v2322_v48 }
 0x65b   :  { %2837 = vmatpush1.bf16.msra.mxu0 %v4148_v8  ;;  %2878 = vmatpush1.bf16.msra.mxu1 %v4153_v12  ;;  %v4527_v12 = vld [vmem:[#allocation16_spill] sm:$0xff] }
 0x65c   :  { %2838 = vmatprep.subr.bf16.mxu0 %v4162_v23  ;;  %2879 = vmatprep.subr.bf16.mxu1 %v4167_v31  ;;  %v4528_v31 = vld [vmem:[#allocation17_spill] sm:$0xff] }
 0x65d   :  { %2868 = vmatprep.mubr.bf16.mxu0 %v4513_v22  ;;  %2909 = vmatprep.mubr.bf16.mxu1 %v4513_v22 }
 0x65f   :  { %2839 = vmatpush1.bf16.msra.mxu0 %v4172_v15  ;;  %2880 = vmatpush1.bf16.msra.mxu1 %v4177_v14 }
 0x660   :  { %2840 = vmatprep.subr.bf16.mxu0 %v4186_v16  ;;  %2881 = vmatprep.subr.bf16.mxu1 %v4191_v18  ;;  %v4529_v18 = vld [vmem:[#allocation18_spill] sm:$0xff] }
 0x663   :  { %2841 = vmatpush1.bf16.msra.mxu0 %v4196_v17  ;;  %2882 = vmatpush1.bf16.msra.mxu1 %v4201_v19  ;;  %v4530_v19 = vld [vmem:[#allocation19_spill] sm:$0xff] }
 0x664   :  { %2842 = vmatprep.subr.bf16.mxu0 %v4210_v1  ;;  %2883 = vmatprep.subr.bf16.mxu1 %v4215_v33 }
 0x667   :  { %2843 = vmatpush1.bf16.msra.mxu0 %v4220_v34  ;;  %2884 = vmatpush1.bf16.msra.mxu1 %v4225_v20 }
 0x668   :  { %2844 = vmatprep.subr.bf16.mxu0 %v4239_v24  ;;  %2885 = vmatprep.subr.bf16.mxu1 %v4249_v28 }
 0x66b   :  { %2845 = vmatpush1.bf16.msra.mxu0 %v4234_v21  ;;  %2886 = vmatpush1.bf16.msra.mxu1 %v4244_v26 }
 0x66c   :  { %2846 = vmatprep.subr.bf16.mxu0 %v4254_v27  ;;  %2887 = vmatprep.subr.bf16.mxu1 %v4260_v29 }
 0x66f   :  { %2847 = vmatpush1.bf16.msra.mxu0 %v4267_v9  ;;  %2888 = vmatpush1.bf16.msra.mxu1 %v4274_v53 }
 0x670   :  { %2848 = vmatprep.subr.bf16.mxu0 %v4279_v25  ;;  %2889 = vmatprep.subr.bf16.mxu1 %v4285_v11 }
 0x673   :  { %2849 = vmatpush1.bf16.msra.mxu0 %v4291_v35  ;;  %2890 = vmatpush1.bf16.msra.mxu1 %v4298_v10 }
 0x674   :  { %2850 = vmatprep.subr.bf16.mxu0 %v4303_v30  ;;  %2891 = vmatprep.subr.bf16.mxu1 %v4309_v13 }
 0x677   :  { %2851 = vmatpush1.bf16.msra.mxu0 %v4315_v6  ;;  %2892 = vmatpush1.bf16.msra.mxu1 %v4322_v36 }
 0x72d   :  { %v2558_v22 = vpop.f32.mrb[40].mxu0  ;;  %v2599_v8 = vpop.f32.mrb[40].mxu1 }
 0x72e   :  { %v2606_v23 = vadd.f32 %v2558_v22, %v4527_v12  ;;  %v2608_v15 = vadd.f32 %v2599_v8, %v4528_v31  ;;  %v2560_v14 = vpop.f32.mrb[41].mxu0  ;;  %v2601_v16 = vpop.f32.mrb[41].mxu1 }
 0x72f   :  { %v2607_v17 = vadd.f32 %v2560_v14, %v4529_v18  ;;  %v2609_v1 = vadd.f32 %v2601_v16, %v4530_v19  ;;  %v2562_v33 = vpop.f32.mrb[42].mxu0  ;;  %v2603_v34 = vpop.f32.mrb[42].mxu1 }
 0x730   :  { %v3253_v20 = vmul.f32 -1.442695, %v2606_v23  ;;  %v2563_v21 = vpop.f32.mrb[43].mxu0  ;;  %v2604_v24 = vpop.f32.mrb[43].mxu1 }
 0x731   :  { %v3254_v26 = vmul.f32 -1.442695, %v2607_v17  ;;  %v3255_v28 = vmul.f32 -1.442695, %v2609_v1 }
 0x732   :  { %3539 = vpow2.f32 %v3253_v20 }
 0x733   :  { %3541 = vpow2.f32 %v3254_v26 }
 0x734   :  { %3543 = vpow2.f32 %v3255_v28 }
 0x735   :  { %3545 = vtanh.f32 %v2608_v15 }
 0x73c   :  { %v3540_v27 = vpop.eup %3539 }
 0x73d   :  { %v3542_v29 = vpop.eup %3541  ;;  %v2616_v9 = vadd.f32 1.0, %v3540_v27 }
 0x73e   :  { %v2617_v53 = vadd.f32 1.0, %v3542_v29  ;;  %v3544_v25 = vpop.eup %3543 }
 0x73f   :  { %3547 = vrcp.f32 %v2616_v9  ;;  %v3546_v11 = vpop.eup %3545  ;;  %v2626_v13 = vadd.f32 1.0, %v3544_v25 }
 0x740   :  { %3549 = vrcp.f32 %v2617_v53 }
 0x741   :  { %3551 = vrcp.f32 %v2626_v13 }
 0x749   :  { %v3548_v35 = vpop.eup %3547 }
 0x74a   :  { %v3550_v10 = vpop.eup %3549  ;;  %v2630_v30 = vmul.f32 %v3548_v35, %v3546_v11 }
 0x74b   :  { %v2629_v6 = vmul.f32 %v3550_v10, %v4424_v45  ;;  %v3552_v3 = vpop.eup %3551 }
 0x74d   :  { %v2631_v36 = vadd.f32 %v2630_v30, %v2629_v6 }
 0x74f   :  { %3553 = vtanh.f32 %v2631_v36 }
 0x759   :  { %v3554_v49 = vpop.eup %3553 }
 0x75a   :  { %v2633_v50 = vmul.f32 %v3554_v49, %v3552_v3 }
 0x75c   :  { %v2634_v51 = vpack.c.bf16 %v2633_v50, %v2633_v50 }
 0x75e   :  { %3256 = vst [vmem:[%s4487_s4 + $0x18] sm:$0xf] %v2634_v51  ;;  %2869 = vmatmul.mubr.bf16.vlgmr.msra.gmra.mrb[44].mxu0 %v2634_v51  ;;  %2910 = vmatmul.mubr.bf16.vlgmr.msra.gmra.mrb[44].mxu1 %v2634_v51 }
 0x831   :  { %v2870_v52 = vpop.f32.mrb[44].mxu0  ;;  %v2911_v54 = vpop.f32.mrb[44].mxu1 }
 0x832   :  { %v2918_v56 = vadd.f32 %v2870_v52, %v4531_v55  ;;  %v2920_v58 = vadd.f32 %v2911_v54, %v4532_v57  ;;  %v2872_v59 = vpop.f32.mrb[45].mxu0  ;;  %v2913_v60 = vpop.f32.mrb[45].mxu1 }
 0x833   :  { %v2919_v63 = vadd.f32 %v2872_v59, %v4533_v61  ;;  %v2921_v62 = vadd.f32 %v2913_v60, %v4534_v0  ;;  %v2874_v7 = vpop.f32.mrb[46].mxu0  ;;  %v2915_v2 = vpop.f32.mrb[46].mxu1 }
 0x834   :  { %v3289_v4 = vmul.f32 -1.442695, %v2918_v56  ;;  %v2875_v5 = vpop.f32.mrb[47].mxu0  ;;  %v2916_v32 = vpop.f32.mrb[47].mxu1 }
 0x835   :  { %v3290_v44 = vmul.f32 -1.442695, %v2919_v63  ;;  %v3291_v38 = vmul.f32 -1.442695, %v2921_v62 }
 0x836   :  { %3555 = vpow2.f32 %v3289_v4 }
 0x837   :  { %3557 = vpow2.f32 %v3290_v44 }
 0x838   :  { %3559 = vpow2.f32 %v3291_v38 }
 0x839   :  { %3561 = vtanh.f32 %v2920_v58 }
 0x840   :  { %v3556_v39 = vpop.eup %3555 }
 0x841   :  { %v3558_v40 = vpop.eup %3557  ;;  %v2928_v41 = vadd.f32 1.0, %v3556_v39 }
 0x842   :  { %v2929_v42 = vadd.f32 1.0, %v3558_v40  ;;  %v3560_v43 = vpop.eup %3559 }
 0x843   :  { %3563 = vrcp.f32 %v2928_v41  ;;  %v3562_v45 = vpop.eup %3561  ;;  %v2938_v48 = vadd.f32 1.0, %v3560_v43 }
 0x844   :  { %3565 = vrcp.f32 %v2929_v42 }
 0x845   :  { %3567 = vrcp.f32 %v2938_v48 }
 0x84d   :  { %v3564_v46 = vpop.eup %3563 }
 0x84e   :  { %v3566_v37 = vpop.eup %3565  ;;  %v2942_v47 = vmul.f32 %v3564_v46, %v3562_v45 }
 0x84f   :  { %v2941_v22 = vmul.f32 %v3566_v37, %v2631_v36  ;;  %v3568_v12 = vpop.eup %3567 }
 0x851   :  { %v2943_v8 = vadd.f32 %v2942_v47, %v2941_v22 }
 0x853   :  { %3569 = vtanh.f32 %v2943_v8  ;;  %2950 = vst [vmem:[%s4488_s6] sm:$0xff] %v2943_v8 }
 0x85d   :  { %v3570_v23 = vpop.eup %3569 }
 0x85e   :  { %v2945_v31 = vmul.f32 %v3570_v23, %v3568_v12 }
 0x860   :  { %v2946_v15 = vpack.c.bf16 %v2945_v31, %v2945_v31  ;;  %2949 = vst [vmem:[%s4489_s5] sm:$0xff] %v2945_v31 }
 0x862   :  { %3292 = vst [vmem:[%s4487_s4 + $0x1c] sm:$0xf] %v2946_v15 }

// kernel: lstm_encoder_forward.2
= control target key start
LH: loop header
LB: loop body
LE: loop exit
PB: predicated region body
PF: predicated region fallthrough
CT: control target
= control target key end

     0   :  { %12 = vsyncpa [#allocation4], 0  ;;  %s4305_s0 = inlined_call_operand.vmem [shape: bf16[8,8,128], index: 0, kind: input, shape index: {}]   ;;  %s4306_s1 = inlined_call_operand.hbm [shape: bf16[128,512], index: 1, kind: input, shape index: {}]   ;;  %s4307_s2 = inlined_call_operand.hbm [shape: bf16[128,512], index: 2, kind: input, shape index: {}]   ;;  %s4308_s3 = inlined_call_operand.vmem [shape: f32[1,512], index: 3, kind: input, shape index: {}]   ;;  %s4309_s4 = inlined_call_operand.vmem [shape: bf16[8,8,128], index: 4, kind: output, shape index: {0}]   ;;  %s4310_s5 = inlined_call_operand.vmem [shape: f32[8,128], index: 5, kind: output, shape index: {1}]   ;;  %s4311_s6 = inlined_call_operand.vmem [shape: f32[8,128], index: 6, kind: output, shape index: {2}]  }
   0x1   :  { %13 = vsyncpa [#allocation6], 0  ;;  %s3653_s21 = smov [#allocation3]   ;;  %s3605_s25 = scalar_lea.hbm %s4306_s1, 4096 }
   0x2   :  { %s21_s22 = sshll.u32 %s3653_s21, 4  ;;  %p3606_p0 = scmp.ne.s32.totalorder %s4306_s1, %s3605_s25  ;;  %s22_s22 = int_to_ptr.vmem [resolvable:$true] %s21_s22 }
   0x3   :  { %p3609_p1 = scmp.lt.u32.totalorder %s3605_s25, %s4306_s1 }
   0x5   :  { %p3611_p2 = pnand %p3609_p1, %p3606_p0 }
   0x7   :  { %3614 = shalt.err (!%p3611_p2)
}
   0x8   :  { %s3615_s30 = scalar_lea.vmem %s22_s22, 4096  ;;  %p3620_p4 = scmp.lt.s32.totalorder %s22_s22, %s22_s22 }
   0x9   :  { %p3616_p3 = scmp.ne.s32.totalorder %s22_s22, %s3615_s30  ;;  %p3621_p5 = scmp.lt.s32.totalorder %s3615_s30, %s3615_s30 }
   0xb   :  { %p3622_p6 = por %p3621_p5, %p3620_p4 }
   0xd   :  { %p3623_p7 = pnand %p3622_p6, %p3616_p3 }
   0xf   :  { %3626 = shalt.err (!%p3623_p7)
}
  0x10   :  { %s3654_s7 = smov 256   ;;  %s3655_s8 = smov 16  }
  0x11   :  { %27 = dma.hbm_to_vmem [thread:$0]  %s4306_s1, 4096, %s22_s22, [#allocation4], %s3654_s7, %s3654_s7, %s3655_s8  }
  0x12   :  { %s3656_s11 = smov [#allocation5]   ;;  %s3627_s15 = scalar_lea.hbm %s4307_s2, 4096 }
  0x13   :  { %s33_s12 = sshll.u32 %s3656_s11, 4  ;;  %p3628_p8 = scmp.ne.s32.totalorder %s4307_s2, %s3627_s15  ;;  %s34_s12 = int_to_ptr.vmem [resolvable:$true] %s33_s12 }
  0x14   :  { %p3631_p9 = scmp.lt.u32.totalorder %s3627_s15, %s4307_s2 }
  0x16   :  { %p3633_p10 = pnand %p3631_p9, %p3628_p8 }
  0x18   :  { %3636 = shalt.err (!%p3633_p10)
}
  0x19   :  { %s3637_s20 = scalar_lea.vmem %s34_s12, 4096  ;;  %p3642_p12 = scmp.lt.s32.totalorder %s34_s12, %s34_s12 }
  0x1a   :  { %p3638_p11 = scmp.ne.s32.totalorder %s34_s12, %s3637_s20  ;;  %p3643_p13 = scmp.lt.s32.totalorder %s3637_s20, %s3637_s20 }
  0x1c   :  { %p3644_p0 = por %p3643_p13, %p3642_p12 }
  0x1e   :  { %p3645_p1 = pnand %p3644_p0, %p3638_p11 }
  0x20   :  { %3648 = shalt.err (!%p3645_p1)
}
  0x21   :  { %39 = dma.hbm_to_vmem [thread:$0]  %s4307_s2, 4096, %s34_s12, [#allocation6], %s3654_s7, %s3654_s7, %s3655_s8  }
  0x22   :  { %3649 = dma.done.wait [#allocation4], 4096  }
  0x23   :  { %3650 = vsyncadd [#allocation4], 4294963200 }
  0x24   :  { %3651 = dma.done.wait [#allocation6], 4096  }
  0x25   :  { %3652 = vsyncadd [#allocation6], 4294963200  ;;  %v4312_v0 = vmov 0   ;;  %v3329_v1 = vld [vmem:[#allocation3 + $0x4] ss:$16 sps:$4 sm:$0xff]   ;;  %v3390_v44 = vld [vmem:[%s4305_s0 + $0x8] sm:$0xff]  }
  0x26   :  { %333 = vmatprep.mubr.bf16.mxu0 %v4312_v0  ;;  %406 = vmatprep.mubr.bf16.mxu1 %v4312_v0  ;;  %v3331_v2 = vld [vmem:[#allocation3 + $0xc] ss:$16 sps:$4 sm:$0xff]   ;;  %v3333_v3 = vld [vmem:[#allocation3] ss:$16 sps:$4 sm:$0xff]   ;;  %v3334_v4 = vld [vmem:[#allocation3 + $0x8] ss:$16 sps:$4 sm:$0xff]  }
  0x27   :  { %301 = vmatprep.subr.bf16.mxu0 %v3329_v1  ;;  %374 = vmatprep.subr.bf16.mxu1 %v3331_v2  ;;  %v3335_v5 = vld [vmem:[#allocation3 + $0x24] ss:$16 sps:$4 sm:$0xff]   ;;  %v3337_v6 = vld [vmem:[#allocation3 + $0x2c] ss:$16 sps:$4 sm:$0xff]   ;;  %v3339_v7 = vld [vmem:[#allocation3 + $0x20] ss:$16 sps:$4 sm:$0xff]  }
  0x28   :  { %302 = vmatpush1.bf16.msra.mxu0 %v3333_v3  ;;  %375 = vmatpush1.bf16.msra.mxu1 %v3334_v4  ;;  %v3340_v8 = vld [vmem:[#allocation3 + $0x28] ss:$16 sps:$4 sm:$0xff]   ;;  %v3341_v9 = vld [vmem:[#allocation3 + $0x44] ss:$16 sps:$4 sm:$0xff]   ;;  %v3343_v10 = vld [vmem:[#allocation3 + $0x4c] ss:$16 sps:$4 sm:$0xff]  }
  0x29   :  { %303 = vmatprep.subr.bf16.mxu0 %v3335_v5  ;;  %376 = vmatprep.subr.bf16.mxu1 %v3337_v6  ;;  %v3345_v11 = vld [vmem:[#allocation3 + $0x40] ss:$16 sps:$4 sm:$0xff]   ;;  %v3346_v12 = vld [vmem:[#allocation3 + $0x48] ss:$16 sps:$4 sm:$0xff]   ;;  %v3347_v13 = vld [vmem:[#allocation3 + $0x64] ss:$16 sps:$4 sm:$0xff]  }
  0x2a   :  { %v3349_v14 = vld [vmem:[#allocation3 + $0x6c] ss:$16 sps:$4 sm:$0xff]   ;;  %v3351_v15 = vld [vmem:[#allocation3 + $0x60] ss:$16 sps:$4 sm:$0xff]   ;;  %v3352_v16 = vld [vmem:[#allocation3 + $0x68] ss:$16 sps:$4 sm:$0xff]  }
  0x2b   :  { %v3353_v17 = vld [vmem:[#allocation3 + $0x84] ss:$16 sps:$4 sm:$0xff]   ;;  %v3355_v18 = vld [vmem:[#allocation3 + $0x8c] ss:$16 sps:$4 sm:$0xff]   ;;  %v3357_v19 = vld [vmem:[#allocation3 + $0x80] ss:$16 sps:$4 sm:$0xff]  }
  0x2c   :  { %304 = vmatpush1.bf16.msra.mxu0 %v3339_v7  ;;  %377 = vmatpush1.bf16.msra.mxu1 %v3340_v8  ;;  %v3358_v20 = vld [vmem:[#allocation3 + $0x88] ss:$16 sps:$4 sm:$0xff]   ;;  %v3359_v21 = vld [vmem:[#allocation3 + $0xa4] ss:$16 sps:$4 sm:$0xff]   ;;  %v3361_v22 = vld [vmem:[#allocation3 + $0xac] ss:$16 sps:$4 sm:$0xff]   ;;  %v97_v7 = vlaneseq }
  0x2d   :  { %305 = vmatprep.subr.bf16.mxu0 %v3341_v9  ;;  %378 = vmatprep.subr.bf16.mxu1 %v3343_v10  ;;  %v3363_v23 = vld [vmem:[#allocation3 + $0xa0] ss:$16 sps:$4 sm:$0xff]   ;;  %v3364_v24 = vld [vmem:[#allocation3 + $0xa8] ss:$16 sps:$4 sm:$0xff]   ;;  %v3365_v25 = vld [vmem:[#allocation3 + $0xc4] ss:$16 sps:$4 sm:$0xff]  }
  0x2e   :  { %v3367_v26 = vld [vmem:[#allocation3 + $0xcc] ss:$16 sps:$4 sm:$0xff]   ;;  %v3369_v27 = vld [vmem:[#allocation3 + $0xc0] ss:$16 sps:$4 sm:$0xff]   ;;  %v3370_v28 = vld [vmem:[#allocation3 + $0xc8] ss:$16 sps:$4 sm:$0xff]  }
  0x2f   :  { %v3371_v29 = vld [vmem:[#allocation3 + $0xe4] ss:$16 sps:$4 sm:$0xff]   ;;  %v3373_v30 = vld [vmem:[#allocation3 + $0xec] ss:$16 sps:$4 sm:$0xff]   ;;  %v3375_v31 = vld [vmem:[#allocation3 + $0xe0] ss:$16 sps:$4 sm:$0xff]  }
  0x30   :  { %306 = vmatpush1.bf16.msra.mxu0 %v3345_v11  ;;  %379 = vmatpush1.bf16.msra.mxu1 %v3346_v12  ;;  %v3376_v32 = vld [vmem:[#allocation3 + $0xe8] ss:$16 sps:$4 sm:$0xff]   ;;  %v3720_v33 = vld [vmem:[#allocation5 + $0x4] ss:$16 sps:$4 sm:$0xff]   ;;  %v3722_v34 = vld [vmem:[#allocation5 + $0xc] ss:$16 sps:$4 sm:$0xff]  }
  0x31   :  { %307 = vmatprep.subr.bf16.mxu0 %v3347_v13  ;;  %380 = vmatprep.subr.bf16.mxu1 %v3349_v14  ;;  %v3377_v35 = vld [vmem:[%s4305_s0] sm:$0xff]   ;;  %v3729_v37 = vld [vmem:[#allocation5 + $0x8] ss:$16 sps:$4 sm:$0xff]   ;;  %v3735_v39 = vld [vmem:[#allocation5 + $0x2c] ss:$16 sps:$4 sm:$0xff]   ;;  %v3658_v6 = vmov 0.0|0.0  }
  0x32   :  { %v3727_v36 = vld [vmem:[#allocation5] ss:$16 sps:$4 sm:$0xff]   ;;  %v3733_v38 = vld [vmem:[#allocation5 + $0x24] ss:$16 sps:$4 sm:$0xff]   ;;  %v3741_v41 = vld [vmem:[#allocation5 + $0x28] ss:$16 sps:$4 sm:$0xff]  }
  0x33   :  { %v3737_v40 = vld [vmem:[#allocation5 + $0x20] ss:$16 sps:$4 sm:$0xff]   ;;  %v3745_v42 = vld [vmem:[#allocation5 + $0x44] ss:$16 sps:$4 sm:$0xff]   ;;  %v3747_v43 = vld [vmem:[#allocation5 + $0x4c] ss:$16 sps:$4 sm:$0xff]  }
  0x34   :  { %308 = vmatpush1.bf16.msra.mxu0 %v3351_v15  ;;  %381 = vmatpush1.bf16.msra.mxu1 %v3352_v16  ;;  %v3754_v45 = vld [vmem:[#allocation5 + $0x40] ss:$16 sps:$4 sm:$0xff]   ;;  %v3756_v46 = vld [vmem:[#allocation5 + $0x48] ss:$16 sps:$4 sm:$0xff]   ;;  %v3760_v47 = vld [vmem:[#allocation5 + $0x64] ss:$16 sps:$4 sm:$0xff]  }
  0x35   :  { %309 = vmatprep.subr.bf16.mxu0 %v3353_v17  ;;  %382 = vmatprep.subr.bf16.mxu1 %v3355_v18  ;;  %v3764_v48 = vld [vmem:[#allocation5 + $0x6c] ss:$16 sps:$4 sm:$0xff]   ;;  %v3766_v49 = vld [vmem:[#allocation5 + $0x60] ss:$16 sps:$4 sm:$0xff]   ;;  %v3768_v50 = vld [vmem:[#allocation5 + $0x68] ss:$16 sps:$4 sm:$0xff]  }
  0x36   :  { %v3772_v51 = vld [vmem:[#allocation5 + $0x84] ss:$16 sps:$4 sm:$0xff]   ;;  %v3776_v52 = vld [vmem:[#allocation5 + $0x8c] ss:$16 sps:$4 sm:$0xff]   ;;  %v3783_v54 = vld [vmem:[#allocation5 + $0x80] ss:$16 sps:$4 sm:$0xff]  }
  0x37   :  { %v3403_v53 = vld [vmem:[%s4305_s0 + $0x10] sm:$0xff]   ;;  %v3785_v55 = vld [vmem:[#allocation5 + $0x88] ss:$16 sps:$4 sm:$0xff]   ;;  %v3789_v57 = vld [vmem:[#allocation5 + $0xac] ss:$16 sps:$4 sm:$0xff]   ;;  %v98_v8 = vshrl.u32 %v97_v7, 7 }
  0x38   :  { %310 = vmatpush1.bf16.msra.mxu0 %v3357_v19  ;;  %383 = vmatpush1.bf16.msra.mxu1 %v3358_v20  ;;  %v3787_v56 = vld [vmem:[#allocation5 + $0xa4] ss:$16 sps:$4 sm:$0xff]   ;;  %v3795_v58 = vld [vmem:[#allocation5 + $0xa0] ss:$16 sps:$4 sm:$0xff]   ;;  %v3797_v59 = vld [vmem:[#allocation5 + $0xa8] ss:$16 sps:$4 sm:$0xff]  }
  0x39   :  { %311 = vmatprep.subr.bf16.mxu0 %v3359_v21  ;;  %384 = vmatprep.subr.bf16.mxu1 %v3361_v22  ;;  %v3799_v60 = vld [vmem:[#allocation5 + $0xc4] ss:$16 sps:$4 sm:$0xff]   ;;  %v3801_v61 = vld [vmem:[#allocation5 + $0xcc] ss:$16 sps:$4 sm:$0xff]   ;;  %v3812_v63 = vld [vmem:[#allocation5 + $0xc0] ss:$16 sps:$4 sm:$0xff]  }
  0x3a   :  { %v3416_v62 = vld [vmem:[%s4305_s0 + $0x18] sm:$0xff]   ;;  %v3816_v2 = vld [vmem:[#allocation5 + $0xe4] ss:$16 sps:$4 sm:$0xff]   ;;  %v3826_v4 = vld [vmem:[#allocation5 + $0xe0] ss:$16 sps:$4 sm:$0xff]   ;;  %v107_v9 = vsub.s32 2, %v98_v8 }
  0x3b   :  { %v3814_v1 = vld [vmem:[#allocation5 + $0xc8] ss:$16 sps:$4 sm:$0xff]   ;;  %v3822_v3 = vld [vmem:[#allocation5 + $0xec] ss:$16 sps:$4 sm:$0xff]   ;;  %v111_v10 = vsub.s32 3, %v98_v8  ;;  %v99_v11 = vsub.s32 0, %v98_v8 }
  0x3c   :  { %312 = vmatpush1.bf16.msra.mxu0 %v3363_v23  ;;  %385 = vmatpush1.bf16.msra.mxu1 %v3364_v24  ;;  %v3828_v5 = vld [vmem:[#allocation5 + $0xe8] ss:$16 sps:$4 sm:$0xff]   ;;  %v95_v12 = vld [vmem:[%s4308_s3] sm:$0xf]  ;;  %v103_v13 = vsub.s32 1, %v98_v8 }
  0x3d   :  { %313 = vmatprep.subr.bf16.mxu0 %v3365_v25  ;;  %386 = vmatprep.subr.bf16.mxu1 %v3367_v26  ;;  %v3875_v14 = vrot.slane %v95_v12, %v107_v9  ;;  %v3881_v17 = vrot.slane %v95_v12, %v111_v10  ;;  %v100_v18 = vrot.slane %v95_v12, %v99_v11 }
  0x3e   :  { %v104_v21 = vrot.slane %v95_v12, %v103_v13 }
  0x40   :  { %314 = vmatpush1.bf16.msra.mxu0 %v3369_v27  ;;  %387 = vmatpush1.bf16.msra.mxu1 %v3370_v28 }
  0x41   :  { %315 = vmatprep.subr.bf16.mxu0 %v3371_v29  ;;  %388 = vmatprep.subr.bf16.mxu1 %v3373_v30 }
  0x44   :  { %316 = vmatpush1.bf16.msra.mxu0 %v3375_v31  ;;  %389 = vmatpush1.bf16.msra.mxu1 %v3376_v32 }
  0x45   :  { %681 = vmatprep.subr.bf16.mxu0 %v3720_v33  ;;  %722 = vmatprep.subr.bf16.mxu1 %v3722_v34 }
  0x47   :  { %334 = vmatmul.mubr.bf16.vlgmr.msra.gmra.mrb[0].mxu0 %v3377_v35  ;;  %407 = vmatmul.mubr.bf16.vlgmr.msra.gmra.mrb[0].mxu1 %v3377_v35 }
  0x48   :  { %682 = vmatpush1.bf16.msra.mxu0 %v3727_v36  ;;  %723 = vmatpush1.bf16.msra.mxu1 %v3729_v37 }
  0x49   :  { %683 = vmatprep.subr.bf16.mxu0 %v3733_v38  ;;  %724 = vmatprep.subr.bf16.mxu1 %v3735_v39 }
  0x4a   :  { %343 = vmatprep.mubr.bf16.mxu0 %v4312_v0  ;;  %416 = vmatprep.mubr.bf16.mxu1 %v4312_v0 }
  0x4c   :  { %684 = vmatpush1.bf16.msra.mxu0 %v3737_v40  ;;  %725 = vmatpush1.bf16.msra.mxu1 %v3741_v41 }
  0x4d   :  { %685 = vmatprep.subr.bf16.mxu0 %v3745_v42  ;;  %726 = vmatprep.subr.bf16.mxu1 %v3747_v43 }
  0x4f   :  { %344 = vmatmul.mubr.bf16.gmra.mrb[4].mxu0 %v3390_v44  ;;  %417 = vmatmul.mubr.bf16.gmra.mrb[4].mxu1 %v3390_v44 }
  0x50   :  { %686 = vmatpush1.bf16.msra.mxu0 %v3754_v45  ;;  %727 = vmatpush1.bf16.msra.mxu1 %v3756_v46 }
  0x51   :  { %687 = vmatprep.subr.bf16.mxu0 %v3760_v47  ;;  %728 = vmatprep.subr.bf16.mxu1 %v3764_v48 }
  0x52   :  { %353 = vmatprep.mubr.bf16.mxu0 %v4312_v0  ;;  %426 = vmatprep.mubr.bf16.mxu1 %v4312_v0 }
  0x54   :  { %688 = vmatpush1.bf16.msra.mxu0 %v3766_v49  ;;  %729 = vmatpush1.bf16.msra.mxu1 %v3768_v50 }
  0x55   :  { %689 = vmatprep.subr.bf16.mxu0 %v3772_v51  ;;  %730 = vmatprep.subr.bf16.mxu1 %v3776_v52 }
  0x57   :  { %354 = vmatmul.mubr.bf16.gmra.mrb[8].mxu0 %v3403_v53  ;;  %427 = vmatmul.mubr.bf16.gmra.mrb[8].mxu1 %v3403_v53 }
  0x58   :  { %690 = vmatpush1.bf16.msra.mxu0 %v3783_v54  ;;  %731 = vmatpush1.bf16.msra.mxu1 %v3785_v55 }
  0x59   :  { %691 = vmatprep.subr.bf16.mxu0 %v3787_v56  ;;  %732 = vmatprep.subr.bf16.mxu1 %v3789_v57 }
  0x5a   :  { %363 = vmatprep.mubr.bf16.mxu0 %v4312_v0  ;;  %436 = vmatprep.mubr.bf16.mxu1 %v4312_v0 }
  0x5c   :  { %692 = vmatpush1.bf16.msra.mxu0 %v3795_v58  ;;  %733 = vmatpush1.bf16.msra.mxu1 %v3797_v59 }
  0x5d   :  { %693 = vmatprep.subr.bf16.mxu0 %v3799_v60  ;;  %734 = vmatprep.subr.bf16.mxu1 %v3801_v61 }
  0x5f   :  { %364 = vmatmul.mubr.bf16.gmra.mrb[12].mxu0 %v3416_v62  ;;  %437 = vmatmul.mubr.bf16.gmra.mrb[12].mxu1 %v3416_v62 }
  0x60   :  { %694 = vmatpush1.bf16.msra.mxu0 %v3812_v63  ;;  %735 = vmatpush1.bf16.msra.mxu1 %v3814_v1 }
  0x61   :  { %695 = vmatprep.subr.bf16.mxu0 %v3816_v2  ;;  %736 = vmatprep.subr.bf16.mxu1 %v3822_v3 }
  0x62   :  { %713 = vmatprep.mubr.bf16.mxu0 %v4312_v0  ;;  %754 = vmatprep.mubr.bf16.mxu1 %v4312_v0 }
  0x64   :  { %696 = vmatpush1.bf16.msra.mxu0 %v3826_v4  ;;  %737 = vmatpush1.bf16.msra.mxu1 %v3828_v5 }
  0x65   :  { %992 = vmatprep.subr.bf16.mxu0 %v3720_v33  ;;  %1033 = vmatprep.subr.bf16.mxu1 %v3722_v34 }
  0x67   :  { %714 = vmatmul.mubr.bf16.vlgmr.msra.gmra.mrb[16].mxu0 %v3658_v6  ;;  %755 = vmatmul.mubr.bf16.vlgmr.msra.gmra.mrb[16].mxu1 %v3658_v6 }
  0x68   :  { %993 = vmatpush1.bf16.msra.mxu0 %v3727_v36  ;;  %1034 = vmatpush1.bf16.msra.mxu1 %v3729_v37 }
  0x69   :  { %994 = vmatprep.subr.bf16.mxu0 %v3733_v38  ;;  %1035 = vmatprep.subr.bf16.mxu1 %v3735_v39 }
  0x6a   :  { %1024 = vmatprep.mubr.bf16.mxu0 %v4312_v0  ;;  %1065 = vmatprep.mubr.bf16.mxu1 %v4312_v0 }
  0x6c   :  { %995 = vmatpush1.bf16.msra.mxu0 %v3737_v40  ;;  %1036 = vmatpush1.bf16.msra.mxu1 %v3741_v41 }
  0x6d   :  { %996 = vmatprep.subr.bf16.mxu0 %v3745_v42  ;;  %1037 = vmatprep.subr.bf16.mxu1 %v3747_v43 }
  0x70   :  { %997 = vmatpush1.bf16.msra.mxu0 %v3754_v45  ;;  %1038 = vmatpush1.bf16.msra.mxu1 %v3756_v46 }
  0x71   :  { %998 = vmatprep.subr.bf16.mxu0 %v3760_v47  ;;  %1039 = vmatprep.subr.bf16.mxu1 %v3764_v48 }
  0x74   :  { %999 = vmatpush1.bf16.msra.mxu0 %v3766_v49  ;;  %1040 = vmatpush1.bf16.msra.mxu1 %v3768_v50 }
  0x75   :  { %1000 = vmatprep.subr.bf16.mxu0 %v3772_v51  ;;  %1041 = vmatprep.subr.bf16.mxu1 %v3776_v52 }
  0x78   :  { %1001 = vmatpush1.bf16.msra.mxu0 %v3783_v54  ;;  %1042 = vmatpush1.bf16.msra.mxu1 %v3785_v55 }
  0x79   :  { %1002 = vmatprep.subr.bf16.mxu0 %v3787_v56  ;;  %1043 = vmatprep.subr.bf16.mxu1 %v3789_v57 }
  0x7c   :  { %1003 = vmatpush1.bf16.msra.mxu0 %v3795_v58  ;;  %1044 = vmatpush1.bf16.msra.mxu1 %v3797_v59 }
  0x7d   :  { %1004 = vmatprep.subr.bf16.mxu0 %v3799_v60  ;;  %1045 = vmatprep.subr.bf16.mxu1 %v3801_v61 }
  0x80   :  { %1005 = vmatpush1.bf16.msra.mxu0 %v3812_v63  ;;  %1046 = vmatpush1.bf16.msra.mxu1 %v3814_v1 }
  0x81   :  { %1006 = vmatprep.subr.bf16.mxu0 %v3816_v2  ;;  %1047 = vmatprep.subr.bf16.mxu1 %v3822_v3 }
  0x84   :  { %1007 = vmatpush1.bf16.msra.mxu0 %v3826_v4  ;;  %1048 = vmatpush1.bf16.msra.mxu1 %v3828_v5 }
  0x85   :  { %1304 = vmatprep.subr.bf16.mxu0 %v3720_v33  ;;  %1345 = vmatprep.subr.bf16.mxu1 %v3722_v34 }
 0x11a   :  { %v3877_v15 = vpop.f32.mrb[0].mxu0  ;;  %v3879_v16 = vpop.f32.mrb[0].mxu1 }
 0x11b   :  { %v337_v19 = vpop.f32.mrb[1].mxu0  ;;  %v410_v20 = vpop.f32.mrb[1].mxu1 }
 0x11c   :  { %v339_v22 = vpop.f32.mrb[2].mxu0  ;;  %v412_v23 = vpop.f32.mrb[2].mxu1 }
 0x11d   :  { %v3883_v24 = vadd.f32 %v339_v22, %v100_v18  ;;  %v341_v25 = vpop.f32.mrb[3].mxu0  ;;  %v3886_v26 = vadd.f32 %v412_v23, %v3875_v14  ;;  %v414_v27 = vpop.f32.mrb[3].mxu1 }
 0x11e   :  { %v3888_v28 = vadd.f32 %v341_v25, %v104_v21  ;;  %v3891_v29 = vadd.f32 %v414_v27, %v3881_v17 }
 0x122   :  { %v345_v30 = vpop.f32.mrb[4].mxu0  ;;  %v418_v31 = vpop.f32.mrb[4].mxu1 }
 0x123   :  { %v3893_v32 = vadd.f32 %v345_v30, %v100_v18  ;;  %v347_v35 = vpop.f32.mrb[5].mxu0  ;;  %v3896_v44 = vadd.f32 %v418_v31, %v3875_v14  ;;  %v420_v53 = vpop.f32.mrb[5].mxu1 }
 0x124   :  { %v3898_v62 = vadd.f32 %v347_v35, %v104_v21  ;;  %v349_v6 = vpop.f32.mrb[6].mxu0  ;;  %v3901_v7 = vadd.f32 %v420_v53, %v3881_v17  ;;  %v422_v8 = vpop.f32.mrb[6].mxu1 }
 0x125   :  { %v3903_v9 = vadd.f32 %v349_v6, %v100_v18  ;;  %v351_v10 = vpop.f32.mrb[7].mxu0  ;;  %v3906_v11 = vadd.f32 %v422_v8, %v3875_v14  ;;  %v424_v12 = vpop.f32.mrb[7].mxu1 }
 0x126   :  { %4314 = vst [vmem:[#allocation9_spill] sm:$0xff] %v3901_v7  ;;  %v3908_v13 = vadd.f32 %v351_v10, %v104_v21  ;;  %v3911_v22 = vadd.f32 %v424_v12, %v3881_v17 }
 0x127   :  { %4315 = vst [vmem:[#allocation10_spill] sm:$0xff] %v3903_v9  ;;  %4316 = vst [vmem:[#allocation11_spill] sm:$0xff] %v3906_v11 }
 0x128   :  { %4317 = vst [vmem:[#allocation12_spill] sm:$0xff] %v3908_v13  ;;  %4318 = vst [vmem:[#allocation13_spill] sm:$0xff] %v3911_v22 }
 0x12a   :  { %v355_v23 = vpop.f32.mrb[8].mxu0  ;;  %v428_v25 = vpop.f32.mrb[8].mxu1 }
 0x12b   :  { %v3913_v27 = vadd.f32 %v355_v23, %v100_v18  ;;  %v357_v30 = vpop.f32.mrb[9].mxu0  ;;  %v3916_v31 = vadd.f32 %v428_v25, %v3875_v14  ;;  %v430_v35 = vpop.f32.mrb[9].mxu1 }
 0x12c   :  { %v3918_v53 = vadd.f32 %v357_v30, %v104_v21  ;;  %v359_v6 = vpop.f32.mrb[10].mxu0  ;;  %v3921_v8 = vadd.f32 %v430_v35, %v3881_v17  ;;  %v432_v10 = vpop.f32.mrb[10].mxu1 }
 0x12d   :  { %4319 = vst [vmem:[#allocation14_spill] sm:$0xff] %v3913_v27  ;;  %4320 = vst [vmem:[#allocation15_spill] sm:$0xff] %v3916_v31  ;;  %v3923_v0 = vadd.f32 %v359_v6, %v100_v18  ;;  %v361_v12 = vpop.f32.mrb[11].mxu0  ;;  %v3926_v22 = vadd.f32 %v432_v10, %v3875_v14  ;;  %v434_v23 = vpop.f32.mrb[11].mxu1 }
 0x12e   :  { %4321 = vst [vmem:[#allocation16_spill] sm:$0xff] %v3918_v53  ;;  %4322 = vst [vmem:[#allocation17_spill] sm:$0xff] %v3921_v8  ;;  %v3928_v27 = vadd.f32 %v361_v12, %v104_v21  ;;  %v3931_v25 = vadd.f32 %v434_v23, %v3881_v17 }
 0x12f   :  { %4323 = vst [vmem:[#allocation18_spill] sm:$0xff] %v3923_v0  ;;  %4324 = vst [vmem:[#allocation19_spill] sm:$0xff] %v3926_v22 }
 0x130   :  { %4325 = vst [vmem:[#allocation20_spill] sm:$0xff] %v3928_v27  ;;  %4326 = vst [vmem:[#allocation21_spill] sm:$0xff] %v3931_v25 }
 0x132   :  { %v365_v31 = vpop.f32.mrb[12].mxu0  ;;  %v438_v30 = vpop.f32.mrb[12].mxu1 }
 0x133   :  { %v3933_v53 = vadd.f32 %v365_v31, %v100_v18  ;;  %v367_v13 = vpop.f32.mrb[13].mxu0  ;;  %v3936_v35 = vadd.f32 %v438_v30, %v3875_v14  ;;  %v440_v6 = vpop.f32.mrb[13].mxu1 }
 0x134   :  { %v3938_v0 = vadd.f32 %v367_v13, %v104_v21  ;;  %v369_v8 = vpop.f32.mrb[14].mxu0  ;;  %v3941_v10 = vadd.f32 %v440_v6, %v3881_v17  ;;  %v442_v12 = vpop.f32.mrb[14].mxu1  ;;  %v336_v13 = vadd.f32 %v3877_v15, %v100_v18  ;;  %v338_v6 = vadd.f32 %v337_v19, %v104_v21 }
 0x135   :  { %4327 = vst [vmem:[#allocation22_spill] sm:$0xff] %v3933_v53  ;;  %4328 = vst [vmem:[#allocation23_spill] sm:$0xff] %v3936_v35  ;;  %v3943_v27 = vadd.f32 %v369_v8, %v100_v18  ;;  %v371_v23 = vpop.f32.mrb[15].mxu0  ;;  %v3946_v25 = vadd.f32 %v442_v12, %v3875_v14  ;;  %v444_v31 = vpop.f32.mrb[15].mxu1 }
 0x136   :  { %4329 = vst [vmem:[#allocation24_spill] sm:$0xff] %v3938_v0  ;;  %4330 = vst [vmem:[#allocation25_spill] sm:$0xff] %v3941_v10  ;;  %v3948_v53 = vadd.f32 %v371_v23, %v104_v21  ;;  %v3951_v30 = vadd.f32 %v444_v31, %v3881_v17  ;;  %v409_v0 = vadd.f32 %v3879_v16, %v3875_v14 }
 0x137   :  { %4331 = vst [vmem:[#allocation26_spill] sm:$0xff] %v3943_v27  ;;  %4332 = vst [vmem:[#allocation27_spill] sm:$0xff] %v3946_v25  ;;  %v411_v10 = vadd.f32 %v410_v20, %v3881_v17 }
 0x138   :  { %4333 = vst [vmem:[#allocation28_spill] sm:$0xff] %v3948_v53  ;;  %4334 = vst [vmem:[#allocation29_spill] sm:$0xff] %v3951_v30 }
 0x13a   :  { %v715_v8 = vpop.f32.mrb[16].mxu0  ;;  %v756_v27 = vpop.f32.mrb[16].mxu1 }
 0x13b   :  { %v763_v35 = vadd.f32 %v715_v8, %v336_v13  ;;  %v765_v22 = vadd.f32 %v756_v27, %v409_v0  ;;  %v717_v12 = vpop.f32.mrb[17].mxu0  ;;  %v758_v25 = vpop.f32.mrb[17].mxu1 }
 0x13c   :  { %v764_v11 = vadd.f32 %v717_v12, %v338_v6  ;;  %v766_v23 = vadd.f32 %v758_v25, %v411_v10  ;;  %v719_v53 = vpop.f32.mrb[18].mxu0  ;;  %v760_v9 = vpop.f32.mrb[18].mxu1 }
 0x13d   :  { %v3068_v31 = vmul.f32 -1.442695, %v763_v35  ;;  %v720_v30 = vpop.f32.mrb[19].mxu0  ;;  %v761_v7 = vpop.f32.mrb[19].mxu1 }
 0x13e   :  { %v3069_v15 = vmul.f32 -1.442695, %v764_v11  ;;  %v3070_v14 = vmul.f32 -1.442695, %v766_v23 }
 0x13f   :  { %3477 = vpow2.f32 %v3068_v31 }
 0x140   :  { %3479 = vpow2.f32 %v3069_v15 }
 0x141   :  { %3481 = vpow2.f32 %v3070_v14 }
 0x142   :  { %3483 = vtanh.f32 %v765_v22  ;;  %v4335_v22 = vmov 0  }
 0x149   :  { %v3478_v16 = vpop.eup %3477 }
 0x14a   :  { %v3480_v18 = vpop.eup %3479  ;;  %v773_v17 = vadd.f32 1.0, %v3478_v16 }
 0x14b   :  { %v774_v19 = vadd.f32 1.0, %v3480_v18  ;;  %v3482_v0 = vpop.eup %3481 }
 0x14c   :  { %3485 = vrcp.f32 %v773_v17  ;;  %v3484_v20 = vpop.eup %3483  ;;  %v783_v53 = vadd.f32 1.0, %v3482_v0 }
 0x14d   :  { %3487 = vrcp.f32 %v774_v19 }
 0x14e   :  { %3489 = vrcp.f32 %v783_v53 }
 0x156   :  { %v3486_v21 = vpop.eup %3485 }
 0x157   :  { %v3488_v27 = vpop.eup %3487  ;;  %v787_v9 = vmul.f32 %v3486_v21, %v3484_v20 }
 0x158   :  { %v786_v25 = vmul.f32 0.0, %v3488_v27  ;;  %v3490_v11 = vpop.eup %3489 }
 0x15a   :  { %v3957_v7 = vadd.f32 %v787_v9, %v786_v25 }
 0x15c   :  { %3491 = vtanh.f32 %v3957_v7 }
 0x166   :  { %v3492_v35 = vpop.eup %3491 }
 0x167   :  { %v790_v10 = vmul.f32 %v3492_v35, %v3490_v11 }
 0x169   :  { %v791_v30 = vpack.c.bf16 %v790_v10, %v790_v10 }
 0x16b   :  { %792 = vst [vmem:[%s4309_s4] sm:$0xf] %v791_v30  ;;  %1025 = vmatmul.mubr.bf16.vlgmr.msra.gmra.mrb[20].mxu0 %v791_v30  ;;  %1066 = vmatmul.mubr.bf16.vlgmr.msra.gmra.mrb[20].mxu1 %v791_v30 }
 0x16c   :  { %1305 = vmatpush1.bf16.msra.mxu0 %v3727_v36  ;;  %1346 = vmatpush1.bf16.msra.mxu1 %v3729_v37 }
 0x16d   :  { %1306 = vmatprep.subr.bf16.mxu0 %v3733_v38  ;;  %1347 = vmatprep.subr.bf16.mxu1 %v3735_v39 }
 0x16e   :  { %1336 = vmatprep.mubr.bf16.mxu0 %v4335_v22  ;;  %1377 = vmatprep.mubr.bf16.mxu1 %v4335_v22 }
 0x170   :  { %1307 = vmatpush1.bf16.msra.mxu0 %v3737_v40  ;;  %1348 = vmatpush1.bf16.msra.mxu1 %v3741_v41 }
 0x171   :  { %1308 = vmatprep.subr.bf16.mxu0 %v3745_v42  ;;  %1349 = vmatprep.subr.bf16.mxu1 %v3747_v43 }
 0x174   :  { %1309 = vmatpush1.bf16.msra.mxu0 %v3754_v45  ;;  %1350 = vmatpush1.bf16.msra.mxu1 %v3756_v46 }
 0x175   :  { %1310 = vmatprep.subr.bf16.mxu0 %v3760_v47  ;;  %1351 = vmatprep.subr.bf16.mxu1 %v3764_v48 }
 0x178   :  { %1311 = vmatpush1.bf16.msra.mxu0 %v3766_v49  ;;  %1352 = vmatpush1.bf16.msra.mxu1 %v3768_v50 }
 0x179   :  { %1312 = vmatprep.subr.bf16.mxu0 %v3772_v51  ;;  %1353 = vmatprep.subr.bf16.mxu1 %v3776_v52 }
 0x17c   :  { %1313 = vmatpush1.bf16.msra.mxu0 %v3783_v54  ;;  %1354 = vmatpush1.bf16.msra.mxu1 %v3785_v55 }
 0x17d   :  { %1314 = vmatprep.subr.bf16.mxu0 %v3787_v56  ;;  %1355 = vmatprep.subr.bf16.mxu1 %v3789_v57 }
 0x180   :  { %1315 = vmatpush1.bf16.msra.mxu0 %v3795_v58  ;;  %1356 = vmatpush1.bf16.msra.mxu1 %v3797_v59 }
 0x181   :  { %1316 = vmatprep.subr.bf16.mxu0 %v3799_v60  ;;  %1357 = vmatprep.subr.bf16.mxu1 %v3801_v61 }
 0x184   :  { %1317 = vmatpush1.bf16.msra.mxu0 %v3812_v63  ;;  %1358 = vmatpush1.bf16.msra.mxu1 %v3814_v1 }
 0x185   :  { %1318 = vmatprep.subr.bf16.mxu0 %v3816_v2  ;;  %1359 = vmatprep.subr.bf16.mxu1 %v3822_v3 }
 0x188   :  { %1319 = vmatpush1.bf16.msra.mxu0 %v3826_v4  ;;  %1360 = vmatpush1.bf16.msra.mxu1 %v3828_v5 }
 0x189   :  { %1616 = vmatprep.subr.bf16.mxu0 %v3720_v33  ;;  %1657 = vmatprep.subr.bf16.mxu1 %v3722_v34 }
 0x23e   :  { %v1026_v13 = vpop.f32.mrb[20].mxu0  ;;  %v1067_v6 = vpop.f32.mrb[20].mxu1 }
 0x23f   :  { %v1074_v8 = vadd.f32 %v1026_v13, %v3883_v24  ;;  %v1076_v12 = vadd.f32 %v1067_v6, %v3886_v26  ;;  %v1028_v23 = vpop.f32.mrb[21].mxu0  ;;  %v1069_v31 = vpop.f32.mrb[21].mxu1 }
 0x240   :  { %v1075_v15 = vadd.f32 %v1028_v23, %v3888_v28  ;;  %v1077_v14 = vadd.f32 %v1069_v31, %v3891_v29  ;;  %v1030_v16 = vpop.f32.mrb[22].mxu0  ;;  %v1071_v18 = vpop.f32.mrb[22].mxu1  ;;  %v4065_v23 = vld [vmem:[#allocation5 + $0x24] ss:$16 sps:$4 sm:$0xff]   ;;  %v4067_v31 = vld [vmem:[#allocation5 + $0x2c] ss:$16 sps:$4 sm:$0xff]  }
 0x241   :  { %v3103_v17 = vmul.f32 -1.442695, %v1074_v8  ;;  %v1031_v19 = vpop.f32.mrb[23].mxu0  ;;  %v1072_v0 = vpop.f32.mrb[23].mxu1  ;;  %v4057_v8 = vld [vmem:[#allocation5] ss:$16 sps:$4 sm:$0xff]  }
 0x242   :  { %v3104_v33 = vmul.f32 -1.442695, %v1075_v15  ;;  %v3105_v34 = vmul.f32 -1.442695, %v1077_v14  ;;  %v4069_v15 = vld [vmem:[#allocation5 + $0x20] ss:$16 sps:$4 sm:$0xff]  }
 0x243   :  { %3493 = vpow2.f32 %v3103_v17  ;;  %v4071_v14 = vld [vmem:[#allocation5 + $0x28] ss:$16 sps:$4 sm:$0xff]   ;;  %v4077_v16 = vld [vmem:[#allocation5 + $0x44] ss:$16 sps:$4 sm:$0xff]   ;;  %v4079_v18 = vld [vmem:[#allocation5 + $0x4c] ss:$16 sps:$4 sm:$0xff]  }
 0x244   :  { %3495 = vpow2.f32 %v3104_v33  ;;  %v4081_v17 = vld [vmem:[#allocation5 + $0x40] ss:$16 sps:$4 sm:$0xff]   ;;  %v4083_v19 = vld [vmem:[#allocation5 + $0x48] ss:$16 sps:$4 sm:$0xff]   ;;  %v4089_v0 = vld [vmem:[#allocation5 + $0x64] ss:$16 sps:$4 sm:$0xff]  }
 0x245   :  { %3497 = vpow2.f32 %v3105_v34  ;;  %v4091_v33 = vld [vmem:[#allocation5 + $0x6c] ss:$16 sps:$4 sm:$0xff]   ;;  %v4093_v34 = vld [vmem:[#allocation5 + $0x60] ss:$16 sps:$4 sm:$0xff]  }
 0x246   :  { %3499 = vtanh.f32 %v1076_v12  ;;  %v4059_v12 = vld [vmem:[#allocation5 + $0x8] ss:$16 sps:$4 sm:$0xff]  }
 0x24d   :  { %v3494_v20 = vpop.eup %3493 }
 0x24e   :  { %v3496_v21 = vpop.eup %3495  ;;  %v1084_v24 = vadd.f32 1.0, %v3494_v20  ;;  %v4095_v20 = vld [vmem:[#allocation5 + $0x68] ss:$16 sps:$4 sm:$0xff]  }
 0x24f   :  { %v1085_v26 = vadd.f32 1.0, %v3496_v21  ;;  %v3498_v28 = vpop.eup %3497  ;;  %v4101_v21 = vld [vmem:[#allocation5 + $0x80] ss:$16 sps:$4 sm:$0xff]  }
 0x250   :  { %3501 = vrcp.f32 %v1084_v24  ;;  %v3500_v27 = vpop.eup %3499  ;;  %v1094_v25 = vadd.f32 1.0, %v3498_v28  ;;  %v4103_v24 = vld [vmem:[#allocation5 + $0x84] ss:$16 sps:$4 sm:$0xff]   ;;  %v4107_v28 = vld [vmem:[#allocation5 + $0x8c] ss:$16 sps:$4 sm:$0xff]  }
 0x251   :  { %3503 = vrcp.f32 %v1085_v26  ;;  %v4105_v26 = vld [vmem:[#allocation5 + $0x88] ss:$16 sps:$4 sm:$0xff]  }
 0x252   :  { %3505 = vrcp.f32 %v1094_v25  ;;  %v4122_v25 = vld [vmem:[#allocation5 + $0xc4] ss:$16 sps:$4 sm:$0xff]  }
 0x25a   :  { %v3502_v29 = vpop.eup %3501 }
 0x25b   :  { %v3504_v9 = vpop.eup %3503  ;;  %v1098_v53 = vmul.f32 %v3502_v29, %v3500_v27  ;;  %v4109_v27 = vld [vmem:[#allocation5 + $0xa4] ss:$16 sps:$4 sm:$0xff]   ;;  %v4112_v29 = vld [vmem:[#allocation5 + $0xac] ss:$16 sps:$4 sm:$0xff]  }
 0x25c   :  { %v1097_v11 = vmul.f32 %v3504_v9, %v3957_v7  ;;  %v3506_v10 = vpop.eup %3505  ;;  %v4055_v7 = vld [vmem:[#allocation5 + $0xc] ss:$16 sps:$4 sm:$0xff]   ;;  %v4116_v9 = vld [vmem:[#allocation5 + $0xa0] ss:$16 sps:$4 sm:$0xff]  }
 0x25e   :  { %v4002_v35 = vadd.f32 %v1098_v53, %v1097_v11  ;;  %v4120_v53 = vld [vmem:[#allocation5 + $0xa8] ss:$16 sps:$4 sm:$0xff]   ;;  %v4125_v11 = vld [vmem:[#allocation5 + $0xcc] ss:$16 sps:$4 sm:$0xff]  }
 0x260   :  { %3507 = vtanh.f32 %v4002_v35 }
 0x26a   :  { %v3508_v30 = vpop.eup %3507 }
 0x26b   :  { %v1101_v13 = vmul.f32 %v3508_v30, %v3506_v10  ;;  %v4132_v10 = vld [vmem:[#allocation5 + $0xc8] ss:$16 sps:$4 sm:$0xff]   ;;  %v4134_v30 = vld [vmem:[#allocation5 + $0xe4] ss:$16 sps:$4 sm:$0xff]  }
 0x26d   :  { %v1102_v6 = vpack.c.bf16 %v1101_v13, %v1101_v13  ;;  %v4137_v13 = vld [vmem:[#allocation5 + $0xec] ss:$16 sps:$4 sm:$0xff]  }
 0x26f   :  { %3106 = vst [vmem:[%s4309_s4 + $0x4] sm:$0xf] %v1102_v6  ;;  %1337 = vmatmul.mubr.bf16.vlgmr.msra.gmra.mrb[24].mxu0 %v1102_v6  ;;  %1378 = vmatmul.mubr.bf16.vlgmr.msra.gmra.mrb[24].mxu1 %v1102_v6  ;;  %v4140_v6 = vld [vmem:[#allocation5 + $0xe0] ss:$16 sps:$4 sm:$0xff]  }
 0x270   :  { %1617 = vmatpush1.bf16.msra.mxu0 %v3727_v36  ;;  %1658 = vmatpush1.bf16.msra.mxu1 %v3729_v37 }
 0x271   :  { %1618 = vmatprep.subr.bf16.mxu0 %v3733_v38  ;;  %1659 = vmatprep.subr.bf16.mxu1 %v3735_v39 }
 0x272   :  { %1648 = vmatprep.mubr.bf16.mxu0 %v4335_v22  ;;  %1689 = vmatprep.mubr.bf16.mxu1 %v4335_v22 }
 0x274   :  { %1619 = vmatpush1.bf16.msra.mxu0 %v3737_v40  ;;  %1660 = vmatpush1.bf16.msra.mxu1 %v3741_v41 }
 0x275   :  { %1620 = vmatprep.subr.bf16.mxu0 %v3745_v42  ;;  %1661 = vmatprep.subr.bf16.mxu1 %v3747_v43  ;;  %v4336_v43 = vld [vmem:[#allocation9_spill] sm:$0xff] }
 0x278   :  { %1621 = vmatpush1.bf16.msra.mxu0 %v3754_v45  ;;  %1662 = vmatpush1.bf16.msra.mxu1 %v3756_v46 }
 0x279   :  { %1622 = vmatprep.subr.bf16.mxu0 %v3760_v47  ;;  %1663 = vmatprep.subr.bf16.mxu1 %v3764_v48 }
 0x27c   :  { %1623 = vmatpush1.bf16.msra.mxu0 %v3766_v49  ;;  %1664 = vmatpush1.bf16.msra.mxu1 %v3768_v50 }
 0x27d   :  { %1624 = vmatprep.subr.bf16.mxu0 %v3772_v51  ;;  %1665 = vmatprep.subr.bf16.mxu1 %v3776_v52 }
 0x280   :  { %1625 = vmatpush1.bf16.msra.mxu0 %v3783_v54  ;;  %1666 = vmatpush1.bf16.msra.mxu1 %v3785_v55 }
 0x281   :  { %1626 = vmatprep.subr.bf16.mxu0 %v3787_v56  ;;  %1667 = vmatprep.subr.bf16.mxu1 %v3789_v57 }
 0x284   :  { %1627 = vmatpush1.bf16.msra.mxu0 %v3795_v58  ;;  %1668 = vmatpush1.bf16.msra.mxu1 %v3797_v59 }
 0x285   :  { %1628 = vmatprep.subr.bf16.mxu0 %v3799_v60  ;;  %1669 = vmatprep.subr.bf16.mxu1 %v3801_v61 }
 0x288   :  { %1629 = vmatpush1.bf16.msra.mxu0 %v3812_v63  ;;  %1670 = vmatpush1.bf16.msra.mxu1 %v3814_v1 }
 0x289   :  { %1630 = vmatprep.subr.bf16.mxu0 %v3816_v2  ;;  %1671 = vmatprep.subr.bf16.mxu1 %v3822_v3 }
 0x28c   :  { %1631 = vmatpush1.bf16.msra.mxu0 %v3826_v4  ;;  %1672 = vmatpush1.bf16.msra.mxu1 %v3828_v5 }
 0x28d   :  { %1969 = vmatprep.subr.bf16.mxu1 %v4055_v7 }
 0x342   :  { %v1338_v36 = vpop.f32.mrb[24].mxu0  ;;  %v1379_v37 = vpop.f32.mrb[24].mxu1 }
 0x343   :  { %v1386_v38 = vadd.f32 %v1338_v36, %v3893_v32  ;;  %v1388_v39 = vadd.f32 %v1379_v37, %v3896_v44  ;;  %v1340_v40 = vpop.f32.mrb[25].mxu0  ;;  %v1381_v41 = vpop.f32.mrb[25].mxu1  ;;  %v4144_v36 = vld [vmem:[#allocation5 + $0xe8] ss:$16 sps:$4 sm:$0xff]  }
 0x344   :  { %v1387_v42 = vadd.f32 %v1340_v40, %v3898_v62  ;;  %v1389_v45 = vadd.f32 %v1381_v41, %v4336_v43  ;;  %v1342_v46 = vpop.f32.mrb[26].mxu0  ;;  %v1383_v47 = vpop.f32.mrb[26].mxu1  ;;  %v4053_v62 = vld [vmem:[#allocation5 + $0x4] ss:$16 sps:$4 sm:$0xff]  }
 0x345   :  { %v3139_v48 = vmul.f32 -1.442695, %v1386_v38  ;;  %v1343_v49 = vpop.f32.mrb[27].mxu0  ;;  %v1384_v50 = vpop.f32.mrb[27].mxu1  ;;  %1928 = vmatprep.subr.bf16.mxu0 %v4053_v62  ;;  %v4338_v41 = vld [vmem:[#allocation11_spill] sm:$0xff]  ;;  %v4339_v46 = vld [vmem:[#allocation12_spill] sm:$0xff] }
 0x346   :  { %v3140_v51 = vmul.f32 -1.442695, %v1387_v42  ;;  %v3141_v52 = vmul.f32 -1.442695, %v1389_v45 }
 0x347   :  { %3509 = vpow2.f32 %v3139_v48  ;;  %v4340_v48 = vld [vmem:[#allocation13_spill] sm:$0xff] }
 0x348   :  { %3511 = vpow2.f32 %v3140_v51 }
 0x349   :  { %3513 = vpow2.f32 %v3141_v52 }
 0x34a   :  { %3515 = vtanh.f32 %v1388_v39  ;;  %v4337_v39 = vld [vmem:[#allocation10_spill] sm:$0xff] }
 0x351   :  { %v3510_v54 = vpop.eup %3509 }
 0x352   :  { %v3512_v55 = vpop.eup %3511  ;;  %v1396_v56 = vadd.f32 1.0, %v3510_v54 }
 0x353   :  { %v1397_v57 = vadd.f32 1.0, %v3512_v55  ;;  %v3514_v58 = vpop.eup %3513 }
 0x354   :  { %3517 = vrcp.f32 %v1396_v56  ;;  %v3516_v59 = vpop.eup %3515  ;;  %v1406_v1 = vadd.f32 1.0, %v3514_v58 }
 0x355   :  { %3519 = vrcp.f32 %v1397_v57 }
 0x356   :  { %3521 = vrcp.f32 %v1406_v1 }
 0x35e   :  { %v3518_v60 = vpop.eup %3517 }
 0x35f   :  { %v3520_v61 = vpop.eup %3519  ;;  %v1410_v63 = vmul.f32 %v3518_v60, %v3516_v59 }
 0x360   :  { %v1409_v2 = vmul.f32 %v3520_v61, %v4002_v35  ;;  %v3522_v4 = vpop.eup %3521  ;;  %v4128_v35 = vld [vmem:[#allocation5 + $0xc0] ss:$16 sps:$4 sm:$0xff]  }
 0x362   :  { %v4045_v3 = vadd.f32 %v1410_v63, %v1409_v2 }
 0x364   :  { %3523 = vtanh.f32 %v4045_v3 }
 0x36e   :  { %v3524_v5 = vpop.eup %3523 }
 0x36f   :  { %v1413_v32 = vmul.f32 %v3524_v5, %v3522_v4 }
 0x371   :  { %v1414_v44 = vpack.c.bf16 %v1413_v32, %v1413_v32 }
 0x373   :  { %3142 = vst [vmem:[%s4309_s4 + $0x8] sm:$0xf] %v1414_v44  ;;  %1649 = vmatmul.mubr.bf16.vlgmr.msra.gmra.mrb[28].mxu0 %v1414_v44  ;;  %1690 = vmatmul.mubr.bf16.vlgmr.msra.gmra.mrb[28].mxu1 %v1414_v44 }
 0x374   :  { %1960 = vmatprep.mubr.bf16.mxu0 %v4335_v22  ;;  %2001 = vmatprep.mubr.bf16.mxu1 %v4335_v22 }
 0x375   :  { %1929 = vmatpush1.bf16.msra.mxu0 %v4057_v8  ;;  %1970 = vmatpush1.bf16.msra.mxu1 %v4059_v12 }
 0x376   :  { %1930 = vmatprep.subr.bf16.mxu0 %v4065_v23  ;;  %1971 = vmatprep.subr.bf16.mxu1 %v4067_v31 }
 0x379   :  { %1931 = vmatpush1.bf16.msra.mxu0 %v4069_v15  ;;  %1972 = vmatpush1.bf16.msra.mxu1 %v4071_v14 }
 0x37a   :  { %1932 = vmatprep.subr.bf16.mxu0 %v4077_v16  ;;  %1973 = vmatprep.subr.bf16.mxu1 %v4079_v18 }
 0x37d   :  { %1933 = vmatpush1.bf16.msra.mxu0 %v4081_v17  ;;  %1974 = vmatpush1.bf16.msra.mxu1 %v4083_v19 }
 0x37e   :  { %1934 = vmatprep.subr.bf16.mxu0 %v4089_v0  ;;  %1975 = vmatprep.subr.bf16.mxu1 %v4091_v33 }
 0x381   :  { %1935 = vmatpush1.bf16.msra.mxu0 %v4093_v34  ;;  %1976 = vmatpush1.bf16.msra.mxu1 %v4095_v20 }
 0x382   :  { %1936 = vmatprep.subr.bf16.mxu0 %v4103_v24  ;;  %1977 = vmatprep.subr.bf16.mxu1 %v4107_v28 }
 0x385   :  { %1937 = vmatpush1.bf16.msra.mxu0 %v4101_v21  ;;  %1978 = vmatpush1.bf16.msra.mxu1 %v4105_v26 }
 0x386   :  { %1938 = vmatprep.subr.bf16.mxu0 %v4109_v27  ;;  %1979 = vmatprep.subr.bf16.mxu1 %v4112_v29 }
 0x389   :  { %1939 = vmatpush1.bf16.msra.mxu0 %v4116_v9  ;;  %1980 = vmatpush1.bf16.msra.mxu1 %v4120_v53 }
 0x38a   :  { %1940 = vmatprep.subr.bf16.mxu0 %v4122_v25  ;;  %1981 = vmatprep.subr.bf16.mxu1 %v4125_v11 }
 0x38d   :  { %1941 = vmatpush1.bf16.msra.mxu0 %v4128_v35  ;;  %1982 = vmatpush1.bf16.msra.mxu1 %v4132_v10 }
 0x38e   :  { %1942 = vmatprep.subr.bf16.mxu0 %v4134_v30  ;;  %1983 = vmatprep.subr.bf16.mxu1 %v4137_v13 }
 0x391   :  { %1943 = vmatpush1.bf16.msra.mxu0 %v4140_v6  ;;  %1984 = vmatpush1.bf16.msra.mxu1 %v4144_v36 }
 0x392   :  { %2240 = vmatprep.subr.bf16.mxu0 %v4053_v62  ;;  %2281 = vmatprep.subr.bf16.mxu1 %v4055_v7 }
 0x446   :  { %v1650_v37 = vpop.f32.mrb[28].mxu0  ;;  %v1691_v38 = vpop.f32.mrb[28].mxu1 }
 0x447   :  { %v1698_v40 = vadd.f32 %v1650_v37, %v4337_v39  ;;  %v1700_v42 = vadd.f32 %v1691_v38, %v4338_v41  ;;  %v1652_v43 = vpop.f32.mrb[29].mxu0  ;;  %v1693_v45 = vpop.f32.mrb[29].mxu1 }
 0x448   :  { %v1699_v47 = vadd.f32 %v1652_v43, %v4339_v46  ;;  %v1701_v49 = vadd.f32 %v1693_v45, %v4340_v48  ;;  %v1654_v50 = vpop.f32.mrb[30].mxu0  ;;  %v1695_v51 = vpop.f32.mrb[30].mxu1  ;;  %v4341_v43 = vld [vmem:[#allocation14_spill] sm:$0xff]  ;;  %v4342_v46 = vld [vmem:[#allocation15_spill] sm:$0xff] }
 0x449   :  { %v3175_v52 = vmul.f32 -1.442695, %v1698_v40  ;;  %v1655_v54 = vpop.f32.mrb[31].mxu0  ;;  %v1696_v55 = vpop.f32.mrb[31].mxu1  ;;  %v4343_v50 = vld [vmem:[#allocation16_spill] sm:$0xff] }
 0x44a   :  { %v3176_v56 = vmul.f32 -1.442695, %v1699_v47  ;;  %v3177_v57 = vmul.f32 -1.442695, %v1701_v49 }
 0x44b   :  { %3525 = vpow2.f32 %v3175_v52  ;;  %v4344_v52 = vld [vmem:[#allocation17_spill] sm:$0xff] }
 0x44c   :  { %3527 = vpow2.f32 %v3176_v56 }
 0x44d   :  { %3529 = vpow2.f32 %v3177_v57 }
 0x44e   :  { %3531 = vtanh.f32 %v1700_v42 }
 0x455   :  { %v3526_v58 = vpop.eup %3525 }
 0x456   :  { %v3528_v59 = vpop.eup %3527  ;;  %v1708_v60 = vadd.f32 1.0, %v3526_v58 }
 0x457   :  { %v1709_v61 = vadd.f32 1.0, %v3528_v59  ;;  %v3530_v63 = vpop.eup %3529 }
 0x458   :  { %3533 = vrcp.f32 %v1708_v60  ;;  %v3532_v1 = vpop.eup %3531  ;;  %v1718_v32 = vadd.f32 1.0, %v3530_v63 }
 0x459   :  { %3535 = vrcp.f32 %v1709_v61 }
 0x45a   :  { %3537 = vrcp.f32 %v1718_v32 }
 0x462   :  { %v3534_v2 = vpop.eup %3533 }
 0x463   :  { %v3536_v4 = vpop.eup %3535  ;;  %v1722_v5 = vmul.f32 %v3534_v2, %v3532_v1 }
 0x464   :  { %v1721_v44 = vmul.f32 %v3536_v4, %v4045_v3  ;;  %v3538_v38 = vpop.eup %3537 }
 0x466   :  { %v4156_v37 = vadd.f32 %v1722_v5, %v1721_v44 }
 0x468   :  { %3539 = vtanh.f32 %v4156_v37 }
 0x472   :  { %v3540_v39 = vpop.eup %3539 }
 0x473   :  { %v1725_v40 = vmul.f32 %v3540_v39, %v3538_v38 }
 0x475   :  { %v1726_v41 = vpack.c.bf16 %v1725_v40, %v1725_v40 }
 0x477   :  { %3178 = vst [vmem:[%s4309_s4 + $0xc] sm:$0xf] %v1726_v41  ;;  %1961 = vmatmul.mubr.bf16.vlgmr.msra.gmra.mrb[32].mxu0 %v1726_v41  ;;  %2002 = vmatmul.mubr.bf16.vlgmr.msra.gmra.mrb[32].mxu1 %v1726_v41 }
 0x478   :  { %2241 = vmatpush1.bf16.msra.mxu0 %v4057_v8  ;;  %2282 = vmatpush1.bf16.msra.mxu1 %v4059_v12 }
 0x479   :  { %2242 = vmatprep.subr.bf16.mxu0 %v4065_v23  ;;  %2283 = vmatprep.subr.bf16.mxu1 %v4067_v31 }
 0x47a   :  { %2272 = vmatprep.mubr.bf16.mxu0 %v4335_v22  ;;  %2313 = vmatprep.mubr.bf16.mxu1 %v4335_v22 }
 0x47c   :  { %2243 = vmatpush1.bf16.msra.mxu0 %v4069_v15  ;;  %2284 = vmatpush1.bf16.msra.mxu1 %v4071_v14 }
 0x47d   :  { %2244 = vmatprep.subr.bf16.mxu0 %v4077_v16  ;;  %2285 = vmatprep.subr.bf16.mxu1 %v4079_v18 }
 0x480   :  { %2245 = vmatpush1.bf16.msra.mxu0 %v4081_v17  ;;  %2286 = vmatpush1.bf16.msra.mxu1 %v4083_v19 }
 0x481   :  { %2246 = vmatprep.subr.bf16.mxu0 %v4089_v0  ;;  %2287 = vmatprep.subr.bf16.mxu1 %v4091_v33 }
 0x484   :  { %2247 = vmatpush1.bf16.msra.mxu0 %v4093_v34  ;;  %2288 = vmatpush1.bf16.msra.mxu1 %v4095_v20 }
 0x485   :  { %2248 = vmatprep.subr.bf16.mxu0 %v4103_v24  ;;  %2289 = vmatprep.subr.bf16.mxu1 %v4107_v28 }
 0x488   :  { %2249 = vmatpush1.bf16.msra.mxu0 %v4101_v21  ;;  %2290 = vmatpush1.bf16.msra.mxu1 %v4105_v26 }
 0x489   :  { %2250 = vmatprep.subr.bf16.mxu0 %v4109_v27  ;;  %2291 = vmatprep.subr.bf16.mxu1 %v4112_v29 }
 0x48c   :  { %2251 = vmatpush1.bf16.msra.mxu0 %v4116_v9  ;;  %2292 = vmatpush1.bf16.msra.mxu1 %v4120_v53 }
 0x48d   :  { %2252 = vmatprep.subr.bf16.mxu0 %v4122_v25  ;;  %2293 = vmatprep.subr.bf16.mxu1 %v4125_v11 }
 0x490   :  { %2253 = vmatpush1.bf16.msra.mxu0 %v4128_v35  ;;  %2294 = vmatpush1.bf16.msra.mxu1 %v4132_v10 }
 0x491   :  { %2254 = vmatprep.subr.bf16.mxu0 %v4134_v30  ;;  %2295 = vmatprep.subr.bf16.mxu1 %v4137_v13 }
 0x494   :  { %2255 = vmatpush1.bf16.msra.mxu0 %v4140_v6  ;;  %2296 = vmatpush1.bf16.msra.mxu1 %v4144_v36 }
 0x495   :  { %2552 = vmatprep.subr.bf16.mxu0 %v4053_v62  ;;  %2593 = vmatprep.subr.bf16.mxu1 %v4055_v7 }
 0x54a   :  { %v1962_v3 = vpop.f32.mrb[32].mxu0  ;;  %v2003_v42 = vpop.f32.mrb[32].mxu1 }
 0x54b   :  { %v2010_v45 = vadd.f32 %v1962_v3, %v4341_v43  ;;  %v2012_v47 = vadd.f32 %v2003_v42, %v4342_v46  ;;  %v1964_v48 = vpop.f32.mrb[33].mxu0  ;;  %v2005_v49 = vpop.f32.mrb[33].mxu1 }
 0x54c   :  { %v2011_v51 = vadd.f32 %v1964_v48, %v4343_v50  ;;  %v2013_v54 = vadd.f32 %v2005_v49, %v4344_v52  ;;  %v1966_v55 = vpop.f32.mrb[34].mxu0  ;;  %v2007_v56 = vpop.f32.mrb[34].mxu1  ;;  %v4345_v48 = vld [vmem:[#allocation18_spill] sm:$0xff]  ;;  %v4346_v50 = vld [vmem:[#allocation19_spill] sm:$0xff] }
 0x54d   :  { %v3211_v57 = vmul.f32 -1.442695, %v2010_v45  ;;  %v1967_v58 = vpop.f32.mrb[35].mxu0  ;;  %v2008_v59 = vpop.f32.mrb[35].mxu1  ;;  %v4347_v55 = vld [vmem:[#allocation20_spill] sm:$0xff] }
 0x54e   :  { %v3212_v60 = vmul.f32 -1.442695, %v2011_v51  ;;  %v3213_v61 = vmul.f32 -1.442695, %v2013_v54 }
 0x54f   :  { %3541 = vpow2.f32 %v3211_v57  ;;  %v4348_v57 = vld [vmem:[#allocation21_spill] sm:$0xff] }
 0x550   :  { %3543 = vpow2.f32 %v3212_v60 }
 0x551   :  { %3545 = vpow2.f32 %v3213_v61 }
 0x552   :  { %3547 = vtanh.f32 %v2012_v47 }
 0x559   :  { %v3542_v63 = vpop.eup %3541 }
 0x55a   :  { %v3544_v1 = vpop.eup %3543  ;;  %v2020_v2 = vadd.f32 1.0, %v3542_v63 }
 0x55b   :  { %v2021_v4 = vadd.f32 1.0, %v3544_v1  ;;  %v3546_v5 = vpop.eup %3545 }
 0x55c   :  { %3549 = vrcp.f32 %v2020_v2  ;;  %v3548_v32 = vpop.eup %3547  ;;  %v2030_v40 = vadd.f32 1.0, %v3546_v5 }
 0x55d   :  { %3551 = vrcp.f32 %v2021_v4 }
 0x55e   :  { %3553 = vrcp.f32 %v2030_v40 }
 0x566   :  { %v3550_v44 = vpop.eup %3549 }
 0x567   :  { %v3552_v38 = vpop.eup %3551  ;;  %v2034_v39 = vmul.f32 %v3550_v44, %v3548_v32 }
 0x568   :  { %v2033_v41 = vmul.f32 %v3552_v38, %v4156_v37  ;;  %v3554_v42 = vpop.eup %3553 }
 0x56a   :  { %v4201_v3 = vadd.f32 %v2034_v39, %v2033_v41 }
 0x56c   :  { %3555 = vtanh.f32 %v4201_v3 }
 0x576   :  { %v3556_v43 = vpop.eup %3555 }
 0x577   :  { %v2037_v45 = vmul.f32 %v3556_v43, %v3554_v42 }
 0x579   :  { %v2038_v46 = vpack.c.bf16 %v2037_v45, %v2037_v45 }
 0x57b   :  { %3214 = vst [vmem:[%s4309_s4 + $0x10] sm:$0xf] %v2038_v46  ;;  %2273 = vmatmul.mubr.bf16.vlgmr.msra.gmra.mrb[36].mxu0 %v2038_v46  ;;  %2314 = vmatmul.mubr.bf16.vlgmr.msra.gmra.mrb[36].mxu1 %v2038_v46 }
 0x57c   :  { %2553 = vmatpush1.bf16.msra.mxu0 %v4057_v8  ;;  %2594 = vmatpush1.bf16.msra.mxu1 %v4059_v12 }
 0x57d   :  { %2554 = vmatprep.subr.bf16.mxu0 %v4065_v23  ;;  %2595 = vmatprep.subr.bf16.mxu1 %v4067_v31 }
 0x57e   :  { %2584 = vmatprep.mubr.bf16.mxu0 %v4335_v22  ;;  %2625 = vmatprep.mubr.bf16.mxu1 %v4335_v22 }
 0x580   :  { %2555 = vmatpush1.bf16.msra.mxu0 %v4069_v15  ;;  %2596 = vmatpush1.bf16.msra.mxu1 %v4071_v14 }
 0x581   :  { %2556 = vmatprep.subr.bf16.mxu0 %v4077_v16  ;;  %2597 = vmatprep.subr.bf16.mxu1 %v4079_v18 }
 0x584   :  { %2557 = vmatpush1.bf16.msra.mxu0 %v4081_v17  ;;  %2598 = vmatpush1.bf16.msra.mxu1 %v4083_v19 }
 0x585   :  { %2558 = vmatprep.subr.bf16.mxu0 %v4089_v0  ;;  %2599 = vmatprep.subr.bf16.mxu1 %v4091_v33 }
 0x588   :  { %2559 = vmatpush1.bf16.msra.mxu0 %v4093_v34  ;;  %2600 = vmatpush1.bf16.msra.mxu1 %v4095_v20 }
 0x589   :  { %2560 = vmatprep.subr.bf16.mxu0 %v4103_v24  ;;  %2601 = vmatprep.subr.bf16.mxu1 %v4107_v28 }
 0x58c   :  { %2561 = vmatpush1.bf16.msra.mxu0 %v4101_v21  ;;  %2602 = vmatpush1.bf16.msra.mxu1 %v4105_v26 }
 0x58d   :  { %2562 = vmatprep.subr.bf16.mxu0 %v4109_v27  ;;  %2603 = vmatprep.subr.bf16.mxu1 %v4112_v29 }
 0x590   :  { %2563 = vmatpush1.bf16.msra.mxu0 %v4116_v9  ;;  %2604 = vmatpush1.bf16.msra.mxu1 %v4120_v53 }
 0x591   :  { %2564 = vmatprep.subr.bf16.mxu0 %v4122_v25  ;;  %2605 = vmatprep.subr.bf16.mxu1 %v4125_v11 }
 0x594   :  { %2565 = vmatpush1.bf16.msra.mxu0 %v4128_v35  ;;  %2606 = vmatpush1.bf16.msra.mxu1 %v4132_v10 }
 0x595   :  { %2566 = vmatprep.subr.bf16.mxu0 %v4134_v30  ;;  %2607 = vmatprep.subr.bf16.mxu1 %v4137_v13 }
 0x598   :  { %2567 = vmatpush1.bf16.msra.mxu0 %v4140_v6  ;;  %2608 = vmatpush1.bf16.msra.mxu1 %v4144_v36 }
 0x599   :  { %2864 = vmatprep.subr.bf16.mxu0 %v4053_v62  ;;  %2905 = vmatprep.subr.bf16.mxu1 %v4055_v7 }
 0x64e   :  { %v2274_v37 = vpop.f32.mrb[36].mxu0  ;;  %v2315_v47 = vpop.f32.mrb[36].mxu1 }
 0x64f   :  { %v2322_v49 = vadd.f32 %v2274_v37, %v4345_v48  ;;  %v2324_v51 = vadd.f32 %v2315_v47, %v4346_v50  ;;  %v2276_v52 = vpop.f32.mrb[37].mxu0  ;;  %v2317_v54 = vpop.f32.mrb[37].mxu1 }
 0x650   :  { %v2323_v56 = vadd.f32 %v2276_v52, %v4347_v55  ;;  %v2325_v58 = vadd.f32 %v2317_v54, %v4348_v57  ;;  %v2278_v59 = vpop.f32.mrb[38].mxu0  ;;  %v2319_v60 = vpop.f32.mrb[38].mxu1  ;;  %v4353_v55 = vld [vmem:[#allocation26_spill] sm:$0xff]  ;;  %v4354_v57 = vld [vmem:[#allocation27_spill] sm:$0xff] }
 0x651   :  { %v3247_v61 = vmul.f32 -1.442695, %v2322_v49  ;;  %v2279_v63 = vpop.f32.mrb[39].mxu0  ;;  %v2320_v1 = vpop.f32.mrb[39].mxu1 }
 0x652   :  { %v3248_v62 = vmul.f32 -1.442695, %v2323_v56  ;;  %v3249_v7 = vmul.f32 -1.442695, %v2325_v58  ;;  %v4356_v1 = vld [vmem:[#allocation29_spill] sm:$0xff] }
 0x653   :  { %3557 = vpow2.f32 %v3247_v61  ;;  %v4355_v61 = vld [vmem:[#allocation28_spill] sm:$0xff] }
 0x654   :  { %3559 = vpow2.f32 %v3248_v62 }
 0x655   :  { %3561 = vpow2.f32 %v3249_v7 }
 0x656   :  { %3563 = vtanh.f32 %v2324_v51 }
 0x65d   :  { %v3558_v2 = vpop.eup %3557 }
 0x65e   :  { %v3560_v4 = vpop.eup %3559  ;;  %v2332_v5 = vadd.f32 1.0, %v3558_v2 }
 0x65f   :  { %v2333_v32 = vadd.f32 1.0, %v3560_v4  ;;  %v3562_v44 = vpop.eup %3561 }
 0x660   :  { %3565 = vrcp.f32 %v2332_v5  ;;  %v3564_v38 = vpop.eup %3563  ;;  %v2342_v42 = vadd.f32 1.0, %v3562_v44 }
 0x661   :  { %3567 = vrcp.f32 %v2333_v32 }
 0x662   :  { %3569 = vrcp.f32 %v2342_v42 }
 0x66a   :  { %v3566_v39 = vpop.eup %3565 }
 0x66b   :  { %v3568_v40 = vpop.eup %3567  ;;  %v2346_v41 = vmul.f32 %v3566_v39, %v3564_v38 }
 0x66c   :  { %v2345_v43 = vmul.f32 %v3568_v40, %v4201_v3  ;;  %v3570_v46 = vpop.eup %3569 }
 0x66e   :  { %v4246_v45 = vadd.f32 %v2346_v41, %v2345_v43 }
 0x670   :  { %3571 = vtanh.f32 %v4246_v45 }
 0x67a   :  { %v3572_v37 = vpop.eup %3571 }
 0x67b   :  { %v2349_v47 = vmul.f32 %v3572_v37, %v3570_v46 }
 0x67d   :  { %v2350_v48 = vpack.c.bf16 %v2349_v47, %v2349_v47 }
 0x67f   :  { %3250 = vst [vmem:[%s4309_s4 + $0x14] sm:$0xf] %v2350_v48  ;;  %2585 = vmatmul.mubr.bf16.vlgmr.msra.gmra.mrb[40].mxu0 %v2350_v48  ;;  %2626 = vmatmul.mubr.bf16.vlgmr.msra.gmra.mrb[40].mxu1 %v2350_v48 }
 0x680   :  { %2865 = vmatpush1.bf16.msra.mxu0 %v4057_v8  ;;  %2906 = vmatpush1.bf16.msra.mxu1 %v4059_v12  ;;  %v4349_v12 = vld [vmem:[#allocation22_spill] sm:$0xff] }
 0x681   :  { %2866 = vmatprep.subr.bf16.mxu0 %v4065_v23  ;;  %2907 = vmatprep.subr.bf16.mxu1 %v4067_v31  ;;  %v4350_v31 = vld [vmem:[#allocation23_spill] sm:$0xff] }
 0x682   :  { %2896 = vmatprep.mubr.bf16.mxu0 %v4335_v22  ;;  %2937 = vmatprep.mubr.bf16.mxu1 %v4335_v22 }
 0x684   :  { %2867 = vmatpush1.bf16.msra.mxu0 %v4069_v15  ;;  %2908 = vmatpush1.bf16.msra.mxu1 %v4071_v14 }
 0x685   :  { %2868 = vmatprep.subr.bf16.mxu0 %v4077_v16  ;;  %2909 = vmatprep.subr.bf16.mxu1 %v4079_v18  ;;  %v4351_v18 = vld [vmem:[#allocation24_spill] sm:$0xff] }
 0x688   :  { %2869 = vmatpush1.bf16.msra.mxu0 %v4081_v17  ;;  %2910 = vmatpush1.bf16.msra.mxu1 %v4083_v19  ;;  %v4352_v19 = vld [vmem:[#allocation25_spill] sm:$0xff] }
 0x689   :  { %2870 = vmatprep.subr.bf16.mxu0 %v4089_v0  ;;  %2911 = vmatprep.subr.bf16.mxu1 %v4091_v33 }
 0x68c   :  { %2871 = vmatpush1.bf16.msra.mxu0 %v4093_v34  ;;  %2912 = vmatpush1.bf16.msra.mxu1 %v4095_v20 }
 0x68d   :  { %2872 = vmatprep.subr.bf16.mxu0 %v4103_v24  ;;  %2913 = vmatprep.subr.bf16.mxu1 %v4107_v28 }
 0x690   :  { %2873 = vmatpush1.bf16.msra.mxu0 %v4101_v21  ;;  %2914 = vmatpush1.bf16.msra.mxu1 %v4105_v26 }
 0x691   :  { %2874 = vmatprep.subr.bf16.mxu0 %v4109_v27  ;;  %2915 = vmatprep.subr.bf16.mxu1 %v4112_v29 }
 0x694   :  { %2875 = vmatpush1.bf16.msra.mxu0 %v4116_v9  ;;  %2916 = vmatpush1.bf16.msra.mxu1 %v4120_v53 }
 0x695   :  { %2876 = vmatprep.subr.bf16.mxu0 %v4122_v25  ;;  %2917 = vmatprep.subr.bf16.mxu1 %v4125_v11 }
 0x698   :  { %2877 = vmatpush1.bf16.msra.mxu0 %v4128_v35  ;;  %2918 = vmatpush1.bf16.msra.mxu1 %v4132_v10 }
 0x699   :  { %2878 = vmatprep.subr.bf16.mxu0 %v4134_v30  ;;  %2919 = vmatprep.subr.bf16.mxu1 %v4137_v13 }
 0x69c   :  { %2879 = vmatpush1.bf16.msra.mxu0 %v4140_v6  ;;  %2920 = vmatpush1.bf16.msra.mxu1 %v4144_v36 }
 0x752   :  { %v2586_v22 = vpop.f32.mrb[40].mxu0  ;;  %v2627_v8 = vpop.f32.mrb[40].mxu1 }
 0x753   :  { %v2634_v23 = vadd.f32 %v2586_v22, %v4349_v12  ;;  %v2636_v15 = vadd.f32 %v2627_v8, %v4350_v31  ;;  %v2588_v14 = vpop.f32.mrb[41].mxu0  ;;  %v2629_v16 = vpop.f32.mrb[41].mxu1 }
 0x754   :  { %v2635_v17 = vadd.f32 %v2588_v14, %v4351_v18  ;;  %v2637_v0 = vadd.f32 %v2629_v16, %v4352_v19  ;;  %v2590_v33 = vpop.f32.mrb[42].mxu0  ;;  %v2631_v34 = vpop.f32.mrb[42].mxu1 }
 0x755   :  { %v3283_v20 = vmul.f32 -1.442695, %v2634_v23  ;;  %v2591_v21 = vpop.f32.mrb[43].mxu0  ;;  %v2632_v24 = vpop.f32.mrb[43].mxu1 }
 0x756   :  { %v3284_v26 = vmul.f32 -1.442695, %v2635_v17  ;;  %v3285_v28 = vmul.f32 -1.442695, %v2637_v0 }
 0x757   :  { %3573 = vpow2.f32 %v3283_v20 }
 0x758   :  { %3575 = vpow2.f32 %v3284_v26 }
 0x759   :  { %3577 = vpow2.f32 %v3285_v28 }
 0x75a   :  { %3579 = vtanh.f32 %v2636_v15 }
 0x761   :  { %v3574_v27 = vpop.eup %3573 }
 0x762   :  { %v3576_v29 = vpop.eup %3575  ;;  %v2644_v9 = vadd.f32 1.0, %v3574_v27 }
 0x763   :  { %v2645_v53 = vadd.f32 1.0, %v3576_v29  ;;  %v3578_v25 = vpop.eup %3577 }
 0x764   :  { %3581 = vrcp.f32 %v2644_v9  ;;  %v3580_v11 = vpop.eup %3579  ;;  %v2654_v13 = vadd.f32 1.0, %v3578_v25 }
 0x765   :  { %3583 = vrcp.f32 %v2645_v53 }
 0x766   :  { %3585 = vrcp.f32 %v2654_v13 }
 0x76e   :  { %v3582_v35 = vpop.eup %3581 }
 0x76f   :  { %v3584_v10 = vpop.eup %3583  ;;  %v2658_v30 = vmul.f32 %v3582_v35, %v3580_v11 }
 0x770   :  { %v2657_v6 = vmul.f32 %v3584_v10, %v4246_v45  ;;  %v3586_v3 = vpop.eup %3585 }
 0x772   :  { %v2659_v36 = vadd.f32 %v2658_v30, %v2657_v6 }
 0x774   :  { %3587 = vtanh.f32 %v2659_v36 }
 0x77e   :  { %v3588_v49 = vpop.eup %3587 }
 0x77f   :  { %v2661_v50 = vmul.f32 %v3588_v49, %v3586_v3 }
 0x781   :  { %v2662_v51 = vpack.c.bf16 %v2661_v50, %v2661_v50 }
 0x783   :  { %3286 = vst [vmem:[%s4309_s4 + $0x18] sm:$0xf] %v2662_v51  ;;  %2897 = vmatmul.mubr.bf16.vlgmr.msra.gmra.mrb[44].mxu0 %v2662_v51  ;;  %2938 = vmatmul.mubr.bf16.vlgmr.msra.gmra.mrb[44].mxu1 %v2662_v51 }
 0x856   :  { %v2898_v52 = vpop.f32.mrb[44].mxu0  ;;  %v2939_v54 = vpop.f32.mrb[44].mxu1 }
 0x857   :  { %v2946_v56 = vadd.f32 %v2898_v52, %v4353_v55  ;;  %v2948_v58 = vadd.f32 %v2939_v54, %v4354_v57  ;;  %v2900_v59 = vpop.f32.mrb[45].mxu0  ;;  %v2941_v60 = vpop.f32.mrb[45].mxu1 }
 0x858   :  { %v2947_v63 = vadd.f32 %v2900_v59, %v4355_v61  ;;  %v2949_v62 = vadd.f32 %v2941_v60, %v4356_v1  ;;  %v2902_v7 = vpop.f32.mrb[46].mxu0  ;;  %v2943_v2 = vpop.f32.mrb[46].mxu1 }
 0x859   :  { %v3319_v4 = vmul.f32 -1.442695, %v2946_v56  ;;  %v2903_v5 = vpop.f32.mrb[47].mxu0  ;;  %v2944_v32 = vpop.f32.mrb[47].mxu1 }
 0x85a   :  { %v3320_v44 = vmul.f32 -1.442695, %v2947_v63  ;;  %v3321_v38 = vmul.f32 -1.442695, %v2949_v62 }
 0x85b   :  { %3589 = vpow2.f32 %v3319_v4 }
 0x85c   :  { %3591 = vpow2.f32 %v3320_v44 }
 0x85d   :  { %3593 = vpow2.f32 %v3321_v38 }
 0x85e   :  { %3595 = vtanh.f32 %v2948_v58 }
 0x865   :  { %v3590_v39 = vpop.eup %3589 }
 0x866   :  { %v3592_v40 = vpop.eup %3591  ;;  %v2956_v41 = vadd.f32 1.0, %v3590_v39 }
 0x867   :  { %v2957_v42 = vadd.f32 1.0, %v3592_v40  ;;  %v3594_v43 = vpop.eup %3593 }
 0x868   :  { %3597 = vrcp.f32 %v2956_v41  ;;  %v3596_v45 = vpop.eup %3595  ;;  %v2966_v48 = vadd.f32 1.0, %v3594_v43 }
 0x869   :  { %3599 = vrcp.f32 %v2957_v42 }
 0x86a   :  { %3601 = vrcp.f32 %v2966_v48 }
 0x872   :  { %v3598_v46 = vpop.eup %3597 }
 0x873   :  { %v3600_v37 = vpop.eup %3599  ;;  %v2970_v47 = vmul.f32 %v3598_v46, %v3596_v45 }
 0x874   :  { %v2969_v22 = vmul.f32 %v3600_v37, %v2659_v36  ;;  %v3602_v12 = vpop.eup %3601 }
 0x876   :  { %v2971_v8 = vadd.f32 %v2970_v47, %v2969_v22 }
 0x878   :  { %3603 = vtanh.f32 %v2971_v8  ;;  %2978 = vst [vmem:[%s4311_s6] sm:$0xff] %v2971_v8 }
 0x882   :  { %v3604_v23 = vpop.eup %3603 }
 0x883   :  { %v2973_v31 = vmul.f32 %v3604_v23, %v3602_v12 }
 0x885   :  { %v2974_v15 = vpack.c.bf16 %v2973_v31, %v2973_v31  ;;  %2977 = vst [vmem:[%s4310_s5] sm:$0xff] %v2973_v31 }
 0x887   :  { %3322 = vst [vmem:[%s4309_s4 + $0x1c] sm:$0xf] %v2974_v15 }
 0x888   :  { %2991 = vsyncpa [#allocation4], 1 }
 0x889   :  { %2992 = vsyncpa [#allocation6], 1 }

</bundles_post_ra>
